<compile_context>
chip_gen: v7x
topology: tpu7x:2x2x1
jax: 0.10.0
libtpu: 0.0.40
codegen_flags: <defaults>
</compile_context>

<pallas_src>
import functools
import numpy as np
import jax
import jax.numpy as jnp
from jax.experimental import pallas as pl
from jax.experimental.pallas import tpu as pltpu


_TAPS = tuple((dy, dx) for dy in (-1, 0, 1) for dx in (-1, 0, 1))


def _round128(v):
    return ((v + 127) // 128) * 128


def _pmid_layout(Ch, MID):
    """128-aligned column offsets inside the packed MID-row parameter block."""
    o_wmid1 = 0                                   # (MID, 9*MID) folded mid_conv1
    o_wmid2 = _round128(9 * MID)                  # (MID, MID)   folded mid_conv2
    o_win = o_wmid2 + _round128(MID)              # (MID, 9*Ch)  scaled in_conv
    o_bias = o_win + _round128(9 * Ch)            # col o_bias: b_mid1, col o_bias+1: b_mid2
    width = o_bias + 128
    return o_wmid1, o_wmid2, o_win, o_bias, width


# ------------------------- fused flow-step kernel (one batch block) -------------------------
def flow_step_kernel(x_ref, p1_ref, pmid_ref, pout_ref, y_ref, ldj_ref,
                     *, H, W, Ch, MID, B_BLK, o_wmid2, o_win, o_bias):
    HW = H * W
    L = B_BLK * HW
    C = 2 * Ch
    K9 = 9 * MID

    # Per-image pixel-position masks (batch is flattened along the lane axis, so all
    # 3x3 halo conditions - including the seams between images - are local-index tests).
    pix = jax.lax.broadcasted_iota(jnp.int32, (1, L), 1) % HW
    xw = pix % W
    ok_t = pix >= W              # row above exists
    ok_b = pix < HW - W          # row below exists
    ok_l = xw >= 1               # left neighbour exists
    ok_r = xw <= W - 2           # right neighbour exists

    def tap(a, dy, dx):
        """a[:, p + dy*W + dx] where the neighbour is inside the same image, else 0.
        Pure in-register lane shift + select; no VMEM round trip."""
        off = dy * W + dx
        rows = a.shape[0]
        if off > 0:
            shifted = jnp.concatenate(
                [a[:, off:], jnp.zeros((rows, off), jnp.float32)], axis=1)
        elif off < 0:
            shifted = jnp.concatenate(
                [jnp.zeros((rows, -off), jnp.float32), a[:, :L + off]], axis=1)
        else:
            shifted = a
        mask = None
        if dy == -1:
            mask = ok_t
        elif dy == 1:
            mask = ok_b
        if dx == -1:
            mask = ok_l if mask is None else (mask & ok_l)
        elif dx == 1:
            mask = ok_r if mask is None else (mask & ok_r)
        return shifted if mask is None else jnp.where(mask, shifted, 0.0)

    def conv3x3(a, w_ref, col0, cin):
        """sum_k W[:, col0+k*cin:(k+1)*cin] @ tap_k(a)  (per-tap MXU accumulation)."""
        acc = None
        for k, (dy, dx) in enumerate(_TAPS):
            wk = w_ref[:, col0 + k * cin:col0 + (k + 1) * cin]
            d = jnp.dot(wk, tap(a, dy, dx), preferred_element_type=jnp.float32)
            acc = d if acc is None else acc + d
        return acc

    x = x_ref[...]                                                     # (C, L)

    # ---- ActNorm + invertible 1x1 conv + in_norm bias: ONE merged matmul ----
    xa = jnp.dot(p1_ref[:, 0:C], x,
                 preferred_element_type=jnp.float32) + p1_ref[:, C:C + 1]   # (C+Ch, L)
    y_ref[0:Ch, :] = xa[0:Ch, :]        # park x_change in its output slot (frees vregs)
    y_ref[Ch:C, :] = xa[Ch:C, :]        # identity half of the output
    a0 = xa[C:C + Ch, :]                # x_id + in_nb (in_norm scale folded into w_in)

    # ---- NN(x_id): in_conv (3x3) -> ReLU ----
    h = jnp.maximum(conv3x3(a0, pmid_ref, o_win, Ch), 0.0)            # (MID, L)

    # ---- mid_conv1 (3x3) + folded mid_norm -> ReLU ----
    h = jnp.maximum(conv3x3(h, pmid_ref, 0, MID)
                    + pmid_ref[:, o_bias:o_bias + 1], 0.0)            # (MID, L)

    # ---- mid_conv2 (1x1) + folded out_norm -> ReLU ----
    g = jnp.maximum(jnp.dot(pmid_ref[:, o_wmid2:o_wmid2 + MID], h,
                            preferred_element_type=jnp.float32)
                    + pmid_ref[:, o_bias + 1:o_bias + 2], 0.0)        # (MID, L)

    # ---- out_conv (3x3 + bias): s and t produced by ONE merged accumulation ----
    st = conv3x3(g, pout_ref, 0, MID) + pout_ref[:, K9:K9 + 1]        # (2*Ch, L)
    s = pout_ref[0:Ch, K9 + 1:K9 + 2] * jnp.tanh(st[0:Ch, :])
    t = st[Ch:C, :]

    # ---- affine coupling transform + per-image log-det ----
    y_ref[0:Ch, :] = (y_ref[0:Ch, :] + t) * jnp.exp(s)
    for b in range(B_BLK):
        seg = s[:, b * HW:(b + 1) * HW]
        ldj_ref[b:b + 1, :] = jnp.sum(jnp.sum(seg, axis=1, keepdims=True),
                                      axis=0, keepdims=True)


# ------------------------------- wrapper (glue) ------------------------------------
def _pick_batch_block(n):
    """Whole batch per grid step on single-TensorCore chips (v5e/v6e); split the
    batch into two blocks on v7x-class chips so both TensorCores get work."""
    kind = ""
    try:
        kind = jax.devices()[0].device_kind.lower()
    except Exception:
        pass
    if n >= 2 and n % 2 == 0 and ("v7" in kind or "7x" in kind.replace(" ", "")):
        return n // 2
    return n


@functools.partial(jax.jit, static_argnames=("b_blk",))
def _flow_step_jit(x_nchw, sldj, p, *, b_blk):
    N, C, H, W = x_nchw.shape
    Ch = C // 2
    MID = p['w_mid1'].shape[0]
    HW = H * W
    NB = N // b_blk
    L = b_blk * HW

    # NCHW -> (NB, C, b_blk*HW): channel-major, batch flattened into the lane axis.
    x_cm = (x_nchw.astype(jnp.float32)
            .reshape(NB, b_blk, C, HW)
            .transpose(0, 2, 1, 3)
            .reshape(NB, C, L))

    # ---- fold ActNorm into the 1x1 invertible conv; append the in_norm-bias row group ----
    es = jnp.exp(p['an_logs'])
    w_fold = p['inv_w'] * es[None, :]                        # (C, C)
    b_fold = w_fold @ p['an_bias']                           # (C,)
    w1 = jnp.concatenate([w_fold, w_fold[Ch:]], axis=0)      # rows: x_change | x_id | a0
    b1 = jnp.concatenate([b_fold, b_fold[Ch:] + p['in_nb']], axis=0)[:, None]
    p1 = jnp.concatenate([w1, b1], axis=1)                   # (C+Ch, C+1)

    # ---- NN weights: im2col layout, norms folded, packed into two blocks ----
    es_in = jnp.exp(p['in_nl'])
    es_mid = jnp.exp(p['mid_nl'])
    es_out = jnp.exp(p['out_nl'])

    w_in_s = (jnp.transpose(p['w_in'], (0, 2, 3, 1)).reshape(MID, 9 * Ch)
              * jnp.tile(es_in, 9)[None, :])                 # in_norm scale folded (exact)
    w_mid1_f = es_mid[:, None] * jnp.transpose(p['w_mid1'], (0, 2, 3, 1)).reshape(MID, 9 * MID)
    b_mid1 = (p['mid_nb'] * es_mid)[:, None]
    w_mid2_f = es_out[:, None] * p['w_mid2'][:, :, 0, 0]
    b_mid2 = (p['out_nb'] * es_out)[:, None]

    o_wmid1, o_wmid2, o_win, o_bias, pmid_w = _pmid_layout(Ch, MID)
    pmid = jnp.zeros((MID, pmid_w), jnp.float32)
    pmid = pmid.at[:, o_wmid1:o_wmid1 + 9 * MID].set(w_mid1_f)
    pmid = pmid.at[:, o_wmid2:o_wmid2 + MID].set(w_mid2_f)
    pmid = pmid.at[:, o_win:o_win + 9 * Ch].set(w_in_s)
    pmid = pmid.at[:, o_bias:o_bias + 1].set(b_mid1)
    pmid = pmid.at[:, o_bias + 1:o_bias + 2].set(b_mid2)

    # out_conv: s channels (0::2) first, t channels (1::2) second -> one merged dot.
    w_out_k = jnp.transpose(
        jnp.concatenate([p['w_out'][0::2], p['w_out'][1::2]], axis=0),
        (0, 2, 3, 1)).reshape(2 * Ch, 9 * MID)
    b_out_k = jnp.concatenate([p['b_out'][0::2], p['b_out'][1::2]])[:, None]
    scale_k = jnp.concatenate([p['coup_scale'],
                               jnp.zeros((Ch,), jnp.float32)])[:, None]
    pout_w = _round128(9 * MID + 2)
    pout = jnp.zeros((2 * Ch, pout_w), jnp.float32)
    pout = pout.at[:, 0:9 * MID].set(w_out_k)
    pout = pout.at[:, 9 * MID:9 * MID + 1].set(b_out_k)
    pout = pout.at[:, 9 * MID + 1:9 * MID + 2].set(scale_k)

    kernel = functools.partial(flow_step_kernel, H=H, W=W, Ch=Ch, MID=MID,
                               B_BLK=b_blk, o_wmid2=o_wmid2, o_win=o_win,
                               o_bias=o_bias)

    blk3 = lambda b: (b, 0, 0)
    full2 = lambda b: (0, 0)

    y_cm, ldj = pl.pallas_call(
        kernel,
        out_shape=(jax.ShapeDtypeStruct((NB, C, L), jnp.float32),
                   jax.ShapeDtypeStruct((NB, b_blk, 1), jnp.float32)),
        grid=(NB,),
        in_specs=[pl.BlockSpec((None, C, L), blk3),
                  pl.BlockSpec((C + Ch, C + 1), full2),
                  pl.BlockSpec((MID, pmid_w), full2),
                  pl.BlockSpec((2 * Ch, pout_w), full2)],
        out_specs=(pl.BlockSpec((None, C, L), blk3),
                   pl.BlockSpec((None, b_blk, 1), blk3)),
        compiler_params=pltpu.CompilerParams(dimension_semantics=("parallel",)),
    )(x_cm, p1, pmid, pout)

    # scalar log-det terms of ActNorm / InvConv (glue):
    # TODO(synk): jnp.linalg.slogdet has no Pallas equivalent; computed in plain JAX.
    sldj = sldj + (jnp.sum(p['an_logs'])
                   + jnp.linalg.slogdet(p['inv_w'])[1]) * (H * W)
    sldj = sldj + ldj.reshape(N)

    y = (y_cm.reshape(NB, C, b_blk, HW)
             .transpose(0, 2, 1, 3)
             .reshape(N, C, H, W))
    return y, sldj


def flow_step_forward(x_nchw, sldj, p, b_blk=None):
    if b_blk is None:
        b_blk = _pick_batch_block(x_nchw.shape[0])
    return _flow_step_jit(x_nchw, sldj, p, b_blk=b_blk)


# -------------------------- deterministic parameter init ---------------------------
def make_params(key, C, MID):
    Ch = C // 2
    ks = jax.random.split(key, 14)
    n = lambda k, shape, s=0.05: s * jax.random.normal(k, shape, jnp.float32)
    return dict(
        an_bias=n(ks[0], (C,), 0.1),
        an_logs=n(ks[1], (C,), 0.1),
        inv_w=jnp.linalg.qr(jax.random.normal(ks[2], (C, C), jnp.float32))[0],
        in_nb=n(ks[3], (Ch,), 0.1),
        in_nl=n(ks[4], (Ch,), 0.1),
        w_in=n(ks[5], (MID, Ch, 3, 3)),
        w_mid1=n(ks[6], (MID, MID, 3, 3)),
        mid_nb=n(ks[7], (MID,), 0.1),
        mid_nl=n(ks[8], (MID,), 0.1),
        w_mid2=n(ks[9], (MID, MID, 1, 1)),
        out_nb=n(ks[10], (MID,), 0.1),
        out_nl=n(ks[11], (MID,), 0.1),
        # PyTorch zero-inits out_conv; use small deterministic values so the path is exercised.
        w_out=n(ks[12], (2 * Ch, MID, 3, 3)),
        b_out=n(ks[13], (2 * Ch,), 0.1),
        coup_scale=jnp.ones((Ch,), jnp.float32),
    )


# ------------------------------ pure-JAX reference ---------------------------------
def _actnorm(x, bias, logs):
    return (x + bias[None, :, None, None]) * jnp.exp(logs)[None, :, None, None]


def _conv_nchw(x, w, b=None):
    kh, kw = w.shape[2], w.shape[3]
    y = jax.lax.conv_general_dilated(
        x, w, window_strides=(1, 1),
        padding=[(kh // 2, kh // 2), (kw // 2, kw // 2)],
        dimension_numbers=('NCHW', 'OIHW', 'NCHW'))
    if b is not None:
        y = y + b[None, :, None, None]
    return y


def reference_forward(x, sldj, p):
    N, C, H, W = x.shape
    Ch = C // 2
    x = _actnorm(x, p['an_bias'], p['an_logs'])
    sldj = sldj + jnp.sum(p['an_logs']) * H * W
    sldj = sldj + jnp.linalg.slogdet(p['inv_w'])[1] * H * W
    x = jnp.einsum('oc,nchw->nohw', p['inv_w'], x)
    xc, xid = x[:, :Ch], x[:, Ch:]
    h = _actnorm(xid, p['in_nb'], p['in_nl'])
    h = jnp.maximum(_conv_nchw(h, p['w_in']), 0.0)
    h = _conv_nchw(h, p['w_mid1'])
    h = jnp.maximum(_actnorm(h, p['mid_nb'], p['mid_nl']), 0.0)
    h = _conv_nchw(h, p['w_mid2'])
    h = jnp.maximum(_actnorm(h, p['out_nb'], p['out_nl']), 0.0)
    st = _conv_nchw(h, p['w_out'], p['b_out'])
    s, t = st[:, 0::2], st[:, 1::2]
    s = p['coup_scale'][None, :, None, None] * jnp.tanh(s)
    xc = (xc + t) * jnp.exp(s)
    sldj = sldj + jnp.sum(s.reshape(N, -1), axis=1)
    return jnp.concatenate([xc, xid], axis=1), sldj


if __name__ == "__main__":
    key = jax.random.PRNGKey(0)
    N, C, H, W, MID = 2, 4, 16, 16, 32
    kx, kp = jax.random.split(key)
    x = jax.random.normal(kx, (N, C, H, W), jnp.float32)
    sldj = jnp.zeros((N,), jnp.float32)
    params = make_params(kp, C, MID)

    out, sldj_out = flow_step_forward(x, sldj, params)
    jax.block_until_ready((out, sldj_out))

    ref_out, ref_sldj = reference_forward(x, sldj, params)
    assert out.shape == (N, C, H, W) and sldj_out.shape == (N,)
    np.testing.assert_allclose(np.asarray(out), np.asarray(ref_out), rtol=2e-3, atol=2e-3)
    np.testing.assert_allclose(np.asarray(sldj_out), np.asarray(ref_sldj), rtol=2e-3, atol=2e-3)
    print("KERNEL_OK")
</pallas_src>

<mosaic_0001>
module attributes {stable_mosaic.version = 11 : i64} {
  func.func @flow_step_kernel(%arg0: i32, %arg1: memref<1x4x512xf32, #tpu.memory_space<vmem>>, %arg2: memref<6x5xf32, #tpu.memory_space<vmem>>, %arg3: memref<32x768xf32, #tpu.memory_space<vmem>>, %arg4: memref<4x384xf32, #tpu.memory_space<vmem>>, %arg5: memref<1x4x512xf32, #tpu.memory_space<vmem>>, %arg6: memref<1x2x1xf32, #tpu.memory_space<vmem>>) attributes {dimension_semantics = [#tpu.dimension_semantics<parallel>], iteration_bounds = array<i64: 1>, scalar_prefetch = 0 : i64, scratch_operands = 0 : i64, tpu.core_type = #tpu.core_type<tc>, window_params = [{transform_indices = @transform_0, window_bounds = array<i64: 1, 4, 512>}, {pipeline_mode = #tpu.pipeline_mode<synchronous>, transform_indices = @transform_1, window_bounds = array<i64: 6, 5>}, {pipeline_mode = #tpu.pipeline_mode<synchronous>, transform_indices = @transform_2, window_bounds = array<i64: 32, 768>}, {pipeline_mode = #tpu.pipeline_mode<synchronous>, transform_indices = @transform_3, window_bounds = array<i64: 4, 384>}, {transform_indices = @transform_4, window_bounds = array<i64: 1, 4, 512>}, {transform_indices = @transform_5, window_bounds = array<i64: 1, 2, 1>}]} {
    %0 = tpu.iota {dimensions = array<i32: 1>} : vector<1x512xi32>
    %c256_i32 = arith.constant 256 : i32
    %c0_i32 = arith.constant 0 : i32
    %1 = arith.cmpi eq, %c256_i32, %c0_i32 : i32
    %c1_i32 = arith.constant 1 : i32
    %2 = arith.select %1, %c1_i32, %c256_i32 : i32
    %3 = vector.broadcast %2 : i32 to vector<1x512xi32>
    %4 = arith.remsi %0, %3 : vector<1x512xi32>
    %c0_i32_0 = arith.constant 0 : i32
    %5 = vector.broadcast %c0_i32_0 : i32 to vector<1x512xi32>
    %6 = arith.cmpi ne, %4, %5 : vector<1x512xi32>
    %c0_i32_1 = arith.constant 0 : i32
    %7 = vector.broadcast %c0_i32_1 : i32 to vector<1x512xi32>
    %8 = arith.cmpi slt, %4, %7 : vector<1x512xi32>
    %c0_i32_2 = arith.constant 0 : i32
    %9 = arith.cmpi slt, %2, %c0_i32_2 : i32
    %10 = vector.broadcast %9 : i1 to vector<1x512xi1>
    %11 = vector.broadcast %10 : vector<1x512xi1> to vector<1x512xi1>
    %12 = arith.xori %8, %11 : vector<1x512xi1>
    %13 = arith.andi %12, %6 : vector<1x512xi1>
    %14 = vector.broadcast %2 : i32 to vector<1x512xi32>
    %15 = arith.addi %4, %14 : vector<1x512xi32>
    %16 = arith.select %13, %15, %4 : vector<1x512xi1>, vector<1x512xi32>
    %c16_i32 = arith.constant 16 : i32
    %c0_i32_3 = arith.constant 0 : i32
    %17 = arith.cmpi eq, %c16_i32, %c0_i32_3 : i32
    %c1_i32_4 = arith.constant 1 : i32
    %18 = arith.select %17, %c1_i32_4, %c16_i32 : i32
    %19 = vector.broadcast %18 : i32 to vector<1x512xi32>
    %20 = arith.remsi %16, %19 : vector<1x512xi32>
    %c0_i32_5 = arith.constant 0 : i32
    %21 = vector.broadcast %c0_i32_5 : i32 to vector<1x512xi32>
    %22 = arith.cmpi ne, %20, %21 : vector<1x512xi32>
    %c0_i32_6 = arith.constant 0 : i32
    %23 = vector.broadcast %c0_i32_6 : i32 to vector<1x512xi32>
    %24 = arith.cmpi slt, %20, %23 : vector<1x512xi32>
    %c0_i32_7 = arith.constant 0 : i32
    %25 = arith.cmpi slt, %18, %c0_i32_7 : i32
    %26 = vector.broadcast %25 : i1 to vector<1x512xi1>
    %27 = vector.broadcast %26 : vector<1x512xi1> to vector<1x512xi1>
    %28 = arith.xori %24, %27 : vector<1x512xi1>
    %29 = arith.andi %28, %22 : vector<1x512xi1>
    %30 = vector.broadcast %18 : i32 to vector<1x512xi32>
    %31 = arith.addi %20, %30 : vector<1x512xi32>
    %32 = arith.select %29, %31, %20 : vector<1x512xi1>, vector<1x512xi32>
    %c16_i32_8 = arith.constant 16 : i32
    %33 = vector.broadcast %c16_i32_8 : i32 to vector<1x512xi32>
    %34 = arith.cmpi sge, %16, %33 : vector<1x512xi32>
    %c240_i32 = arith.constant 240 : i32
    %35 = vector.broadcast %c240_i32 : i32 to vector<1x512xi32>
    %36 = arith.cmpi slt, %16, %35 : vector<1x512xi32>
    %c1_i32_9 = arith.constant 1 : i32
    %37 = vector.broadcast %c1_i32_9 : i32 to vector<1x512xi32>
    %38 = arith.cmpi sge, %32, %37 : vector<1x512xi32>
    %c14_i32 = arith.constant 14 : i32
    %39 = vector.broadcast %c14_i32 : i32 to vector<1x512xi32>
    %40 = arith.cmpi sle, %32, %39 : vector<1x512xi32>
    %c0 = arith.constant 0 : index
    %c0_10 = arith.constant 0 : index
    %c0_11 = arith.constant 0 : index
    %41 = vector.load %arg1[%c0, %c0_10, %c0_11] : memref<1x4x512xf32, #tpu.memory_space<vmem>>, vector<1x4x512xf32>
    %42 = vector.shape_cast %41 : vector<1x4x512xf32> to vector<4x512xf32>
    %c0_12 = arith.constant 0 : index
    %c0_13 = arith.constant 0 : index
    %43 = vector.load %arg2[%c0_12, %c0_13] : memref<6x5xf32, #tpu.memory_space<vmem>>, vector<6x4xf32>
    %cst = arith.constant dense<0.000000e+00> : vector<6x512xf32>
    %44 = tpu.matmul %43, %42, %cst {dimension_numbers = #tpu.dot_dimension_numbers<[1], [0], [0], [1], [0, 0, 1, 1], [], []>} : vector<6x4xf32>, vector<4x512xf32>, vector<6x512xf32> -> vector<6x512xf32>
    %c0_14 = arith.constant 0 : index
    %c4 = arith.constant 4 : index
    %45 = vector.load %arg2[%c0_14, %c4] : memref<6x5xf32, #tpu.memory_space<vmem>>, vector<6x1xf32>
    %46 = vector.broadcast %45 : vector<6x1xf32> to vector<6x512xf32>
    %47 = arith.addf %44, %46 : vector<6x512xf32>
    %48 = vector.extract_strided_slice %47 {offsets = [0, 0], sizes = [2, 512], strides = [1, 1]} : vector<6x512xf32> to vector<2x512xf32>
    %c0_15 = arith.constant 0 : index
    %c0_16 = arith.constant 0 : index
    %c0_17 = arith.constant 0 : index
    %49 = vector.load %arg5[%c0_15, %c0_16, %c0_17] : memref<1x4x512xf32, #tpu.memory_space<vmem>>, vector<1x2x512xf32>
    %50 = vector.shape_cast %49 : vector<1x2x512xf32> to vector<2x512xf32>
    %51 = vector.shape_cast %48 : vector<2x512xf32> to vector<1x2x512xf32>
    tpu.vector_store %arg5[%c0_15, %c0_16, %c0_17], %51 {strides = array<i32>} : memref<1x4x512xf32, #tpu.memory_space<vmem>>, vector<1x2x512xf32>,
    %52 = vector.extract_strided_slice %47 {offsets = [2, 0], sizes = [2, 512], strides = [1, 1]} : vector<6x512xf32> to vector<2x512xf32>
    %c0_18 = arith.constant 0 : index
    %c2 = arith.constant 2 : index
    %c0_19 = arith.constant 0 : index
    %53 = vector.load %arg5[%c0_18, %c2, %c0_19] : memref<1x4x512xf32, #tpu.memory_space<vmem>>, vector<1x2x512xf32>
    %54 = vector.shape_cast %53 : vector<1x2x512xf32> to vector<2x512xf32>
    %55 = vector.shape_cast %52 : vector<2x512xf32> to vector<1x2x512xf32>
    tpu.vector_store %arg5[%c0_18, %c2, %c0_19], %55 {strides = array<i32>} : memref<1x4x512xf32, #tpu.memory_space<vmem>>, vector<1x2x512xf32>,
    %56 = vector.extract_strided_slice %47 {offsets = [4, 0], sizes = [2, 512], strides = [1, 1]} : vector<6x512xf32> to vector<2x512xf32>
    %c0_20 = arith.constant 0 : index
    %c512 = arith.constant 512 : index
    %57 = vector.load %arg3[%c0_20, %c512] : memref<32x768xf32, #tpu.memory_space<vmem>>, vector<32x2xf32>
    %cst_21 = arith.constant 0.000000e+00 : f32
    %58 = vector.broadcast %cst_21 : f32 to vector<2x17xf32>
    %59 = vector.extract_strided_slice %56 {offsets = [0, 0], sizes = [2, 495], strides = [1, 1]} : vector<2x512xf32> to vector<2x495xf32>
    %60 = tpu.concatenate %58, %59 in 1 : vector<2x17xf32>, vector<2x495xf32> -> vector<2x512xf32>
    %61 = arith.andi %34, %38 : vector<1x512xi1>
    %cst_22 = arith.constant 0.000000e+00 : f32
    %62 = vector.shape_cast %61 : vector<1x512xi1> to vector<1x512xi1>
    %63 = vector.broadcast %62 : vector<1x512xi1> to vector<2x512xi1>
    %64 = vector.broadcast %cst_22 : f32 to vector<2x512xf32>
    %65 = arith.select %63, %60, %64 : vector<2x512xi1>, vector<2x512xf32>
    %cst_23 = arith.constant dense<0.000000e+00> : vector<32x512xf32>
    %66 = tpu.matmul %57, %65, %cst_23 {dimension_numbers = #tpu.dot_dimension_numbers<[1], [0], [0], [1], [0, 0, 1, 1], [], []>} : vector<32x2xf32>, vector<2x512xf32>, vector<32x512xf32> -> vector<32x512xf32>
    %c0_24 = arith.constant 0 : index
    %c514 = arith.constant 514 : index
    %67 = vector.load %arg3[%c0_24, %c514] : memref<32x768xf32, #tpu.memory_space<vmem>>, vector<32x2xf32>
    %cst_25 = arith.constant 0.000000e+00 : f32
    %68 = vector.broadcast %cst_25 : f32 to vector<2x16xf32>
    %69 = vector.extract_strided_slice %56 {offsets = [0, 0], sizes = [2, 496], strides = [1, 1]} : vector<2x512xf32> to vector<2x496xf32>
    %70 = tpu.concatenate %68, %69 in 1 : vector<2x16xf32>, vector<2x496xf32> -> vector<2x512xf32>
    %cst_26 = arith.constant 0.000000e+00 : f32
    %71 = vector.shape_cast %34 : vector<1x512xi1> to vector<1x512xi1>
    %72 = vector.broadcast %71 : vector<1x512xi1> to vector<2x512xi1>
    %73 = vector.broadcast %cst_26 : f32 to vector<2x512xf32>
    %74 = arith.select %72, %70, %73 : vector<2x512xi1>, vector<2x512xf32>
    %cst_27 = arith.constant dense<0.000000e+00> : vector<32x512xf32>
    %75 = tpu.matmul %67, %74, %cst_27 {dimension_numbers = #tpu.dot_dimension_numbers<[1], [0], [0], [1], [0, 0, 1, 1], [], []>} : vector<32x2xf32>, vector<2x512xf32>, vector<32x512xf32> -> vector<32x512xf32>
    %76 = arith.addf %66, %75 : vector<32x512xf32>
    %c0_28 = arith.constant 0 : index
    %c516 = arith.constant 516 : index
    %77 = vector.load %arg3[%c0_28, %c516] : memref<32x768xf32, #tpu.memory_space<vmem>>, vector<32x2xf32>
    %cst_29 = arith.constant 0.000000e+00 : f32
    %78 = vector.broadcast %cst_29 : f32 to vector<2x15xf32>
    %79 = vector.extract_strided_slice %56 {offsets = [0, 0], sizes = [2, 497], strides = [1, 1]} : vector<2x512xf32> to vector<2x497xf32>
    %80 = tpu.concatenate %78, %79 in 1 : vector<2x15xf32>, vector<2x497xf32> -> vector<2x512xf32>
    %81 = arith.andi %34, %40 : vector<1x512xi1>
    %cst_30 = arith.constant 0.000000e+00 : f32
    %82 = vector.shape_cast %81 : vector<1x512xi1> to vector<1x512xi1>
    %83 = vector.broadcast %82 : vector<1x512xi1> to vector<2x512xi1>
    %84 = vector.broadcast %cst_30 : f32 to vector<2x512xf32>
    %85 = arith.select %83, %80, %84 : vector<2x512xi1>, vector<2x512xf32>
    %cst_31 = arith.constant dense<0.000000e+00> : vector<32x512xf32>
    %86 = tpu.matmul %77, %85, %cst_31 {dimension_numbers = #tpu.dot_dimension_numbers<[1], [0], [0], [1], [0, 0, 1, 1], [], []>} : vector<32x2xf32>, vector<2x512xf32>, vector<32x512xf32> -> vector<32x512xf32>
    %87 = arith.addf %76, %86 : vector<32x512xf32>
    %c0_32 = arith.constant 0 : index
    %c518 = arith.constant 518 : index
    %88 = vector.load %arg3[%c0_32, %c518] : memref<32x768xf32, #tpu.memory_space<vmem>>, vector<32x2xf32>
    %cst_33 = arith.constant 0.000000e+00 : f32
    %89 = vector.broadcast %cst_33 : f32 to vector<2x1xf32>
    %90 = vector.extract_strided_slice %56 {offsets = [0, 0], sizes = [2, 511], strides = [1, 1]} : vector<2x512xf32> to vector<2x511xf32>
    %91 = tpu.concatenate %89, %90 in 1 : vector<2x1xf32>, vector<2x511xf32> -> vector<2x512xf32>
    %cst_34 = arith.constant 0.000000e+00 : f32
    %92 = vector.shape_cast %38 : vector<1x512xi1> to vector<1x512xi1>
    %93 = vector.broadcast %92 : vector<1x512xi1> to vector<2x512xi1>
    %94 = vector.broadcast %cst_34 : f32 to vector<2x512xf32>
    %95 = arith.select %93, %91, %94 : vector<2x512xi1>, vector<2x512xf32>
    %cst_35 = arith.constant dense<0.000000e+00> : vector<32x512xf32>
    %96 = tpu.matmul %88, %95, %cst_35 {dimension_numbers = #tpu.dot_dimension_numbers<[1], [0], [0], [1], [0, 0, 1, 1], [], []>} : vector<32x2xf32>, vector<2x512xf32>, vector<32x512xf32> -> vector<32x512xf32>
    %97 = arith.addf %87, %96 : vector<32x512xf32>
    %c0_36 = arith.constant 0 : index
    %c520 = arith.constant 520 : index
    %98 = vector.load %arg3[%c0_36, %c520] : memref<32x768xf32, #tpu.memory_space<vmem>>, vector<32x2xf32>
    %cst_37 = arith.constant dense<0.000000e+00> : vector<32x512xf32>
    %99 = tpu.matmul %98, %56, %cst_37 {dimension_numbers = #tpu.dot_dimension_numbers<[1], [0], [0], [1], [0, 0, 1, 1], [], []>} : vector<32x2xf32>, vector<2x512xf32>, vector<32x512xf32> -> vector<32x512xf32>
    %100 = arith.addf %97, %99 : vector<32x512xf32>
    %c0_38 = arith.constant 0 : index
    %c522 = arith.constant 522 : index
    %101 = vector.load %arg3[%c0_38, %c522] : memref<32x768xf32, #tpu.memory_space<vmem>>, vector<32x2xf32>
    %102 = vector.extract_strided_slice %56 {offsets = [0, 1], sizes = [2, 511], strides = [1, 1]} : vector<2x512xf32> to vector<2x511xf32>
    %cst_39 = arith.constant 0.000000e+00 : f32
    %103 = vector.broadcast %cst_39 : f32 to vector<2x1xf32>
    %104 = tpu.concatenate %102, %103 in 1 : vector<2x511xf32>, vector<2x1xf32> -> vector<2x512xf32>
    %cst_40 = arith.constant 0.000000e+00 : f32
    %105 = vector.shape_cast %40 : vector<1x512xi1> to vector<1x512xi1>
    %106 = vector.broadcast %105 : vector<1x512xi1> to vector<2x512xi1>
    %107 = vector.broadcast %cst_40 : f32 to vector<2x512xf32>
    %108 = arith.select %106, %104, %107 : vector<2x512xi1>, vector<2x512xf32>
    %cst_41 = arith.constant dense<0.000000e+00> : vector<32x512xf32>
    %109 = tpu.matmul %101, %108, %cst_41 {dimension_numbers = #tpu.dot_dimension_numbers<[1], [0], [0], [1], [0, 0, 1, 1], [], []>} : vector<32x2xf32>, vector<2x512xf32>, vector<32x512xf32> -> vector<32x512xf32>
    %110 = arith.addf %100, %109 : vector<32x512xf32>
    %c0_42 = arith.constant 0 : index
    %c524 = arith.constant 524 : index
    %111 = vector.load %arg3[%c0_42, %c524] : memref<32x768xf32, #tpu.memory_space<vmem>>, vector<32x2xf32>
    %112 = vector.extract_strided_slice %56 {offsets = [0, 15], sizes = [2, 497], strides = [1, 1]} : vector<2x512xf32> to vector<2x497xf32>
    %cst_43 = arith.constant 0.000000e+00 : f32
    %113 = vector.broadcast %cst_43 : f32 to vector<2x15xf32>
    %114 = tpu.concatenate %112, %113 in 1 : vector<2x497xf32>, vector<2x15xf32> -> vector<2x512xf32>
    %115 = arith.andi %36, %38 : vector<1x512xi1>
    %cst_44 = arith.constant 0.000000e+00 : f32
    %116 = vector.shape_cast %115 : vector<1x512xi1> to vector<1x512xi1>
    %117 = vector.broadcast %116 : vector<1x512xi1> to vector<2x512xi1>
    %118 = vector.broadcast %cst_44 : f32 to vector<2x512xf32>
    %119 = arith.select %117, %114, %118 : vector<2x512xi1>, vector<2x512xf32>
    %cst_45 = arith.constant dense<0.000000e+00> : vector<32x512xf32>
    %120 = tpu.matmul %111, %119, %cst_45 {dimension_numbers = #tpu.dot_dimension_numbers<[1], [0], [0], [1], [0, 0, 1, 1], [], []>} : vector<32x2xf32>, vector<2x512xf32>, vector<32x512xf32> -> vector<32x512xf32>
    %121 = arith.addf %110, %120 : vector<32x512xf32>
    %c0_46 = arith.constant 0 : index
    %c526 = arith.constant 526 : index
    %122 = vector.load %arg3[%c0_46, %c526] : memref<32x768xf32, #tpu.memory_space<vmem>>, vector<32x2xf32>
    %123 = vector.extract_strided_slice %56 {offsets = [0, 16], sizes = [2, 496], strides = [1, 1]} : vector<2x512xf32> to vector<2x496xf32>
    %cst_47 = arith.constant 0.000000e+00 : f32
    %124 = vector.broadcast %cst_47 : f32 to vector<2x16xf32>
    %125 = tpu.concatenate %123, %124 in 1 : vector<2x496xf32>, vector<2x16xf32> -> vector<2x512xf32>
    %cst_48 = arith.constant 0.000000e+00 : f32
    %126 = vector.shape_cast %36 : vector<1x512xi1> to vector<1x512xi1>
    %127 = vector.broadcast %126 : vector<1x512xi1> to vector<2x512xi1>
    %128 = vector.broadcast %cst_48 : f32 to vector<2x512xf32>
    %129 = arith.select %127, %125, %128 : vector<2x512xi1>, vector<2x512xf32>
    %cst_49 = arith.constant dense<0.000000e+00> : vector<32x512xf32>
    %130 = tpu.matmul %122, %129, %cst_49 {dimension_numbers = #tpu.dot_dimension_numbers<[1], [0], [0], [1], [0, 0, 1, 1], [], []>} : vector<32x2xf32>, vector<2x512xf32>, vector<32x512xf32> -> vector<32x512xf32>
    %131 = arith.addf %121, %130 : vector<32x512xf32>
    %c0_50 = arith.constant 0 : index
    %c528 = arith.constant 528 : index
    %132 = vector.load %arg3[%c0_50, %c528] : memref<32x768xf32, #tpu.memory_space<vmem>>, vector<32x2xf32>
    %133 = vector.extract_strided_slice %56 {offsets = [0, 17], sizes = [2, 495], strides = [1, 1]} : vector<2x512xf32> to vector<2x495xf32>
    %cst_51 = arith.constant 0.000000e+00 : f32
    %134 = vector.broadcast %cst_51 : f32 to vector<2x17xf32>
    %135 = tpu.concatenate %133, %134 in 1 : vector<2x495xf32>, vector<2x17xf32> -> vector<2x512xf32>
    %136 = arith.andi %36, %40 : vector<1x512xi1>
    %cst_52 = arith.constant 0.000000e+00 : f32
    %137 = vector.shape_cast %136 : vector<1x512xi1> to vector<1x512xi1>
    %138 = vector.broadcast %137 : vector<1x512xi1> to vector<2x512xi1>
    %139 = vector.broadcast %cst_52 : f32 to vector<2x512xf32>
    %140 = arith.select %138, %135, %139 : vector<2x512xi1>, vector<2x512xf32>
    %cst_53 = arith.constant dense<0.000000e+00> : vector<32x512xf32>
    %141 = tpu.matmul %132, %140, %cst_53 {dimension_numbers = #tpu.dot_dimension_numbers<[1], [0], [0], [1], [0, 0, 1, 1], [], []>} : vector<32x2xf32>, vector<2x512xf32>, vector<32x512xf32> -> vector<32x512xf32>
    %142 = arith.addf %131, %141 : vector<32x512xf32>
    %cst_54 = arith.constant 0.000000e+00 : f32
    %143 = vector.broadcast %cst_54 : f32 to vector<32x512xf32>
    %144 = arith.maximumf %142, %143 : vector<32x512xf32>
    %c0_55 = arith.constant 0 : index
    %c0_56 = arith.constant 0 : index
    %145 = vector.load %arg3[%c0_55, %c0_56] : memref<32x768xf32, #tpu.memory_space<vmem>>, vector<32x32xf32>
    %cst_57 = arith.constant 0.000000e+00 : f32
    %146 = vector.broadcast %cst_57 : f32 to vector<32x17xf32>
    %147 = vector.extract_strided_slice %144 {offsets = [0, 0], sizes = [32, 495], strides = [1, 1]} : vector<32x512xf32> to vector<32x495xf32>
    %148 = tpu.concatenate %146, %147 in 1 : vector<32x17xf32>, vector<32x495xf32> -> vector<32x512xf32>
    %149 = arith.andi %34, %38 : vector<1x512xi1>
    %cst_58 = arith.constant 0.000000e+00 : f32
    %150 = vector.shape_cast %149 : vector<1x512xi1> to vector<1x512xi1>
    %151 = vector.broadcast %150 : vector<1x512xi1> to vector<32x512xi1>
    %152 = vector.broadcast %cst_58 : f32 to vector<32x512xf32>
    %153 = arith.select %151, %148, %152 : vector<32x512xi1>, vector<32x512xf32>
    %cst_59 = arith.constant dense<0.000000e+00> : vector<32x512xf32>
    %154 = tpu.matmul %145, %153, %cst_59 {dimension_numbers = #tpu.dot_dimension_numbers<[1], [0], [0], [1], [0, 0, 1, 1], [], []>} : vector<32x32xf32>, vector<32x512xf32>, vector<32x512xf32> -> vector<32x512xf32>
    %c0_60 = arith.constant 0 : index
    %c32 = arith.constant 32 : index
    %155 = vector.load %arg3[%c0_60, %c32] : memref<32x768xf32, #tpu.memory_space<vmem>>, vector<32x32xf32>
    %cst_61 = arith.constant 0.000000e+00 : f32
    %156 = vector.broadcast %cst_61 : f32 to vector<32x16xf32>
    %157 = vector.extract_strided_slice %144 {offsets = [0, 0], sizes = [32, 496], strides = [1, 1]} : vector<32x512xf32> to vector<32x496xf32>
    %158 = tpu.concatenate %156, %157 in 1 : vector<32x16xf32>, vector<32x496xf32> -> vector<32x512xf32>
    %cst_62 = arith.constant 0.000000e+00 : f32
    %159 = vector.shape_cast %34 : vector<1x512xi1> to vector<1x512xi1>
    %160 = vector.broadcast %159 : vector<1x512xi1> to vector<32x512xi1>
    %161 = vector.broadcast %cst_62 : f32 to vector<32x512xf32>
    %162 = arith.select %160, %158, %161 : vector<32x512xi1>, vector<32x512xf32>
    %cst_63 = arith.constant dense<0.000000e+00> : vector<32x512xf32>
    %163 = tpu.matmul %155, %162, %cst_63 {dimension_numbers = #tpu.dot_dimension_numbers<[1], [0], [0], [1], [0, 0, 1, 1], [], []>} : vector<32x32xf32>, vector<32x512xf32>, vector<32x512xf32> -> vector<32x512xf32>
    %164 = arith.addf %154, %163 : vector<32x512xf32>
    %c0_64 = arith.constant 0 : index
    %c64 = arith.constant 64 : index
    %165 = vector.load %arg3[%c0_64, %c64] : memref<32x768xf32, #tpu.memory_space<vmem>>, vector<32x32xf32>
    %cst_65 = arith.constant 0.000000e+00 : f32
    %166 = vector.broadcast %cst_65 : f32 to vector<32x15xf32>
    %167 = vector.extract_strided_slice %144 {offsets = [0, 0], sizes = [32, 497], strides = [1, 1]} : vector<32x512xf32> to vector<32x497xf32>
    %168 = tpu.concatenate %166, %167 in 1 : vector<32x15xf32>, vector<32x497xf32> -> vector<32x512xf32>
    %169 = arith.andi %34, %40 : vector<1x512xi1>
    %cst_66 = arith.constant 0.000000e+00 : f32
    %170 = vector.shape_cast %169 : vector<1x512xi1> to vector<1x512xi1>
    %171 = vector.broadcast %170 : vector<1x512xi1> to vector<32x512xi1>
    %172 = vector.broadcast %cst_66 : f32 to vector<32x512xf32>
    %173 = arith.select %171, %168, %172 : vector<32x512xi1>, vector<32x512xf32>
    %cst_67 = arith.constant dense<0.000000e+00> : vector<32x512xf32>
    %174 = tpu.matmul %165, %173, %cst_67 {dimension_numbers = #tpu.dot_dimension_numbers<[1], [0], [0], [1], [0, 0, 1, 1], [], []>} : vector<32x32xf32>, vector<32x512xf32>, vector<32x512xf32> -> vector<32x512xf32>
    %175 = arith.addf %164, %174 : vector<32x512xf32>
    %c0_68 = arith.constant 0 : index
    %c96 = arith.constant 96 : index
    %176 = vector.load %arg3[%c0_68, %c96] : memref<32x768xf32, #tpu.memory_space<vmem>>, vector<32x32xf32>
    %cst_69 = arith.constant 0.000000e+00 : f32
    %177 = vector.broadcast %cst_69 : f32 to vector<32x1xf32>
    %178 = vector.extract_strided_slice %144 {offsets = [0, 0], sizes = [32, 511], strides = [1, 1]} : vector<32x512xf32> to vector<32x511xf32>
    %179 = tpu.concatenate %177, %178 in 1 : vector<32x1xf32>, vector<32x511xf32> -> vector<32x512xf32>
    %cst_70 = arith.constant 0.000000e+00 : f32
    %180 = vector.shape_cast %38 : vector<1x512xi1> to vector<1x512xi1>
    %181 = vector.broadcast %180 : vector<1x512xi1> to vector<32x512xi1>
    %182 = vector.broadcast %cst_70 : f32 to vector<32x512xf32>
    %183 = arith.select %181, %179, %182 : vector<32x512xi1>, vector<32x512xf32>
    %cst_71 = arith.constant dense<0.000000e+00> : vector<32x512xf32>
    %184 = tpu.matmul %176, %183, %cst_71 {dimension_numbers = #tpu.dot_dimension_numbers<[1], [0], [0], [1], [0, 0, 1, 1], [], []>} : vector<32x32xf32>, vector<32x512xf32>, vector<32x512xf32> -> vector<32x512xf32>
    %185 = arith.addf %175, %184 : vector<32x512xf32>
    %c0_72 = arith.constant 0 : index
    %c128 = arith.constant 128 : index
    %186 = vector.load %arg3[%c0_72, %c128] : memref<32x768xf32, #tpu.memory_space<vmem>>, vector<32x32xf32>
    %cst_73 = arith.constant dense<0.000000e+00> : vector<32x512xf32>
    %187 = tpu.matmul %186, %144, %cst_73 {dimension_numbers = #tpu.dot_dimension_numbers<[1], [0], [0], [1], [0, 0, 1, 1], [], []>} : vector<32x32xf32>, vector<32x512xf32>, vector<32x512xf32> -> vector<32x512xf32>
    %188 = arith.addf %185, %187 : vector<32x512xf32>
    %c0_74 = arith.constant 0 : index
    %c160 = arith.constant 160 : index
    %189 = vector.load %arg3[%c0_74, %c160] : memref<32x768xf32, #tpu.memory_space<vmem>>, vector<32x32xf32>
    %190 = vector.extract_strided_slice %144 {offsets = [0, 1], sizes = [32, 511], strides = [1, 1]} : vector<32x512xf32> to vector<32x511xf32>
    %cst_75 = arith.constant 0.000000e+00 : f32
    %191 = vector.broadcast %cst_75 : f32 to vector<32x1xf32>
    %192 = tpu.concatenate %190, %191 in 1 : vector<32x511xf32>, vector<32x1xf32> -> vector<32x512xf32>
    %cst_76 = arith.constant 0.000000e+00 : f32
    %193 = vector.shape_cast %40 : vector<1x512xi1> to vector<1x512xi1>
    %194 = vector.broadcast %193 : vector<1x512xi1> to vector<32x512xi1>
    %195 = vector.broadcast %cst_76 : f32 to vector<32x512xf32>
    %196 = arith.select %194, %192, %195 : vector<32x512xi1>, vector<32x512xf32>
    %cst_77 = arith.constant dense<0.000000e+00> : vector<32x512xf32>
    %197 = tpu.matmul %189, %196, %cst_77 {dimension_numbers = #tpu.dot_dimension_numbers<[1], [0], [0], [1], [0, 0, 1, 1], [], []>} : vector<32x32xf32>, vector<32x512xf32>, vector<32x512xf32> -> vector<32x512xf32>
    %198 = arith.addf %188, %197 : vector<32x512xf32>
    %c0_78 = arith.constant 0 : index
    %c192 = arith.constant 192 : index
    %199 = vector.load %arg3[%c0_78, %c192] : memref<32x768xf32, #tpu.memory_space<vmem>>, vector<32x32xf32>
    %200 = vector.extract_strided_slice %144 {offsets = [0, 15], sizes = [32, 497], strides = [1, 1]} : vector<32x512xf32> to vector<32x497xf32>
    %cst_79 = arith.constant 0.000000e+00 : f32
    %201 = vector.broadcast %cst_79 : f32 to vector<32x15xf32>
    %202 = tpu.concatenate %200, %201 in 1 : vector<32x497xf32>, vector<32x15xf32> -> vector<32x512xf32>
    %203 = arith.andi %36, %38 : vector<1x512xi1>
    %cst_80 = arith.constant 0.000000e+00 : f32
    %204 = vector.shape_cast %203 : vector<1x512xi1> to vector<1x512xi1>
    %205 = vector.broadcast %204 : vector<1x512xi1> to vector<32x512xi1>
    %206 = vector.broadcast %cst_80 : f32 to vector<32x512xf32>
    %207 = arith.select %205, %202, %206 : vector<32x512xi1>, vector<32x512xf32>
    %cst_81 = arith.constant dense<0.000000e+00> : vector<32x512xf32>
    %208 = tpu.matmul %199, %207, %cst_81 {dimension_numbers = #tpu.dot_dimension_numbers<[1], [0], [0], [1], [0, 0, 1, 1], [], []>} : vector<32x32xf32>, vector<32x512xf32>, vector<32x512xf32> -> vector<32x512xf32>
    %209 = arith.addf %198, %208 : vector<32x512xf32>
    %c0_82 = arith.constant 0 : index
    %c224 = arith.constant 224 : index
    %210 = vector.load %arg3[%c0_82, %c224] : memref<32x768xf32, #tpu.memory_space<vmem>>, vector<32x32xf32>
    %211 = vector.extract_strided_slice %144 {offsets = [0, 16], sizes = [32, 496], strides = [1, 1]} : vector<32x512xf32> to vector<32x496xf32>
    %cst_83 = arith.constant 0.000000e+00 : f32
    %212 = vector.broadcast %cst_83 : f32 to vector<32x16xf32>
    %213 = tpu.concatenate %211, %212 in 1 : vector<32x496xf32>, vector<32x16xf32> -> vector<32x512xf32>
    %cst_84 = arith.constant 0.000000e+00 : f32
    %214 = vector.shape_cast %36 : vector<1x512xi1> to vector<1x512xi1>
    %215 = vector.broadcast %214 : vector<1x512xi1> to vector<32x512xi1>
    %216 = vector.broadcast %cst_84 : f32 to vector<32x512xf32>
    %217 = arith.select %215, %213, %216 : vector<32x512xi1>, vector<32x512xf32>
    %cst_85 = arith.constant dense<0.000000e+00> : vector<32x512xf32>
    %218 = tpu.matmul %210, %217, %cst_85 {dimension_numbers = #tpu.dot_dimension_numbers<[1], [0], [0], [1], [0, 0, 1, 1], [], []>} : vector<32x32xf32>, vector<32x512xf32>, vector<32x512xf32> -> vector<32x512xf32>
    %219 = arith.addf %209, %218 : vector<32x512xf32>
    %c0_86 = arith.constant 0 : index
    %c256 = arith.constant 256 : index
    %220 = vector.load %arg3[%c0_86, %c256] : memref<32x768xf32, #tpu.memory_space<vmem>>, vector<32x32xf32>
    %221 = vector.extract_strided_slice %144 {offsets = [0, 17], sizes = [32, 495], strides = [1, 1]} : vector<32x512xf32> to vector<32x495xf32>
    %cst_87 = arith.constant 0.000000e+00 : f32
    %222 = vector.broadcast %cst_87 : f32 to vector<32x17xf32>
    %223 = tpu.concatenate %221, %222 in 1 : vector<32x495xf32>, vector<32x17xf32> -> vector<32x512xf32>
    %224 = arith.andi %36, %40 : vector<1x512xi1>
    %cst_88 = arith.constant 0.000000e+00 : f32
    %225 = vector.shape_cast %224 : vector<1x512xi1> to vector<1x512xi1>
    %226 = vector.broadcast %225 : vector<1x512xi1> to vector<32x512xi1>
    %227 = vector.broadcast %cst_88 : f32 to vector<32x512xf32>
    %228 = arith.select %226, %223, %227 : vector<32x512xi1>, vector<32x512xf32>
    %cst_89 = arith.constant dense<0.000000e+00> : vector<32x512xf32>
    %229 = tpu.matmul %220, %228, %cst_89 {dimension_numbers = #tpu.dot_dimension_numbers<[1], [0], [0], [1], [0, 0, 1, 1], [], []>} : vector<32x32xf32>, vector<32x512xf32>, vector<32x512xf32> -> vector<32x512xf32>
    %230 = arith.addf %219, %229 : vector<32x512xf32>
    %c0_90 = arith.constant 0 : index
    %c640 = arith.constant 640 : index
    %231 = vector.load %arg3[%c0_90, %c640] : memref<32x768xf32, #tpu.memory_space<vmem>>, vector<32x1xf32>
    %232 = vector.broadcast %231 : vector<32x1xf32> to vector<32x512xf32>
    %233 = arith.addf %230, %232 : vector<32x512xf32>
    %cst_91 = arith.constant 0.000000e+00 : f32
    %234 = vector.broadcast %cst_91 : f32 to vector<32x512xf32>
    %235 = arith.maximumf %233, %234 : vector<32x512xf32>
    %c0_92 = arith.constant 0 : index
    %c384 = arith.constant 384 : index
    %236 = vector.load %arg3[%c0_92, %c384] : memref<32x768xf32, #tpu.memory_space<vmem>>, vector<32x32xf32>
    %cst_93 = arith.constant dense<0.000000e+00> : vector<32x512xf32>
    %237 = tpu.matmul %236, %235, %cst_93 {dimension_numbers = #tpu.dot_dimension_numbers<[1], [0], [0], [1], [0, 0, 1, 1], [], []>} : vector<32x32xf32>, vector<32x512xf32>, vector<32x512xf32> -> vector<32x512xf32>
    %c0_94 = arith.constant 0 : index
    %c641 = arith.constant 641 : index
    %238 = vector.load %arg3[%c0_94, %c641] : memref<32x768xf32, #tpu.memory_space<vmem>>, vector<32x1xf32>
    %239 = vector.broadcast %238 : vector<32x1xf32> to vector<32x512xf32>
    %240 = arith.addf %237, %239 : vector<32x512xf32>
    %cst_95 = arith.constant 0.000000e+00 : f32
    %241 = vector.broadcast %cst_95 : f32 to vector<32x512xf32>
    %242 = arith.maximumf %240, %241 : vector<32x512xf32>
    %c0_96 = arith.constant 0 : index
    %c0_97 = arith.constant 0 : index
    %243 = vector.load %arg4[%c0_96, %c0_97] : memref<4x384xf32, #tpu.memory_space<vmem>>, vector<4x32xf32>
    %cst_98 = arith.constant 0.000000e+00 : f32
    %244 = vector.broadcast %cst_98 : f32 to vector<32x17xf32>
    %245 = vector.extract_strided_slice %242 {offsets = [0, 0], sizes = [32, 495], strides = [1, 1]} : vector<32x512xf32> to vector<32x495xf32>
    %246 = tpu.concatenate %244, %245 in 1 : vector<32x17xf32>, vector<32x495xf32> -> vector<32x512xf32>
    %247 = arith.andi %34, %38 : vector<1x512xi1>
    %cst_99 = arith.constant 0.000000e+00 : f32
    %248 = vector.shape_cast %247 : vector<1x512xi1> to vector<1x512xi1>
    %249 = vector.broadcast %248 : vector<1x512xi1> to vector<32x512xi1>
    %250 = vector.broadcast %cst_99 : f32 to vector<32x512xf32>
    %251 = arith.select %249, %246, %250 : vector<32x512xi1>, vector<32x512xf32>
    %cst_100 = arith.constant dense<0.000000e+00> : vector<4x512xf32>
    %252 = tpu.matmul %243, %251, %cst_100 {dimension_numbers = #tpu.dot_dimension_numbers<[1], [0], [0], [1], [0, 0, 1, 1], [], []>} : vector<4x32xf32>, vector<32x512xf32>, vector<4x512xf32> -> vector<4x512xf32>
    %c0_101 = arith.constant 0 : index
    %c32_102 = arith.constant 32 : index
    %253 = vector.load %arg4[%c0_101, %c32_102] : memref<4x384xf32, #tpu.memory_space<vmem>>, vector<4x32xf32>
    %cst_103 = arith.constant 0.000000e+00 : f32
    %254 = vector.broadcast %cst_103 : f32 to vector<32x16xf32>
    %255 = vector.extract_strided_slice %242 {offsets = [0, 0], sizes = [32, 496], strides = [1, 1]} : vector<32x512xf32> to vector<32x496xf32>
    %256 = tpu.concatenate %254, %255 in 1 : vector<32x16xf32>, vector<32x496xf32> -> vector<32x512xf32>
    %cst_104 = arith.constant 0.000000e+00 : f32
    %257 = vector.shape_cast %34 : vector<1x512xi1> to vector<1x512xi1>
    %258 = vector.broadcast %257 : vector<1x512xi1> to vector<32x512xi1>
    %259 = vector.broadcast %cst_104 : f32 to vector<32x512xf32>
    %260 = arith.select %258, %256, %259 : vector<32x512xi1>, vector<32x512xf32>
    %cst_105 = arith.constant dense<0.000000e+00> : vector<4x512xf32>
    %261 = tpu.matmul %253, %260, %cst_105 {dimension_numbers = #tpu.dot_dimension_numbers<[1], [0], [0], [1], [0, 0, 1, 1], [], []>} : vector<4x32xf32>, vector<32x512xf32>, vector<4x512xf32> -> vector<4x512xf32>
    %262 = arith.addf %252, %261 : vector<4x512xf32>
    %c0_106 = arith.constant 0 : index
    %c64_107 = arith.constant 64 : index
    %263 = vector.load %arg4[%c0_106, %c64_107] : memref<4x384xf32, #tpu.memory_space<vmem>>, vector<4x32xf32>
    %cst_108 = arith.constant 0.000000e+00 : f32
    %264 = vector.broadcast %cst_108 : f32 to vector<32x15xf32>
    %265 = vector.extract_strided_slice %242 {offsets = [0, 0], sizes = [32, 497], strides = [1, 1]} : vector<32x512xf32> to vector<32x497xf32>
    %266 = tpu.concatenate %264, %265 in 1 : vector<32x15xf32>, vector<32x497xf32> -> vector<32x512xf32>
    %267 = arith.andi %34, %40 : vector<1x512xi1>
    %cst_109 = arith.constant 0.000000e+00 : f32
    %268 = vector.shape_cast %267 : vector<1x512xi1> to vector<1x512xi1>
    %269 = vector.broadcast %268 : vector<1x512xi1> to vector<32x512xi1>
    %270 = vector.broadcast %cst_109 : f32 to vector<32x512xf32>
    %271 = arith.select %269, %266, %270 : vector<32x512xi1>, vector<32x512xf32>
    %cst_110 = arith.constant dense<0.000000e+00> : vector<4x512xf32>
    %272 = tpu.matmul %263, %271, %cst_110 {dimension_numbers = #tpu.dot_dimension_numbers<[1], [0], [0], [1], [0, 0, 1, 1], [], []>} : vector<4x32xf32>, vector<32x512xf32>, vector<4x512xf32> -> vector<4x512xf32>
    %273 = arith.addf %262, %272 : vector<4x512xf32>
    %c0_111 = arith.constant 0 : index
    %c96_112 = arith.constant 96 : index
    %274 = vector.load %arg4[%c0_111, %c96_112] : memref<4x384xf32, #tpu.memory_space<vmem>>, vector<4x32xf32>
    %cst_113 = arith.constant 0.000000e+00 : f32
    %275 = vector.broadcast %cst_113 : f32 to vector<32x1xf32>
    %276 = vector.extract_strided_slice %242 {offsets = [0, 0], sizes = [32, 511], strides = [1, 1]} : vector<32x512xf32> to vector<32x511xf32>
    %277 = tpu.concatenate %275, %276 in 1 : vector<32x1xf32>, vector<32x511xf32> -> vector<32x512xf32>
    %cst_114 = arith.constant 0.000000e+00 : f32
    %278 = vector.shape_cast %38 : vector<1x512xi1> to vector<1x512xi1>
    %279 = vector.broadcast %278 : vector<1x512xi1> to vector<32x512xi1>
    %280 = vector.broadcast %cst_114 : f32 to vector<32x512xf32>
    %281 = arith.select %279, %277, %280 : vector<32x512xi1>, vector<32x512xf32>
    %cst_115 = arith.constant dense<0.000000e+00> : vector<4x512xf32>
    %282 = tpu.matmul %274, %281, %cst_115 {dimension_numbers = #tpu.dot_dimension_numbers<[1], [0], [0], [1], [0, 0, 1, 1], [], []>} : vector<4x32xf32>, vector<32x512xf32>, vector<4x512xf32> -> vector<4x512xf32>
    %283 = arith.addf %273, %282 : vector<4x512xf32>
    %c0_116 = arith.constant 0 : index
    %c128_117 = arith.constant 128 : index
    %284 = vector.load %arg4[%c0_116, %c128_117] : memref<4x384xf32, #tpu.memory_space<vmem>>, vector<4x32xf32>
    %cst_118 = arith.constant dense<0.000000e+00> : vector<4x512xf32>
    %285 = tpu.matmul %284, %242, %cst_118 {dimension_numbers = #tpu.dot_dimension_numbers<[1], [0], [0], [1], [0, 0, 1, 1], [], []>} : vector<4x32xf32>, vector<32x512xf32>, vector<4x512xf32> -> vector<4x512xf32>
    %286 = arith.addf %283, %285 : vector<4x512xf32>
    %c0_119 = arith.constant 0 : index
    %c160_120 = arith.constant 160 : index
    %287 = vector.load %arg4[%c0_119, %c160_120] : memref<4x384xf32, #tpu.memory_space<vmem>>, vector<4x32xf32>
    %288 = vector.extract_strided_slice %242 {offsets = [0, 1], sizes = [32, 511], strides = [1, 1]} : vector<32x512xf32> to vector<32x511xf32>
    %cst_121 = arith.constant 0.000000e+00 : f32
    %289 = vector.broadcast %cst_121 : f32 to vector<32x1xf32>
    %290 = tpu.concatenate %288, %289 in 1 : vector<32x511xf32>, vector<32x1xf32> -> vector<32x512xf32>
    %cst_122 = arith.constant 0.000000e+00 : f32
    %291 = vector.shape_cast %40 : vector<1x512xi1> to vector<1x512xi1>
    %292 = vector.broadcast %291 : vector<1x512xi1> to vector<32x512xi1>
    %293 = vector.broadcast %cst_122 : f32 to vector<32x512xf32>
    %294 = arith.select %292, %290, %293 : vector<32x512xi1>, vector<32x512xf32>
    %cst_123 = arith.constant dense<0.000000e+00> : vector<4x512xf32>
    %295 = tpu.matmul %287, %294, %cst_123 {dimension_numbers = #tpu.dot_dimension_numbers<[1], [0], [0], [1], [0, 0, 1, 1], [], []>} : vector<4x32xf32>, vector<32x512xf32>, vector<4x512xf32> -> vector<4x512xf32>
    %296 = arith.addf %286, %295 : vector<4x512xf32>
    %c0_124 = arith.constant 0 : index
    %c192_125 = arith.constant 192 : index
    %297 = vector.load %arg4[%c0_124, %c192_125] : memref<4x384xf32, #tpu.memory_space<vmem>>, vector<4x32xf32>
    %298 = vector.extract_strided_slice %242 {offsets = [0, 15], sizes = [32, 497], strides = [1, 1]} : vector<32x512xf32> to vector<32x497xf32>
    %cst_126 = arith.constant 0.000000e+00 : f32
    %299 = vector.broadcast %cst_126 : f32 to vector<32x15xf32>
    %300 = tpu.concatenate %298, %299 in 1 : vector<32x497xf32>, vector<32x15xf32> -> vector<32x512xf32>
    %301 = arith.andi %36, %38 : vector<1x512xi1>
    %cst_127 = arith.constant 0.000000e+00 : f32
    %302 = vector.shape_cast %301 : vector<1x512xi1> to vector<1x512xi1>
    %303 = vector.broadcast %302 : vector<1x512xi1> to vector<32x512xi1>
    %304 = vector.broadcast %cst_127 : f32 to vector<32x512xf32>
    %305 = arith.select %303, %300, %304 : vector<32x512xi1>, vector<32x512xf32>
    %cst_128 = arith.constant dense<0.000000e+00> : vector<4x512xf32>
    %306 = tpu.matmul %297, %305, %cst_128 {dimension_numbers = #tpu.dot_dimension_numbers<[1], [0], [0], [1], [0, 0, 1, 1], [], []>} : vector<4x32xf32>, vector<32x512xf32>, vector<4x512xf32> -> vector<4x512xf32>
    %307 = arith.addf %296, %306 : vector<4x512xf32>
    %c0_129 = arith.constant 0 : index
    %c224_130 = arith.constant 224 : index
    %308 = vector.load %arg4[%c0_129, %c224_130] : memref<4x384xf32, #tpu.memory_space<vmem>>, vector<4x32xf32>
    %309 = vector.extract_strided_slice %242 {offsets = [0, 16], sizes = [32, 496], strides = [1, 1]} : vector<32x512xf32> to vector<32x496xf32>
    %cst_131 = arith.constant 0.000000e+00 : f32
    %310 = vector.broadcast %cst_131 : f32 to vector<32x16xf32>
    %311 = tpu.concatenate %309, %310 in 1 : vector<32x496xf32>, vector<32x16xf32> -> vector<32x512xf32>
    %cst_132 = arith.constant 0.000000e+00 : f32
    %312 = vector.shape_cast %36 : vector<1x512xi1> to vector<1x512xi1>
    %313 = vector.broadcast %312 : vector<1x512xi1> to vector<32x512xi1>
    %314 = vector.broadcast %cst_132 : f32 to vector<32x512xf32>
    %315 = arith.select %313, %311, %314 : vector<32x512xi1>, vector<32x512xf32>
    %cst_133 = arith.constant dense<0.000000e+00> : vector<4x512xf32>
    %316 = tpu.matmul %308, %315, %cst_133 {dimension_numbers = #tpu.dot_dimension_numbers<[1], [0], [0], [1], [0, 0, 1, 1], [], []>} : vector<4x32xf32>, vector<32x512xf32>, vector<4x512xf32> -> vector<4x512xf32>
    %317 = arith.addf %307, %316 : vector<4x512xf32>
    %c0_134 = arith.constant 0 : index
    %c256_135 = arith.constant 256 : index
    %318 = vector.load %arg4[%c0_134, %c256_135] : memref<4x384xf32, #tpu.memory_space<vmem>>, vector<4x32xf32>
    %319 = vector.extract_strided_slice %242 {offsets = [0, 17], sizes = [32, 495], strides = [1, 1]} : vector<32x512xf32> to vector<32x495xf32>
    %cst_136 = arith.constant 0.000000e+00 : f32
    %320 = vector.broadcast %cst_136 : f32 to vector<32x17xf32>
    %321 = tpu.concatenate %319, %320 in 1 : vector<32x495xf32>, vector<32x17xf32> -> vector<32x512xf32>
    %322 = arith.andi %36, %40 : vector<1x512xi1>
    %cst_137 = arith.constant 0.000000e+00 : f32
    %323 = vector.shape_cast %322 : vector<1x512xi1> to vector<1x512xi1>
    %324 = vector.broadcast %323 : vector<1x512xi1> to vector<32x512xi1>
    %325 = vector.broadcast %cst_137 : f32 to vector<32x512xf32>
    %326 = arith.select %324, %321, %325 : vector<32x512xi1>, vector<32x512xf32>
    %cst_138 = arith.constant dense<0.000000e+00> : vector<4x512xf32>
    %327 = tpu.matmul %318, %326, %cst_138 {dimension_numbers = #tpu.dot_dimension_numbers<[1], [0], [0], [1], [0, 0, 1, 1], [], []>} : vector<4x32xf32>, vector<32x512xf32>, vector<4x512xf32> -> vector<4x512xf32>
    %328 = arith.addf %317, %327 : vector<4x512xf32>
    %c0_139 = arith.constant 0 : index
    %c288 = arith.constant 288 : index
    %329 = vector.load %arg4[%c0_139, %c288] : memref<4x384xf32, #tpu.memory_space<vmem>>, vector<4x1xf32>
    %330 = vector.broadcast %329 : vector<4x1xf32> to vector<4x512xf32>
    %331 = arith.addf %328, %330 : vector<4x512xf32>
    %c0_140 = arith.constant 0 : index
    %c289 = arith.constant 289 : index
    %332 = vector.load %arg4[%c0_140, %c289] : memref<4x384xf32, #tpu.memory_space<vmem>>, vector<2x1xf32>
    %333 = vector.extract_strided_slice %331 {offsets = [0, 0], sizes = [2, 512], strides = [1, 1]} : vector<4x512xf32> to vector<2x512xf32>
    %334 = math.tanh %333 : vector<2x512xf32>
    %335 = vector.broadcast %332 : vector<2x1xf32> to vector<2x512xf32>
    %336 = arith.mulf %335, %334 : vector<2x512xf32>
    %337 = vector.extract_strided_slice %331 {offsets = [2, 0], sizes = [2, 512], strides = [1, 1]} : vector<4x512xf32> to vector<2x512xf32>
    %c0_141 = arith.constant 0 : index
    %c0_142 = arith.constant 0 : index
    %c0_143 = arith.constant 0 : index
    %338 = vector.load %arg5[%c0_141, %c0_142, %c0_143] : memref<1x4x512xf32, #tpu.memory_space<vmem>>, vector<1x2x512xf32>
    %339 = vector.shape_cast %338 : vector<1x2x512xf32> to vector<2x512xf32>
    %340 = arith.addf %339, %337 : vector<2x512xf32>
    %341 = math.exp %336 : vector<2x512xf32>
    %342 = arith.mulf %340, %341 : vector<2x512xf32>
    %c0_144 = arith.constant 0 : index
    %c0_145 = arith.constant 0 : index
    %c0_146 = arith.constant 0 : index
    %343 = vector.load %arg5[%c0_144, %c0_145, %c0_146] : memref<1x4x512xf32, #tpu.memory_space<vmem>>, vector<1x2x512xf32>
    %344 = vector.shape_cast %343 : vector<1x2x512xf32> to vector<2x512xf32>
    %345 = vector.shape_cast %342 : vector<2x512xf32> to vector<1x2x512xf32>
    tpu.vector_store %arg5[%c0_144, %c0_145, %c0_146], %345 {strides = array<i32>} : memref<1x4x512xf32, #tpu.memory_space<vmem>>, vector<1x2x512xf32>,
    %346 = vector.extract_strided_slice %336 {offsets = [0, 0], sizes = [2, 256], strides = [1, 1]} : vector<2x512xf32> to vector<2x256xf32>
    %cst_147 = arith.constant dense<0.000000e+00> : vector<2xf32>
    %347 = vector.multi_reduction <add>, %346, %cst_147 [1] : vector<2x256xf32> to vector<2xf32>
    %348 = vector.shape_cast %347 : vector<2xf32> to vector<2x1xf32>
    %cst_148 = arith.constant dense<0.000000e+00> : vector<1xf32>
    %349 = vector.multi_reduction <add>, %348, %cst_148 [0] : vector<2x1xf32> to vector<1xf32>
    %350 = vector.shape_cast %349 : vector<1xf32> to vector<1x1xf32>
    %c0_149 = arith.constant 0 : index
    %c0_150 = arith.constant 0 : index
    %c0_151 = arith.constant 0 : index
    %351 = vector.load %arg6[%c0_149, %c0_150, %c0_151] : memref<1x2x1xf32, #tpu.memory_space<vmem>>, vector<1x1x1xf32>
    %352 = vector.shape_cast %351 : vector<1x1x1xf32> to vector<1x1xf32>
    %353 = vector.shape_cast %350 : vector<1x1xf32> to vector<1x1x1xf32>
    tpu.vector_store %arg6[%c0_149, %c0_150, %c0_151], %353 {strides = array<i32>} : memref<1x2x1xf32, #tpu.memory_space<vmem>>, vector<1x1x1xf32>,
    %354 = vector.extract_strided_slice %336 {offsets = [0, 256], sizes = [2, 256], strides = [1, 1]} : vector<2x512xf32> to vector<2x256xf32>
    %cst_152 = arith.constant dense<0.000000e+00> : vector<2xf32>
    %355 = vector.multi_reduction <add>, %354, %cst_152 [1] : vector<2x256xf32> to vector<2xf32>
    %356 = vector.shape_cast %355 : vector<2xf32> to vector<2x1xf32>
    %cst_153 = arith.constant dense<0.000000e+00> : vector<1xf32>
    %357 = vector.multi_reduction <add>, %356, %cst_153 [0] : vector<2x1xf32> to vector<1xf32>
    %358 = vector.shape_cast %357 : vector<1xf32> to vector<1x1xf32>
    %c0_154 = arith.constant 0 : index
    %c1 = arith.constant 1 : index
    %c0_155 = arith.constant 0 : index
    %359 = vector.load %arg6[%c0_154, %c1, %c0_155] : memref<1x2x1xf32, #tpu.memory_space<vmem>>, vector<1x1x1xf32>
    %360 = vector.shape_cast %359 : vector<1x1x1xf32> to vector<1x1xf32>
    %361 = vector.shape_cast %358 : vector<1x1xf32> to vector<1x1x1xf32>
    tpu.vector_store %arg6[%c0_154, %c1, %c0_155], %361 {strides = array<i32>} : memref<1x2x1xf32, #tpu.memory_space<vmem>>, vector<1x1x1xf32>,
    return
  }
  func.func @transform_0(%arg0: i32) -> (i32, i32, i32) {
    %c0_i32 = arith.constant 0 : i32
    %c0_i32_0 = arith.constant 0 : i32
    %c0_i32_1 = arith.constant 0 : i32
    return %arg0, %c0_i32, %c0_i32_0 : i32, i32, i32
  }
  func.func @transform_1(%arg0: i32) -> (i32, i32) {
    %c0_i32 = arith.constant 0 : i32
    %c0_i32_0 = arith.constant 0 : i32
    %c0_i32_1 = arith.constant 0 : i32
    return %c0_i32, %c0_i32_0 : i32, i32
  }
  func.func @transform_2(%arg0: i32) -> (i32, i32) {
    %c0_i32 = arith.constant 0 : i32
    %c0_i32_0 = arith.constant 0 : i32
    %c0_i32_1 = arith.constant 0 : i32
    return %c0_i32, %c0_i32_0 : i32, i32
  }
  func.func @transform_3(%arg0: i32) -> (i32, i32) {
    %c0_i32 = arith.constant 0 : i32
    %c0_i32_0 = arith.constant 0 : i32
    %c0_i32_1 = arith.constant 0 : i32
    return %c0_i32, %c0_i32_0 : i32, i32
  }
  func.func @transform_4(%arg0: i32) -> (i32, i32, i32) {
    %c0_i32 = arith.constant 0 : i32
    %c0_i32_0 = arith.constant 0 : i32
    %c0_i32_1 = arith.constant 0 : i32
    return %arg0, %c0_i32, %c0_i32_0 : i32, i32, i32
  }
  func.func @transform_5(%arg0: i32) -> (i32, i32, i32) {
    %c0_i32 = arith.constant 0 : i32
    %c0_i32_0 = arith.constant 0 : i32
    %c0_i32_1 = arith.constant 0 : i32
    return %arg0, %c0_i32, %c0_i32_0 : i32, i32, i32
  }
}

</mosaic_0001>

<bundles_post_ra>
// kernel: tile.8
= control target key start
LH: loop header
LB: loop body
LE: loop exit
PB: predicated region body
PF: predicated region fallthrough
CT: control target
= control target key end

     0   :  { %s28_s0 = inlined_call_operand.vmem [shape: f32[2], index: 0, kind: input, shape index: {}]   ;;  %s29_s1 = inlined_call_operand.vmem [shape: f32[9,2], index: 1, kind: output, shape index: {}]  }
   0x1   :  { %v4_v0 = vld [vmem:[%s28_s0] ss:$0 sm:$0xff] }
   0x2   :  { %5 = vst [vmem:[%s29_s1] sm:$0xff] %v4_v0  ;;  %8 = vst [vmem:[%s29_s1 + $0x8] sm:$0xff] %v4_v0 }

// kernel: mul.24
= control target key start
LH: loop header
LB: loop body
LE: loop exit
PB: predicated region body
PF: predicated region fallthrough
CT: control target
= control target key end

     0   :  { %s75_s10 = smov 16   ;;  %s76_s11 = smov 12   ;;  %vm3_vm0 = vcmask 15360   ;;  %vm9_vm1 = vcmask 146560   ;;  %vm15_vm2 = vcmask 130160   ;;  %vm21_vm3 = vcmask 113760   ;;  %s123_s0 = inlined_call_operand.vmem [shape: f32[9,2], index: 0, kind: input, shape index: {}]   ;;  %s124_s1 = inlined_call_operand.vmem [shape: f32[18], index: 1, kind: output, shape index: {}]  }
   0x1   :  { %v59_v0 = vld [vmem:[%s123_s0 + $0x8] sm:$0x1]   ;;  %v61_v1 = vld [vmem:[%s123_s0 + $0x6] sm:$0x1]   ;;  %v60_v2 = vld [vmem:[%s123_s0 + $0x7] sm:$0x1]  }
   0x2   :  { %7 = vrot.lane.b32.xlu0 %v59_v0, %s75_s10  ;;  %19 = vrot.lane.b32.xlu1 %v61_v1, %s76_s11  ;;  %v62_v3 = vld [vmem:[%s123_s0 + $0x5] sm:$0x1]   ;;  %v2_v4 = vld [vmem:[%s123_s0] sm:$0x1]   ;;  %s77_s18 = smov 14   ;;  %s78_s19 = smov 10  }
   0x3   :  { %4 = vst.msk [vmem:[#allocation0] sm:$0x1] %vm3_vm0, %v2_v4   ;;  %v63_v5 = vld [vmem:[%s123_s0 + $0x4] sm:$0x1]   ;;  %v64_v6 = vld [vmem:[%s123_s0 + $0x3] sm:$0x1]  }
   0x4   :  { %s79_s24 = smov 8   ;;  %s80_s25 = smov 6   ;;  %v65_v7 = vld [vmem:[%s123_s0 + $0x2] sm:$0x1]   ;;  %v66_v8 = vld [vmem:[%s123_s0 + $0x1] sm:$0x1]  }
   0x5   :  { %s81_s0 = smov 4   ;;  %s82_s30 = smov 2   ;;  %vm27_vm4 = vcmask 97360   ;;  %vm33_vm5 = vcmask 80960   ;;  %vm39_vm6 = vcmask 64560   ;;  %vm45_vm7 = vcmask 48160  }
   0x6   :  { %13 = vrot.lane.b32.xlu0 %v60_v2, %s77_s18  ;;  %25 = vrot.lane.b32.xlu1 %v62_v3, %s78_s19  ;;  %vm51_vm8 = vcmask 31760  }
   0xa   :  { %31 = vrot.lane.b32.xlu0 %v63_v5, %s79_s24  ;;  %37 = vrot.lane.b32.xlu1 %v64_v6, %s80_s25 }
   0xe   :  { %43 = vrot.lane.b32.xlu0 %v65_v7, %s81_s0  ;;  %49 = vrot.lane.b32.xlu1 %v66_v8, %s82_s30 }
  0x74   :  { %v8_v9 = vpop.permute.xlu0 %7   ;;  %v20_v10 = vpop.permute.xlu1 %19  }
  0x75   :  { %10 = vst.msk [vmem:[#allocation0] sm:$0x1] %vm9_vm1, %v8_v9  }
  0x78   :  { %v14_v11 = vpop.permute.xlu0 %13   ;;  %v26_v12 = vpop.permute.xlu1 %25  }
  0x79   :  { %16 = vst.msk [vmem:[#allocation0] sm:$0x1] %vm15_vm2, %v14_v11  }
  0x7a   :  { %22 = vst.msk [vmem:[#allocation0] sm:$0x1] %vm21_vm3, %v20_v10  }
  0x7b   :  { %28 = vst.msk [vmem:[#allocation0] sm:$0x1] %vm27_vm4, %v26_v12  }
  0x7c   :  { %v32_v13 = vpop.permute.xlu0 %31   ;;  %v38_v14 = vpop.permute.xlu1 %37  }
  0x7d   :  { %34 = vst.msk [vmem:[#allocation0] sm:$0x1] %vm33_vm5, %v32_v13  }
  0x7e   :  { %40 = vst.msk [vmem:[#allocation0] sm:$0x1] %vm39_vm6, %v38_v14  }
  0x80   :  { %v44_v15 = vpop.permute.xlu0 %43   ;;  %v50_v16 = vpop.permute.xlu1 %49  }
  0x81   :  { %46 = vst.msk [vmem:[#allocation0] sm:$0x1] %vm45_vm7, %v44_v15  }
  0x82   :  { %52 = vst.msk [vmem:[#allocation0] sm:$0x1] %vm51_vm8, %v50_v16  }
  0x89   :  { %v56_v17 = vld [vmem:[#allocation0] sm:$0x1] }
  0x8a   :  { %58 = vst [vmem:[%s124_s1] sm:$0x1] %v56_v17 }

// kernel: custom-call.2
= control target key start
LH: loop header
LB: loop body
LE: loop exit
PB: predicated region body
PF: predicated region fallthrough
CT: control target
= control target key end

     0   :  { %5 = vsyncpa [#allocation6], 0  ;;  %s562_s0 = inlined_call_operand.vmem [shape: f32[4,4], index: 0, kind: input, shape index: {}]   ;;  %s563_s1 = inlined_call_operand.vmem [shape: f32[4,4], index: 1, kind: output, shape index: {0}]   ;;  %s564_s2 = inlined_call_operand.hbm [shape: s32[4], index: 2, kind: output, shape index: {1}]   ;;  %s565_s3 = inlined_call_operand.hbm [shape: s32[4], index: 3, kind: output, shape index: {2}]  }
   0x1   :  { %6 = vsyncpa [#allocation9], 0  ;;  %v67_v0 = vld [vmem:[%s562_s0] sm:$0xf]  ;;  %v76_v1 = vlaneseq  ;;  %v473_v2 = vmov 0   ;;  %s503_s14 = smov 0  }
   0x2   :  { %68 = vst [vmem:[#allocation1] sm:$0xf] %v67_v0  ;;  %75 = vst [vmem:[#allocation4] sm:$0x1] %v473_v2 }
   0x3   :  { %v500_v3 = vshrl.u32 %v76_v1, 7 }
   0x5   :  { %80 = vst [vmem:[#allocation10] sm:$0xff] %v500_v3 }
   0x9   :  { %v71_v4 = vld [vmem:[#allocation1] sm:$0xf] }
   0xa   :  { %72 = vst [vmem:[#allocation0] sm:$0xf] %v71_v4 }
  0x11   :  { %v73_v5 = vld [vmem:[#allocation0] sm:$0xff] }
  0x12   :  { %74 = vst [vmem:[#allocation2] sm:$0xff] %v73_v5 }
  0x13 LB: > { %vm96_vm0 = vcmp.lt.s32.totalorder %v500_v3, 4  ;;  %v510_v8 = vstv %s471_s14  ;;  %s137_s0 = ssub.s32 128, %s471_s14  ;;  %v143_v38 = vand.u32 127, %v76_v1  ;;  %v146_v40 = vld [vmem:[#allocation4] ss:$0 sm:$0xff]  ;;  %s149_s15 = scalar_lea.vmem [#allocation2], %s471_s14  ;;  %s471_s14 = sphi %s503_s14, %s86_s14  }
  0x14   : > { %vm95_vm1 = vcmp.ge.s32.totalorder %v500_v3, %v510_v8  ;;  %s155_s17 = scalar_lea.vmem [#allocation10], %s471_s14  ;;  %vm175_vm15 = vcmp.gt.s32.totalorder %v500_v3, %v510_v8  ;;  %s86_s14 = sadd.s32 1, %s471_s14  }
  0x15   : > { %vm97_vm3 = vmand %vm95_vm1, %vm96_vm0  ;;  %vm167_vm12 = vcmp.gt.s32.totalorder %v143_v38, %v510_v8  ;;  %vm144_vm13 = vcmp.eq.s32.totalorder %v143_v38, %v510_v8  ;;  %v157_v42 = vld [vmem:[%s155_s17] ss:$0 sm:$0xff]  ;;  %p83_p0 = scmp.ge.s32.totalorder %s86_s14, 4  }
  0x16   : > { %vm179_vm1 = vmand %vm175_vm15, %vm144_vm13  ;;  %s474_s20 = smov (%p83_p0), [#allocation5]  }
  0x17   :  { %s320_s21 = sshll.u32 (%p83_p0), %s474_s20, 4  ;;  %s321_s21 = int_to_ptr.vmem [resolvable:$true] %s320_s21 }
  0x18   :  { %s417_s22 = scalar_lea.vmem (%p83_p0), %s321_s21, 16  ;;  %s421_s23 = scalar_lea.vmem (%p83_p0), %s321_s21, 32 }
  0x19   : > { %v91_v6 = vld [vmem:[#allocation2] sm:$0xff]  ;;  %v151_v41 = vld [vmem:[%s149_s15] ss:$0 sm:$0xff]  ;;  %p418_p1 = scmp.ne.s32.totalorder (%p83_p0), %s321_s21, %s417_s22  ;;  %p422_p2 = scmp.lt.s32.totalorder (%p83_p0), %s321_s21, %s321_s21 }
  0x1a   : > { %v92_v7 = vand.u32 2147483647, %v91_v6  ;;  %p423_p3 = scmp.lt.s32.totalorder (%p83_p0), %s421_s23, %s417_s22 }
  0x1c   : > { %vm398_vm2 = vcmp.gt.f32.partialorder %v92_v7, -inf  ;;  %p424_p4 = por (%p83_p0), %p423_p3, %p422_p2 }
  0x1d   : > { %vm99_vm4 = vmand %vm97_vm3, %vm398_vm2 }
  0x1e   : > { %v100_v9 = vsel %vm99_vm4, %v500_v3, %v510_v8  ;;  %v101_v10 = vsel %vm99_vm4, %v92_v7, -inf  ;;  %p425_p5 = pnand (%p83_p0), %p424_p4, %p418_p1 }
  0x1f   : > { %v102_v11 = vrot.slane %v101_v10, 1  ;;  %v103_v12 = vrot.slane %v100_v9, 1 }
  0x21   : > { %vm104_vm5 = vcmp.ge.f32.partialorder %v102_v11, %v101_v10  ;;  %v107_v13 = vrot.slane %v102_v11, 1  ;;  %v108_v14 = vrot.slane %v103_v12, 1 }
  0x22   : > { %v105_v15 = vsel %vm104_vm5, %v102_v11, %v101_v10  ;;  %v106_v16 = vsel %vm104_vm5, %v103_v12, %v100_v9 }
  0x23   : > { %vm109_vm6 = vcmp.ge.f32.partialorder %v107_v13, %v105_v15  ;;  %v112_v17 = vrot.slane %v107_v13, 1  ;;  %v113_v18 = vrot.slane %v108_v14, 1 }
  0x24   : > { %v110_v19 = vsel %vm109_vm6, %v107_v13, %v105_v15  ;;  %v111_v20 = vsel %vm109_vm6, %v108_v14, %v106_v16 }
  0x25   : > { %vm114_vm7 = vcmp.ge.f32.partialorder %v112_v17, %v110_v19  ;;  %v117_v21 = vrot.slane %v112_v17, 1  ;;  %v118_v22 = vrot.slane %v113_v18, 1 }
  0x26   : > { %v115_v23 = vsel %vm114_vm7, %v112_v17, %v110_v19  ;;  %v116_v24 = vsel %vm114_vm7, %v113_v18, %v111_v20 }
  0x27   : > { %vm119_vm8 = vcmp.ge.f32.partialorder %v117_v21, %v115_v23  ;;  %v122_v25 = vrot.slane %v117_v21, 1  ;;  %v123_v26 = vrot.slane %v118_v22, 1 }
  0x28   : > { %v120_v27 = vsel %vm119_vm8, %v117_v21, %v115_v23  ;;  %v121_v28 = vsel %vm119_vm8, %v118_v22, %v116_v24 }
  0x29   : > { %vm124_vm9 = vcmp.ge.f32.partialorder %v122_v25, %v120_v27  ;;  %v127_v29 = vrot.slane %v122_v25, 1  ;;  %v128_v30 = vrot.slane %v123_v26, 1 }
  0x2a   : > { %v125_v31 = vsel %vm124_vm9, %v122_v25, %v120_v27  ;;  %v126_v32 = vsel %vm124_vm9, %v123_v26, %v121_v28 }
  0x2b   : > { %vm129_vm10 = vcmp.ge.f32.partialorder %v127_v29, %v125_v31  ;;  %v132_v33 = vrot.slane %v127_v29, 1  ;;  %v133_v34 = vrot.slane %v128_v30, 1 }
  0x2c   : > { %v130_v35 = vsel %vm129_vm10, %v127_v29, %v125_v31  ;;  %v131_v36 = vsel %vm129_vm10, %v128_v30, %v126_v32 }
  0x2d   : > { %vm134_vm11 = vcmp.ge.f32.partialorder %v132_v33, %v130_v35 }
  0x2e   : > { %v136_v37 = vsel %vm134_vm11, %v133_v34, %v131_v36 }
  0x2f   : > { %138 = vrot.lane.b32.xlu0 %v136_v37, %s137_s0 }
  0xa1   : > { %v139_v39 = vpop.permute.xlu0 %138 }
  0xa2   : > { %402 = vpush %v139_v39 }
  0xd3   : > { %s403_s16 = spop %402 }
  0xd4   : > { %v145_v43 = vstv %s403_s16  ;;  %s150_s18 = scalar_lea.vmem [#allocation2], %s403_s16  ;;  %s156_s19 = scalar_lea.vmem [#allocation10], %s403_s16 }
  0xd5   : > { %v152_v44 = vld [vmem:[%s150_s18] ss:$0 sm:$0xff]  ;;  %v147_v46 = vsel %vm144_vm13, %v145_v43, %v146_v40 }
  0xd6   : > { %v158_v45 = vld [vmem:[%s156_s19] ss:$0 sm:$0xff]  ;;  %153 = vst [vmem:[%s150_s18] sm:$0x1] %v151_v41  ;;  %vm161_vm14 = vcmp.ne.f32.partialorder %v152_v44, 0.0  ;;  %148 = vst [vmem:[#allocation4] sm:$0x1] %v147_v46 }
  0xd7   : > { %159 = vst [vmem:[%s156_s19] sm:$0x1] %v157_v42  ;;  %154 = vst [vmem:[%s149_s15] sm:$0x1] %v152_v44  ;;  %v168_v53 = vsel %vm167_vm12, %v152_v44, 0.0 }
  0xd8   : > { %160 = vst [vmem:[%s155_s17] sm:$0x1] %v158_v45  ;;  %vm162_vm0 = vmand %vm144_vm13, %vm161_vm14 }
  0xd9   : > { %v163_v47 = vsel %vm162_vm0, %v152_v44, 1.0 }
  0xda   : > { %v176_v48 = vsel %vm175_vm15, %v163_v47, 1.0 }
  0xdb   : > { %415 = vrcp.f32 %v176_v48 }
  0xdd   :  { %v244_v59 = vld [vmem:[#allocation4] sm:$0x1] (%p83_p0) }
  0xde   : > { %v172_v50 = vld [vmem:[#allocation2] sm:$0xff]  ;;  %246 = vst [vmem:[#allocation5] sm:$0x1] (%p83_p0), %v244_v59 }
  0xdf   :  { %v186_v57 = vld [vmem:[#allocation10] sm:$0xff] (%p83_p0) }
  0xe5   : > { %v416_v49 = vpop.eup %415 }
  0xe6   : > { %v178_v51 = vmul.f32 %v416_v49, %v172_v50 }
  0xe8   : > { %v180_v52 = vsel %vm179_vm1, %v178_v51, 0.0 }
  0xe9   : > { %181 = vadd.xlane.f32.xlu0 %v180_v52 }
 0x116   :  { %202 = vxpose.xlu0.b32.start.end [1/1] (short) (narrow) (%p83_p0), %v186_v57, 8 }
 0x175   :  { %85 = sbr.rel (!%p83_p0) target bundleno = 19 (0x13), region = 134 }
 0x176   : > { %v182_v54 = vpop.xlane.xlu0 %181 }
 0x177   : > { %v183_v55 = vmul.f32 %v182_v54, %v168_v53 }
 0x179   : > { %v184_v56 = vsub.f32 %v178_v51, %v183_v55 }
 0x17b   : > { %185 = vst [vmem:[#allocation2] sm:$0xff] %v184_v56 }
 0x182   :  { %v238_v58 = vld [vmem:[#allocation2] sm:$0xf] }
 0x183   :  { %240 = vst [vmem:[#allocation3] sm:$0xf] %v238_v58 }
 0x184   :  { %428 = shalt.err (!%p425_p5)
}
 0x185   :  { %s429_s26 = scalar_lea.hbm %s564_s2, 16 }
 0x186   :  { %p430_p6 = scmp.ne.s32.totalorder %s564_s2, %s429_s26  ;;  %p433_p7 = scmp.lt.u32.totalorder %s429_s26, %s564_s2 }
 0x188   :  { %p435_p8 = pnand %p433_p7, %p430_p6 }
 0x18a   :  { %438 = shalt.err (!%p435_p8)
}
 0x18b   :  { %323 = dma.vmem_to_hbm [thread:$0]  %s321_s21, 16, %s564_s2, [#allocation6]   ;;  %v313_v60 = vld [vmem:[#allocation3] sm:$0xf] }
 0x18c   :  { %314 = vst [vmem:[%s563_s1] sm:$0xf] %v313_v60  ;;  %s475_s8 = smov [#allocation8]  }
 0x18d   :  { %s329_s9 = sshll.u32 %s475_s8, 4  ;;  %s330_s9 = int_to_ptr.vmem [resolvable:$true] %s329_s9 }
 0x18e   :  { %s439_s10 = scalar_lea.vmem %s330_s9, 16  ;;  %s443_s11 = scalar_lea.vmem %s330_s9, 32 }
 0x18f   :  { %p440_p9 = scmp.ne.s32.totalorder %s330_s9, %s439_s10  ;;  %p444_p10 = scmp.lt.s32.totalorder %s330_s9, %s330_s9 }
 0x190   :  { %p445_p11 = scmp.lt.s32.totalorder %s443_s11, %s439_s10 }
 0x192   :  { %p446_p12 = por %p445_p11, %p444_p10 }
 0x194   :  { %p447_p13 = pnand %p446_p12, %p440_p9 }
 0x196   :  { %v218_v61 = vpop.trf.xlu0 }
 0x197   :  { %234 = vst [vmem:[#allocation7] sm:$0x1] %v218_v61 }
 0x19e   :  { %v250_v62 = vld [vmem:[#allocation7] sm:$0x1] }
 0x19f   :  { %252 = vst [vmem:[#allocation8] sm:$0x1] %v250_v62 }
 0x1a0   :  { %450 = shalt.err (!%p447_p13)
}
 0x1a1   :  { %s451_s13 = scalar_lea.hbm %s565_s3, 16 }
 0x1a2   :  { %p452_p0 = scmp.ne.s32.totalorder %s565_s3, %s451_s13  ;;  %p455_p1 = scmp.lt.u32.totalorder %s451_s13, %s565_s3 }
 0x1a4   :  { %p457_p2 = pnand %p455_p1, %p452_p0 }
 0x1a6   :  { %460 = shalt.err (!%p457_p2)
}
 0x1a7   :  { %332 = dma.vmem_to_hbm [thread:$0]  %s330_s9, 16, %s565_s3, [#allocation9]  }
 0x1a8   :  { %465 = dma.done.wait [#allocation6], 16  }
 0x1a9   :  { %466 = vsyncadd [#allocation6], 4294967280 }
 0x1aa   :  { %467 = dma.done.wait [#allocation9], 16  }
 0x1ab   :  { %468 = vsyncadd [#allocation9], 4294967280 }
 0x1ac   :  { %339 = vsyncpa [#allocation6], 1 }
 0x1ad   :  { %340 = vsyncpa [#allocation9], 1 }

// kernel: _flow_step_jit.1
= control target key start
LH: loop header
LB: loop body
LE: loop exit
PB: predicated region body
PF: predicated region fallthrough
CT: control target
= control target key end

     0   :  { %vm151_vm0 = vcmask 1043456   ;;  %v11905_v2 = vmov 0.0   ;;  %v9306_v6 = vmov 4   ;;  %vm148_vm1 = vcmask 31744   ;;  %s9308_s6 = smov 126   ;;  %s9309_s9 = smov 17   ;;  %s11879_s0 = inlined_call_operand.vmem [shape: f32[1,4,512], index: 0, kind: input, shape index: {}]   ;;  %s11880_s1 = inlined_call_operand.vmem [shape: f32[6,5], index: 1, kind: input, shape index: {}]   ;;  %s11881_s4 = inlined_call_operand.vmem [shape: f32[1,4,512], index: 4, kind: output, shape index: {0}]   ;;  %s11882_s2 = inlined_call_operand.vmem [shape: f32[32,768], index: 2, kind: input, shape index: {}]   ;;  %s11883_s3 = inlined_call_operand.vmem [shape: f32[4,384], index: 3, kind: input, shape index: {}]   ;;  %s11884_s5 = inlined_call_operand.vmem [shape: f32[1,2,1], index: 5, kind: output, shape index: {1}]  }
   0x1   :  { %v136_v0 = vld [vmem:[%s11879_s0] sm:$0xff]  ;;  %v137_v1 = vld [vmem:[%s11879_s0 + $0x8] sm:$0xff]  ;;  %224 = vmatprep.mubr.f32.mxu0 %v11905_v2  ;;  %295 = vmatprep.mubr.f32.mxu1 %v11905_v2  ;;  %s9307_s0 = smov 16   ;;  %v9419_v23 = vld [vmem:[%s11882_s2 + $0x50] sm:$0xff]  ;;  %s9310_s12 = smov 15   ;;  %v11904_v26 = vlaneseq  ;;  %vm11886_vm2 = vcmask 130048  }
   0x2   :  { %v146_v3 = vcombine.high %v136_v0, %v136_v0  ;;  %v147_v4 = vcombine.high %v137_v1, %v137_v1  ;;  %v138_v5 = vld [vmem:[%s11880_s1] sm:$0x3f]  ;;  %8642 = vset.pattern.permute.xlu0 %v9306_v6  ;;  %v9438_v25 = vld [vmem:[%s11882_s2 + $0xb0] sm:$0xff]  ;;  %s9311_s13 = smov 124   ;;  %s9312_s14 = smov 1   ;;  %vm11894_vm5 = vcmask 1041408  }
   0x3   :  { %141 = vperm.xlu0 %8642, %v138_v5   ;;  %v9414_v22 = vld [vmem:[%s11882_s2 + $0x20] sm:$0xff]  ;;  %s9313_s15 = smov 122   ;;  %s9314_s16 = smov 120   ;;  %v20_v27 = vand.u32 127, %v11904_v26  ;;  %vm396_vm6 = vcmask 15360   ;;  %vm11885_vm8 = vcmask 138240  }
   0x4   :  { %7475 = vmatprep.subr.msk.mxu0 %vm151_vm0, %v146_v3  ;;  %7478 = vmatprep.subr.msk.mxu1 %vm151_vm0, %v147_v4  ;;  %v9426_v24 = vld [vmem:[%s11882_s2 + $0x80] sm:$0xff]  ;;  %s9315_s17 = smov 127   ;;  %s9316_s18 = smov 118   ;;  %vm11888_vm15 = vcmask 121856  }
   0x5   :  { %7476 = vmatpush1.msk.msra.mxu0 %vm151_vm0, %v136_v0  ;;  %7479 = vmatpush1.msk.msra.mxu1 %vm151_vm0, %v137_v1  ;;  %s9317_s19 = smov 113   ;;  %s9318_s20 = smov 116   ;;  %v22_v28 = vadd.s32 256, %v20_v27  ;;  %v28_v29 = vand.u32 255, %v20_v27  ;;  %v9525_v36 = vadd.s32 128, %v20_v27  ;;  %v9539_v45 = vadd.s32 384, %v20_v27 }
   0x6   :  { %7477 = vmatmul.mubr.msk.f32.vlgmr.msra.gmra.mrb[0].mxu0 %vm148_vm1, %v138_v5  ;;  %7480 = vmatmul.mubr.msk.f32.vlgmr.msra.gmra.mrb[0].mxu1 %vm148_vm1, %v138_v5  ;;  %s9319_s21 = smov 112   ;;  %s9320_s22 = smov 114   ;;  %v9610_v4 = vld [vmem:[%s11882_s2] sm:$0xff]  ;;  %v9615_v5 = vld [vmem:[%s11882_s2 + $0x30] sm:$0xff] }
   0x7   :  { %482 = vmatprep.mubr.f32.mxu0 %v11905_v2  ;;  %571 = vmatprep.mubr.f32.mxu1 %v11905_v2  ;;  %s9321_s23 = smov 111   ;;  %v42_v30 = vand.u32 255, %v22_v28  ;;  %vm9513_vm3 = vcmp.ge.s32.totalorder %v28_v29, 16  ;;  %v35_v44 = vand.u32 255, %v9525_v36  ;;  %v9547_v48 = vand.u32 15, %v28_v29  ;;  %s9322_s27 = smov 96  }
   0x8   :  { %v49_v50 = vand.u32 255, %v9539_v45  ;;  %v12024_v36 = vmov 0  ;;  %s9323_s7 = smov 64   ;;  %s9324_s8 = smov 32  }
   0x9   :  { %vm9521_vm4 = vcmp.ge.s32.totalorder %v42_v30, 16  ;;  %v9553_v49 = vand.u32 15, %v35_v44  ;;  %vm11900_vm7 = vcmp.ge.s32.totalorder %v9547_v48, 1  ;;  %v9563_v53 = vand.u32 15, %v42_v30 }
   0xa   :  { %v9570_v54 = vand.u32 15, %v49_v50  ;;  %vm9576_vm10 = vmand %vm9513_vm3, %vm11900_vm7  ;;  %vm11887_vm14 = vcmp.le.s32.totalorder %v9547_v48, 14 }
   0xb   :  { %vm11896_vm9 = vcmp.ge.s32.totalorder %v9553_v49, 1  ;;  %vm11898_vm11 = vcmp.ge.s32.totalorder %v9563_v53, 1  ;;  %vm9628_vm0 = vmand %vm9513_vm3, %vm11887_vm14  ;;  %vm11890_vm1 = vcmp.le.s32.totalorder %v9553_v49, 14 }
   0xc   :  { %vm11895_vm12 = vcmp.ge.s32.totalorder %v9570_v54, 1  ;;  %vm9597_vm13 = vmand %vm9521_vm4, %vm11898_vm11  ;;  %vm11893_vm14 = vcmp.le.s32.totalorder %v9570_v54, 14 }
  0x82   :  { %v142_v7 = vpop.permute.xlu0 %141 }
  0xd9   :  { %v226_v8 = vpop.f32.mrb[0].mxu0  ;;  %v297_v9 = vpop.f32.mrb[0].mxu1 }
  0xda   :  { %v9373_v10 = vadd.f32 %v226_v8, %v142_v7  ;;  %v9375_v11 = vadd.f32 %v297_v9, %v142_v7  ;;  %v228_v12 = vpop.f32.mrb[1].mxu0  ;;  %v299_v13 = vpop.f32.mrb[1].mxu1 }
  0xdb   :  { %v9377_v14 = vadd.f32 %v228_v12, %v142_v7  ;;  %v9379_v15 = vadd.f32 %v299_v13, %v142_v7 }
  0xdc   :  { %v9382_v16 = vrot.slane %v9375_v11, 4  ;;  %v9385_v17 = vrot.slane %v9373_v10, 4 }
  0xdd   :  { %v306_v18 = vcombine.low %v9373_v10, %v9377_v14  ;;  %v307_v19 = vcombine.low %v9375_v11, %v9379_v15  ;;  %v9402_v20 = vrot.slane %v9377_v14, 4  ;;  %v9405_v21 = vrot.slane %v9379_v15, 4 }
  0xde   :  { %359 = vrot.lane.b32.xlu1 %v9382_v16, %s9307_s0  ;;  %355 = vrot.lane.b32.xlu0 %v9385_v17, %s9307_s0 }
  0xdf   :  { %310 = vst [vmem:[%s11881_s4] sm:$0xff] %v306_v18   ;;  %311 = vst [vmem:[%s11881_s4 + $0x8] sm:$0xff] %v307_v19  }
  0xe2   :  { %357 = vrot.lane.b32.xlu1 %v9402_v20, %s9307_s0  ;;  %361 = vrot.lane.b32.xlu0 %v9405_v21, %s9307_s0 }
  0xe6   :  { %388 = vrot.lane.b32.xlu1 %v9414_v22, %s9308_s6  ;;  %390 = vrot.lane.b32.xlu0 %v9419_v23, %s9308_s6 }
  0xea   :  { %392 = vrot.lane.b32.xlu1 %v9426_v24, %s9308_s6  ;;  %322 = vrot.lane.b32.xlu0 %v9385_v17, %s9309_s9 }
  0xee   :  { %324 = vrot.lane.b32.xlu1 %v9402_v20, %s9309_s9  ;;  %326 = vrot.lane.b32.xlu0 %v9382_v16, %s9309_s9 }
  0xf2   :  { %328 = vrot.lane.b32.xlu1 %v9405_v21, %s9309_s9  ;;  %394 = vrot.lane.b32.xlu0 %v9438_v25, %s9308_s6 }
  0xf6   :  { %794 = vrot.lane.b32.xlu1 %v9385_v17, %s9310_s12  ;;  %796 = vrot.lane.b32.xlu0 %v9402_v20, %s9310_s12 }
  0xfa   :  { %798 = vrot.lane.b32.xlu1 %v9382_v16, %s9310_s12  ;;  %800 = vrot.lane.b32.xlu0 %v9405_v21, %s9310_s12 }
  0xfe   :  { %827 = vrot.lane.b32.xlu1 %v9414_v22, %s9311_s13  ;;  %829 = vrot.lane.b32.xlu0 %v9419_v23, %s9311_s13 }
 0x102   :  { %831 = vrot.lane.b32.xlu1 %v9426_v24, %s9311_s13  ;;  %833 = vrot.lane.b32.xlu0 %v9438_v25, %s9311_s13 }
 0x106   :  { %1049 = vrot.lane.b32.xlu1 %v9385_v17, %s9312_s14  ;;  %1051 = vrot.lane.b32.xlu0 %v9402_v20, %s9312_s14 }
 0x10a   :  { %1053 = vrot.lane.b32.xlu1 %v9382_v16, %s9312_s14  ;;  %1055 = vrot.lane.b32.xlu0 %v9405_v21, %s9312_s14 }
 0x10e   :  { %1078 = vrot.lane.b32.xlu1 %v9414_v22, %s9313_s15  ;;  %1080 = vrot.lane.b32.xlu0 %v9419_v23, %s9313_s15 }
 0x112   :  { %1082 = vrot.lane.b32.xlu1 %v9426_v24, %s9313_s15  ;;  %1084 = vrot.lane.b32.xlu0 %v9438_v25, %s9313_s15 }
 0x116   :  { %1300 = vrot.lane.b32.xlu1 %v9414_v22, %s9314_s16  ;;  %1302 = vrot.lane.b32.xlu0 %v9419_v23, %s9314_s16 }
 0x11a   :  { %1304 = vrot.lane.b32.xlu1 %v9426_v24, %s9314_s16  ;;  %1520 = vrot.lane.b32.xlu0 %v9377_v14, %s9315_s17 }
 0x11e   :  { %1522 = vrot.lane.b32.xlu1 %v9375_v11, %s9315_s17  ;;  %1524 = vrot.lane.b32.xlu0 %v9379_v15, %s9315_s17 }
 0x122   :  { %1518 = vrot.lane.b32.xlu1 %v9373_v10, %s9315_s17  ;;  %1306 = vrot.lane.b32.xlu0 %v9438_v25, %s9314_s16 }
 0x126   :  { %1547 = vrot.lane.b32.xlu1 %v9414_v22, %s9316_s18  ;;  %1549 = vrot.lane.b32.xlu0 %v9419_v23, %s9316_s18 }
 0x12a   :  { %1551 = vrot.lane.b32.xlu1 %v9426_v24, %s9316_s18  ;;  %1775 = vrot.lane.b32.xlu0 %v9377_v14, %s9317_s19 }
 0x12e   :  { %1777 = vrot.lane.b32.xlu1 %v9375_v11, %s9317_s19  ;;  %1779 = vrot.lane.b32.xlu0 %v9379_v15, %s9317_s19 }
 0x132   :  { %1773 = vrot.lane.b32.xlu1 %v9373_v10, %s9317_s19  ;;  %1553 = vrot.lane.b32.xlu0 %v9438_v25, %s9316_s18 }
 0x136   :  { %1806 = vrot.lane.b32.xlu1 %v9414_v22, %s9318_s20  ;;  %1808 = vrot.lane.b32.xlu0 %v9419_v23, %s9318_s20 }
 0x13a   :  { %1810 = vrot.lane.b32.xlu1 %v9426_v24, %s9318_s20  ;;  %2034 = vrot.lane.b32.xlu0 %v9377_v14, %s9319_s21 }
 0x13e   :  { %2036 = vrot.lane.b32.xlu1 %v9375_v11, %s9319_s21  ;;  %2038 = vrot.lane.b32.xlu0 %v9379_v15, %s9319_s21 }
 0x142   :  { %1812 = vrot.lane.b32.xlu1 %v9438_v25, %s9318_s20  ;;  %2032 = vrot.lane.b32.xlu0 %v9373_v10, %s9319_s21 }
 0x146   :  { %2061 = vrot.lane.b32.xlu1 %v9414_v22, %s9320_s22  ;;  %2063 = vrot.lane.b32.xlu0 %v9419_v23, %s9320_s22 }
 0x14a   :  { %2065 = vrot.lane.b32.xlu1 %v9426_v24, %s9320_s22  ;;  %2289 = vrot.lane.b32.xlu0 %v9377_v14, %s9321_s23 }
 0x14e   :  { %2291 = vrot.lane.b32.xlu1 %v9375_v11, %s9321_s23  ;;  %2293 = vrot.lane.b32.xlu0 %v9379_v15, %s9321_s23  ;;  %v9303_v15 = vld [vmem:[%s11882_s2] sm:$0xff] }
 0x150   :  { %v360_v31 = vpop.permute.xlu1 %359  ;;  %v356_v32 = vpop.permute.xlu0 %355 }
 0x151   :  { %v371_v34 = vsel %vm11886_vm2, 0.0, %v356_v32 }
 0x152   :  { %2287 = vrot.lane.b32.xlu1 %v9373_v10, %s9321_s23  ;;  %2067 = vrot.lane.b32.xlu0 %v9438_v25, %s9320_s22  ;;  %v380_v42 = vsel %vm9513_vm3, %v371_v34, 0.0 }
 0x154   :  { %v358_v37 = vpop.permute.xlu1 %357  ;;  %v362_v38 = vpop.permute.xlu0 %361 }
 0x155   :  { %v365_v39 = vsel %vm11886_vm2, %v358_v37, %v360_v31  ;;  %v366_v40 = vsel %vm11886_vm2, %v360_v31, %v362_v38  ;;  %v364_v41 = vsel %vm11886_vm2, %v356_v32, %v358_v37 }
 0x156   :  { %v382_v43 = vsel %vm9521_vm4, %v365_v39, 0.0  ;;  %7481 = vmatprep.subr.msk.mxu0 %vm11894_vm5, %v364_v41  ;;  %7487 = vmatprep.subr.msk.mxu1 %vm11894_vm5, %v366_v40 }
 0x157   :  { %7482 = vmatpush1.msk.msra.mxu0 %vm11894_vm5, %v380_v42  ;;  %7488 = vmatpush1.msk.msra.mxu1 %vm11894_vm5, %v382_v43 }
 0x158   :  { %v389_v46 = vpop.permute.xlu1 %388  ;;  %v391_v47 = vpop.permute.xlu0 %390  ;;  %2320 = vrot.lane.b32.xlu1 %v9414_v22, %s9319_s21  ;;  %2322 = vrot.lane.b32.xlu0 %v9419_v23, %s9319_s21 }
 0x159   :  { %7483 = vmatmul.mubr.msk.f32.vlgmr.msra.gmra.mrb[2].mxu0 %vm396_vm6, %v389_v46  ;;  %7489 = vmatmul.mubr.msk.f32.vlgmr.msra.gmra.mrb[2].mxu1 %vm396_vm6, %v389_v46 }
 0x15a   :  { %488 = vmatprep.mubr.f32.mxu0 %v11905_v2  ;;  %577 = vmatprep.mubr.f32.mxu1 %v11905_v2 }
 0x15c   :  { %v393_v51 = vpop.permute.xlu1 %392  ;;  %v323_v52 = vpop.permute.xlu0 %322  ;;  %2324 = vrot.lane.b32.xlu1 %v9426_v24, %s9319_s21  ;;  %2326 = vrot.lane.b32.xlu0 %v9438_v25, %s9319_s21 }
 0x15d   :  { %7484 = vmatmul.mubr.msk.f32.gmra.mrb[4].mxu0 %vm396_vm6, %v391_v47  ;;  %7490 = vmatmul.mubr.msk.f32.gmra.mrb[4].mxu1 %vm396_vm6, %v391_v47  ;;  %v338_v56 = vsel %vm11885_vm8, 0.0, %v323_v52 }
 0x15e   :  { %494 = vmatprep.mubr.f32.mxu0 %v11905_v2  ;;  %583 = vmatprep.mubr.f32.mxu1 %v11905_v2  ;;  %v351_v61 = vsel %vm9576_vm10, %v338_v56, 0.0 }
 0x160   :  { %v325_v57 = vpop.permute.xlu1 %324  ;;  %v327_v58 = vpop.permute.xlu0 %326  ;;  %2746 = vrot.lane.b32.xlu1 %v9610_v4, %s9322_s27  ;;  %2748 = vrot.lane.b32.xlu0 %v9615_v5, %s9322_s27 }
 0x161   :  { %v331_v59 = vsel %vm11885_vm8, %v323_v52, %v325_v57  ;;  %7485 = vmatmul.mubr.msk.f32.gmra.mrb[6].mxu0 %vm396_vm6, %v393_v51  ;;  %7491 = vmatmul.mubr.msk.f32.gmra.mrb[6].mxu1 %vm396_vm6, %v393_v51  ;;  %v332_v63 = vsel %vm11885_vm8, %v325_v57, %v327_v58 }
 0x162   :  { %v352_v60 = vsel %vm11896_vm9, %v331_v59, 0.0  ;;  %500 = vmatprep.mubr.f32.mxu0 %v11905_v2  ;;  %589 = vmatprep.mubr.f32.mxu1 %v11905_v2  ;;  %v353_v7 = vsel %vm9597_vm13, %v332_v63, 0.0 }
 0x163   :  { %7493 = vmatprep.subr.msk.mxu0 %vm11894_vm5, %v352_v60 }
 0x164   :  { %v329_v0 = vpop.permute.xlu1 %328  ;;  %7494 = vmatpush1.msk.msra.mxu0 %vm11894_vm5, %v351_v61  ;;  %v395_v1 = vpop.permute.xlu0 %394 }
 0x165   :  { %v333_v3 = vsel %vm11885_vm8, %v327_v58, %v329_v0  ;;  %7486 = vmatmul.mubr.msk.f32.gmra.mrb[8].mxu0 %vm396_vm6, %v395_v1  ;;  %7492 = vmatmul.mubr.msk.f32.gmra.mrb[8].mxu1 %vm396_vm6, %v395_v1  ;;  %vm11892_vm8 = vcmp.le.s32.totalorder %v9563_v53, 14 }
 0x166   :  { %v354_v6 = vsel %vm11895_vm12, %v333_v3, 0.0  ;;  %680 = vmatprep.mubr.f32.mxu0 %v11905_v2  ;;  %769 = vmatprep.mubr.f32.mxu1 %v11905_v2  ;;  %vm9656_vm2 = vmand %vm9521_vm4, %vm11892_vm8 }
 0x167   :  { %7499 = vmatprep.subr.msk.mxu1 %vm11894_vm5, %v354_v6 }
 0x168   :  { %v795_v9 = vpop.permute.xlu1 %794  ;;  %7500 = vmatpush1.msk.msra.mxu1 %vm11894_vm5, %v353_v7  ;;  %v797_v10 = vpop.permute.xlu0 %796 }
 0x169   :  { %v810_v11 = vsel %vm11888_vm15, 0.0, %v795_v9  ;;  %v803_v12 = vsel %vm11888_vm15, %v795_v9, %v797_v10  ;;  %7495 = vmatmul.mubr.msk.f32.vlgmr.msra.gmra.mrb[2].mxu0 %vm396_vm6, %v9414_v22  ;;  %7501 = vmatmul.mubr.msk.f32.vlgmr.msra.gmra.mrb[2].mxu1 %vm396_vm6, %v9414_v22 }
 0x16a   :  { %v823_v13 = vsel %vm9628_vm0, %v810_v11, 0.0  ;;  %v824_v14 = vsel %vm11890_vm1, %v803_v12, 0.0  ;;  %686 = vmatprep.mubr.f32.mxu0 %v11905_v2  ;;  %775 = vmatprep.mubr.f32.mxu1 %v11905_v2 }
 0x16b   :  { %7505 = vmatprep.subr.msk.mxu0 %vm11894_vm5, %v824_v14 }
 0x16c   :  { %v799_v18 = vpop.permute.xlu1 %798  ;;  %7506 = vmatpush1.msk.msra.mxu0 %vm11894_vm5, %v823_v13  ;;  %v801_v19 = vpop.permute.xlu0 %800 }
 0x16d   :  { %v804_v22 = vsel %vm11888_vm15, %v797_v10, %v799_v18  ;;  %v805_v27 = vsel %vm11888_vm15, %v799_v18, %v801_v19  ;;  %7496 = vmatmul.mubr.msk.f32.gmra.mrb[4].mxu0 %vm396_vm6, %v9419_v23  ;;  %7502 = vmatmul.mubr.msk.f32.gmra.mrb[4].mxu1 %vm396_vm6, %v9419_v23  ;;  %vm11889_vm15 = vcmask 7168  }
 0x16e   :  { %v825_v28 = vsel %vm9656_vm2, %v804_v22, 0.0  ;;  %v826_v29 = vsel %vm11893_vm14, %v805_v27, 0.0  ;;  %692 = vmatprep.mubr.f32.mxu0 %v11905_v2  ;;  %781 = vmatprep.mubr.f32.mxu1 %v11905_v2  ;;  %v12018_v22 = vmov 0 }
 0x16f   :  { %7511 = vmatprep.subr.msk.mxu1 %vm11894_vm5, %v826_v29  ;;  %v12021_v29 = vmov 0 }
 0x170   :  { %v828_v30 = vpop.permute.xlu1 %827  ;;  %7512 = vmatpush1.msk.msra.mxu1 %vm11894_vm5, %v825_v28  ;;  %v830_v31 = vpop.permute.xlu0 %829 }
 0x171   :  { %7497 = vmatmul.mubr.msk.f32.gmra.mrb[6].mxu0 %vm396_vm6, %v9426_v24  ;;  %7503 = vmatmul.mubr.msk.f32.gmra.mrb[6].mxu1 %vm396_vm6, %v9426_v24 }
 0x172   :  { %698 = vmatprep.mubr.f32.mxu0 %v11905_v2  ;;  %787 = vmatprep.mubr.f32.mxu1 %v11905_v2 }
 0x174   :  { %v832_v23 = vpop.permute.xlu1 %831  ;;  %v834_v32 = vpop.permute.xlu0 %833 }
 0x175   :  { %7498 = vmatmul.mubr.msk.f32.gmra.mrb[8].mxu0 %vm396_vm6, %v9438_v25  ;;  %7504 = vmatmul.mubr.msk.f32.gmra.mrb[8].mxu1 %vm396_vm6, %v9438_v25 }
 0x176   :  { %919 = vmatprep.mubr.f32.mxu0 %v11905_v2  ;;  %1008 = vmatprep.mubr.f32.mxu1 %v11905_v2 }
 0x178   :  { %v1050_v34 = vpop.permute.xlu1 %1049  ;;  %v1052_v37 = vpop.permute.xlu0 %1051 }
 0x179   :  { %v1065_v24 = vsel %vm11889_vm15, 0.0, %v1050_v34  ;;  %v1058_v38 = vsel %vm11889_vm15, %v1050_v34, %v1052_v37  ;;  %7507 = vmatmul.mubr.msk.f32.vlgmr.msra.gmra.mrb[2].mxu0 %vm396_vm6, %v828_v30  ;;  %7513 = vmatmul.mubr.msk.f32.vlgmr.msra.gmra.mrb[2].mxu1 %vm396_vm6, %v828_v30 }
 0x17a   :  { %v1074_v39 = vsel %vm11900_vm7, %v1065_v24, 0.0  ;;  %v1075_v25 = vsel %vm11896_vm9, %v1058_v38, 0.0  ;;  %925 = vmatprep.mubr.f32.mxu0 %v11905_v2  ;;  %1014 = vmatprep.mubr.f32.mxu1 %v11905_v2 }
 0x17b   :  { %7517 = vmatprep.subr.msk.mxu0 %vm11894_vm5, %v1075_v25 }
 0x17c   :  { %v1054_v40 = vpop.permute.xlu1 %1053  ;;  %7518 = vmatpush1.msk.msra.mxu0 %vm11894_vm5, %v1074_v39  ;;  %v1056_v41 = vpop.permute.xlu0 %1055 }
 0x17d   :  { %v1059_v42 = vsel %vm11889_vm15, %v1052_v37, %v1054_v40  ;;  %v1060_v43 = vsel %vm11889_vm15, %v1054_v40, %v1056_v41  ;;  %7508 = vmatmul.mubr.msk.f32.gmra.mrb[4].mxu0 %vm396_vm6, %v830_v31  ;;  %7514 = vmatmul.mubr.msk.f32.gmra.mrb[4].mxu1 %vm396_vm6, %v830_v31  ;;  %vm11891_vm15 = vcmask 1039360  }
 0x17e   :  { %v1076_v46 = vsel %vm11898_vm11, %v1059_v42, 0.0  ;;  %v1077_v47 = vsel %vm11895_vm12, %v1060_v43, 0.0  ;;  %7529 = vmatprep.subr.msk.mxu0 %vm11894_vm5, %v9402_v20  ;;  %931 = vmatprep.mubr.f32.mxu0 %v11905_v2 }
 0x17f   :  { %7523 = vmatprep.subr.msk.mxu1 %vm11894_vm5, %v1077_v47  ;;  %1020 = vmatprep.mubr.f32.mxu1 %v11905_v2 }
 0x180   :  { %v1079_v51 = vpop.permute.xlu1 %1078  ;;  %7524 = vmatpush1.msk.msra.mxu1 %vm11894_vm5, %v1076_v46  ;;  %v1081_v52 = vpop.permute.xlu0 %1080 }
 0x181   :  { %7509 = vmatmul.mubr.msk.f32.gmra.mrb[6].mxu0 %vm396_vm6, %v832_v23  ;;  %7515 = vmatmul.mubr.msk.f32.gmra.mrb[6].mxu1 %vm396_vm6, %v832_v23 }
 0x182   :  { %7535 = vmatprep.subr.msk.mxu1 %vm11894_vm5, %v9405_v21  ;;  %937 = vmatprep.mubr.f32.mxu0 %v11905_v2 }
 0x183   :  { %1026 = vmatprep.mubr.f32.mxu1 %v11905_v2 }
 0x184   :  { %v1083_v20 = vpop.permute.xlu1 %1082  ;;  %v1085_v56 = vpop.permute.xlu0 %1084 }
 0x185   :  { %7510 = vmatmul.mubr.msk.f32.gmra.mrb[8].mxu0 %vm396_vm6, %v834_v32  ;;  %7516 = vmatmul.mubr.msk.f32.gmra.mrb[8].mxu1 %vm396_vm6, %v834_v32 }
 0x186   :  { %1170 = vmatprep.mubr.f32.mxu0 %v11905_v2  ;;  %1259 = vmatprep.mubr.f32.mxu1 %v11905_v2 }
 0x188   :  { %v1301_v57 = vpop.permute.xlu1 %1300  ;;  %v1303_v58 = vpop.permute.xlu0 %1302 }
 0x189   :  { %7519 = vmatmul.mubr.msk.f32.vlgmr.msra.gmra.mrb[2].mxu0 %vm396_vm6, %v1079_v51  ;;  %7525 = vmatmul.mubr.msk.f32.vlgmr.msra.gmra.mrb[2].mxu1 %vm396_vm6, %v1079_v51 }
 0x18a   :  { %7530 = vmatpush1.msk.msra.mxu0 %vm11894_vm5, %v9385_v17  ;;  %7536 = vmatpush1.msk.msra.mxu1 %vm11894_vm5, %v9382_v16 }
 0x18b   :  { %1176 = vmatprep.mubr.f32.mxu0 %v11905_v2  ;;  %1265 = vmatprep.mubr.f32.mxu1 %v11905_v2 }
 0x18c   :  { %v1305_v21 = vpop.permute.xlu1 %1304  ;;  %v1521_v59 = vpop.permute.xlu0 %1520 }
 0x18d   :  { %7520 = vmatmul.mubr.msk.f32.gmra.mrb[4].mxu0 %vm396_vm6, %v1081_v52  ;;  %7526 = vmatmul.mubr.msk.f32.gmra.mrb[4].mxu1 %vm396_vm6, %v1081_v52 }
 0x18e   :  { %1182 = vmatprep.mubr.f32.mxu0 %v11905_v2  ;;  %1271 = vmatprep.mubr.f32.mxu1 %v11905_v2 }
 0x190   :  { %v1523_v60 = vpop.permute.xlu1 %1522  ;;  %v1525_v17 = vpop.permute.xlu0 %1524 }
 0x191   :  { %v1528_v61 = vsel %vm11891_vm15, %v1521_v59, %v1523_v60  ;;  %v1534_v16 = vsel %vm11891_vm15, %v1525_v17, 0.0  ;;  %7521 = vmatmul.mubr.msk.f32.gmra.mrb[6].mxu0 %vm396_vm6, %v1083_v20  ;;  %7527 = vmatmul.mubr.msk.f32.gmra.mrb[6].mxu1 %vm396_vm6, %v1083_v20  ;;  %v1529_v0 = vsel %vm11891_vm15, %v1523_v60, %v1525_v17 }
 0x192   :  { %v1544_v63 = vsel %vm11890_vm1, %v1528_v61, 0.0  ;;  %v1546_v1 = vsel %vm11893_vm14, %v1534_v16, 0.0  ;;  %1188 = vmatprep.mubr.f32.mxu0 %v11905_v2  ;;  %1277 = vmatprep.mubr.f32.mxu1 %v11905_v2  ;;  %v1545_v10 = vsel %vm11892_vm8, %v1529_v0, 0.0  ;;  %vm12017_vm1 = vcmp.le.s32.totalorder %v9547_v48, 14 }
 0x193   :  { %v1560_v3 = vrot.slane %v1544_v63, 4  ;;  %v1562_v6 = vrot.slane %v1546_v1, 4  ;;  %v1561_v14 = vrot.slane %v1545_v10, 4  ;;  %vm11897_vm8 = vcmask 924672  }
 0x194   :  { %v1519_v7 = vpop.permute.xlu1 %1518  ;;  %v1307_v9 = vpop.permute.xlu0 %1306 }
 0x195   :  { %v1527_v11 = vsel %vm11891_vm15, %v1519_v7, %v1521_v59  ;;  %7522 = vmatmul.mubr.msk.f32.gmra.mrb[8].mxu0 %vm396_vm6, %v1085_v56  ;;  %7528 = vmatmul.mubr.msk.f32.gmra.mrb[8].mxu1 %vm396_vm6, %v1085_v56  ;;  %vm9772_vm15 = vcmp.lt.s32.totalorder %v49_v50, 240 }
 0x196   :  { %v1543_v12 = vsel %vm12017_vm1, %v1527_v11, 0.0  ;;  %7541 = vmatprep.subr.msk.mxu0 %vm11894_vm5, %v1560_v3  ;;  %7547 = vmatprep.subr.msk.mxu1 %vm11894_vm5, %v1562_v6  ;;  %vm9766_vm1 = vcmp.lt.s32.totalorder %v35_v44, 240  ;;  %v12022_v29 = vsel %vm9772_vm15, 4294967295, %v12021_v29  ;;  %v12027_v44 = vmov 0 }
 0x197   :  { %v1559_v13 = vrot.slane %v1543_v12, 4  ;;  %1388 = vmatprep.mubr.f32.mxu0 %v11905_v2  ;;  %1477 = vmatprep.mubr.f32.mxu1 %v11905_v2  ;;  %v12019_v22 = vsel %vm9766_vm1, 4294967295, %v12018_v22  ;;  %12023 = vst [vmem:[#allocation3_spill] sm:$0xff] %v12022_v29  ;;  %vm9782_vm14 = vmand %vm9766_vm1, %vm11896_vm9  ;;  %v12038_v11 = vmov 0  ;;  %v12042_v12 = vmov 0 }
 0x198   :  { %v1548_v18 = vpop.permute.xlu1 %1547  ;;  %v1550_v19 = vpop.permute.xlu0 %1549  ;;  %12020 = vst [vmem:[#allocation2_spill] sm:$0xff] %v12019_v22  ;;  %v12025_v36 = vsel %vm9782_vm14, 4294967295, %v12024_v36 }
 0x199   :  { %7531 = vmatmul.mubr.msk.f32.vlgmr.msra.gmra.mrb[2].mxu0 %vm396_vm6, %v1301_v57  ;;  %7537 = vmatmul.mubr.msk.f32.vlgmr.msra.gmra.mrb[2].mxu1 %vm396_vm6, %v1301_v57  ;;  %12026 = vst [vmem:[#allocation4_spill] sm:$0xff] %v12025_v36 }
 0x19a   :  { %7542 = vmatpush1.msk.msra.mxu0 %vm11894_vm5, %v1559_v13  ;;  %7548 = vmatpush1.msk.msra.mxu1 %vm11894_vm5, %v1561_v14  ;;  %vm9792_vm5 = vmand %vm9772_vm15, %vm11895_vm12  ;;  %vm12030_vm12 = vcmask 1041408  }
 0x19b   :  { %1394 = vmatprep.mubr.f32.mxu0 %v11905_v2  ;;  %1483 = vmatprep.mubr.f32.mxu1 %v11905_v2  ;;  %v12028_v44 = vsel %vm9792_vm5, 4294967295, %v12027_v44  ;;  %vm12031_vm9 = vmmov %vm12030_vm12 }
 0x19c   :  { %v1552_v27 = vpop.permute.xlu1 %1551  ;;  %v1776_v28 = vpop.permute.xlu0 %1775  ;;  %12029 = vst [vmem:[#allocation5_spill] sm:$0xff] %v12028_v44 }
 0x19d   :  { %7532 = vmatmul.mubr.msk.f32.gmra.mrb[4].mxu0 %vm396_vm6, %v1303_v58  ;;  %7538 = vmatmul.mubr.msk.f32.gmra.mrb[4].mxu1 %vm396_vm6, %v1303_v58 }
 0x19e   :  { %1400 = vmatprep.mubr.f32.mxu0 %v11905_v2  ;;  %1489 = vmatprep.mubr.f32.mxu1 %v11905_v2 }
 0x1a0   :  { %v1778_v45 = vpop.permute.xlu1 %1777  ;;  %v1780_v50 = vpop.permute.xlu0 %1779 }
 0x1a1   :  { %v1783_v30 = vsel %vm11897_vm8, %v1776_v28, %v1778_v45  ;;  %v1789_v31 = vsel %vm11897_vm8, %v1780_v50, 0.0  ;;  %7533 = vmatmul.mubr.msk.f32.gmra.mrb[6].mxu0 %vm396_vm6, %v1305_v21  ;;  %7539 = vmatmul.mubr.msk.f32.gmra.mrb[6].mxu1 %vm396_vm6, %v1305_v21  ;;  %v1784_v32 = vsel %vm11897_vm8, %v1778_v45, %v1780_v50 }
 0x1a2   :  { %v1803_v23 = vsel %vm9782_vm14, %v1783_v30, 0.0  ;;  %v1805_v34 = vsel %vm9792_vm5, %v1789_v31, 0.0  ;;  %1406 = vmatprep.mubr.f32.mxu0 %v11905_v2  ;;  %1495 = vmatprep.mubr.f32.mxu1 %v11905_v2  ;;  %v1804_v25 = vsel %vm11898_vm11, %v1784_v32, 0.0 }
 0x1a3   :  { %v1819_v37 = vrot.slane %v1803_v23, 4  ;;  %v1821_v24 = vrot.slane %v1805_v34, 4  ;;  %v1820_v43 = vrot.slane %v1804_v25, 4 }
 0x1a4   :  { %v1774_v38 = vpop.permute.xlu1 %1773  ;;  %v1554_v39 = vpop.permute.xlu0 %1553 }
 0x1a5   :  { %v1782_v40 = vsel %vm11897_vm8, %v1774_v38, %v1776_v28  ;;  %7534 = vmatmul.mubr.msk.f32.gmra.mrb[8].mxu0 %vm396_vm6, %v1307_v9  ;;  %7540 = vmatmul.mubr.msk.f32.gmra.mrb[8].mxu1 %vm396_vm6, %v1307_v9  ;;  %vm12032_vm8 = vmmov %vm12031_vm9 }
 0x1a6   :  { %v1802_v41 = vsel %vm11900_vm7, %v1782_v40, 0.0  ;;  %7553 = vmatprep.subr.msk.mxu0 %vm12030_vm12, %v1819_v37  ;;  %7559 = vmatprep.subr.msk.mxu1 %vm12031_vm9, %v1821_v24  ;;  %vm12033_vm11 = vmmov %vm12032_vm8  ;;  %vm11899_vm9 = vcmask 916480  }
 0x1a7   :  { %v1818_v42 = vrot.slane %v1802_v41, 4  ;;  %1643 = vmatprep.mubr.f32.mxu0 %v11905_v2  ;;  %1732 = vmatprep.mubr.f32.mxu1 %v11905_v2  ;;  %vm12035_vm12 = vmmov %vm12032_vm8 }
 0x1a8   :  { %v1807_v46 = vpop.permute.xlu1 %1806  ;;  %v1809_v47 = vpop.permute.xlu0 %1808 }
 0x1a9   :  { %7543 = vmatmul.mubr.msk.f32.vlgmr.msra.gmra.mrb[2].mxu0 %vm396_vm6, %v1548_v18  ;;  %7549 = vmatmul.mubr.msk.f32.vlgmr.msra.gmra.mrb[2].mxu1 %vm396_vm6, %v1548_v18 }
 0x1aa   :  { %7554 = vmatpush1.msk.msra.mxu0 %vm12032_vm8, %v1818_v42  ;;  %7560 = vmatpush1.msk.msra.mxu1 %vm12033_vm11, %v1820_v43  ;;  %vm12034_vm11 = vmmov %vm12032_vm8  ;;  %v9931_v42 = vld [vmem:[%s11882_s2 + $0x60] sm:$0xff]  ;;  %v9936_v43 = vld [vmem:[%s11882_s2 + $0x90] sm:$0xff] }
 0x1ab   :  { %1649 = vmatprep.mubr.f32.mxu0 %v11905_v2  ;;  %1738 = vmatprep.mubr.f32.mxu1 %v11905_v2 }
 0x1ac   :  { %v1811_v51 = vpop.permute.xlu1 %1810  ;;  %v2035_v52 = vpop.permute.xlu0 %2034  ;;  %2750 = vrot.lane.b32.xlu1 %v9931_v42, %s9322_s27  ;;  %2752 = vrot.lane.b32.xlu0 %v9936_v43, %s9322_s27 }
 0x1ad   :  { %7544 = vmatmul.mubr.msk.f32.gmra.mrb[4].mxu0 %vm396_vm6, %v1550_v19  ;;  %7550 = vmatmul.mubr.msk.f32.gmra.mrb[4].mxu1 %vm396_vm6, %v1550_v19 }
 0x1ae   :  { %1655 = vmatprep.mubr.f32.mxu0 %v11905_v2  ;;  %1744 = vmatprep.mubr.f32.mxu1 %v11905_v2 }
 0x1b0   :  { %v2037_v20 = vpop.permute.xlu1 %2036  ;;  %v2039_v56 = vpop.permute.xlu0 %2038 }
 0x1b1   :  { %v2042_v57 = vsel %vm11899_vm9, %v2035_v52, %v2037_v20  ;;  %v2048_v58 = vsel %vm11899_vm9, %v2039_v56, 0.0  ;;  %7545 = vmatmul.mubr.msk.f32.gmra.mrb[6].mxu0 %vm396_vm6, %v1552_v27  ;;  %7551 = vmatmul.mubr.msk.f32.gmra.mrb[6].mxu1 %vm396_vm6, %v1552_v27  ;;  %v2043_v63 = vsel %vm11899_vm9, %v2037_v20, %v2039_v56 }
 0x1b2   :  { %v2058_v21 = vsel %vm9766_vm1, %v2042_v57, 0.0  ;;  %v2060_v59 = vsel %vm9772_vm15, %v2048_v58, 0.0  ;;  %1661 = vmatprep.mubr.f32.mxu0 %v11905_v2  ;;  %1750 = vmatprep.mubr.f32.mxu1 %v11905_v2  ;;  %v2075_v3 = vrot.slane %v2043_v63, 4 }
 0x1b3   :  { %v2074_v60 = vrot.slane %v2058_v21, 4  ;;  %v2076_v17 = vrot.slane %v2060_v59, 4 }
 0x1b4   :  { %v1813_v61 = vpop.permute.xlu1 %1812  ;;  %v2033_v16 = vpop.permute.xlu0 %2032 }
 0x1b5   :  { %v2041_v0 = vsel %vm11899_vm9, %v2033_v16, %v2035_v52  ;;  %7546 = vmatmul.mubr.msk.f32.gmra.mrb[8].mxu0 %vm396_vm6, %v1554_v39  ;;  %7552 = vmatmul.mubr.msk.f32.gmra.mrb[8].mxu1 %vm396_vm6, %v1554_v39  ;;  %vm12036_vm9 = vmmov %vm12032_vm8 }
 0x1b6   :  { %v2073_v1 = vrot.slane %v2041_v0, 4  ;;  %7565 = vmatprep.subr.msk.mxu0 %vm12032_vm8, %v2074_v60  ;;  %7571 = vmatprep.subr.msk.mxu1 %vm12034_vm11, %v2076_v17  ;;  %vm11903_vm8 = vcmask 908288   ;;  %vm12037_vm11 = vcmp.le.s32.totalorder %v9553_v49, 14 }
 0x1b7   :  { %1902 = vmatprep.mubr.f32.mxu0 %v11905_v2  ;;  %1991 = vmatprep.mubr.f32.mxu1 %v11905_v2  ;;  %vm9858_vm7 = vmand %vm9766_vm1, %vm12037_vm11  ;;  %vm12045_vm11 = vcmp.le.s32.totalorder %v9563_v53, 14 }
 0x1b8   :  { %v2062_v6 = vpop.permute.xlu1 %2061  ;;  %v2064_v7 = vpop.permute.xlu0 %2063  ;;  %v12039_v11 = vsel %vm9858_vm7, 4294967295, %v12038_v11 }
 0x1b9   :  { %7555 = vmatmul.mubr.msk.f32.vlgmr.msra.gmra.mrb[2].mxu0 %vm396_vm6, %v1807_v46  ;;  %7561 = vmatmul.mubr.msk.f32.vlgmr.msra.gmra.mrb[2].mxu1 %vm396_vm6, %v1807_v46  ;;  %12040 = vst [vmem:[#allocation6_spill] sm:$0xff] %v12039_v11 }
 0x1ba   :  { %7566 = vmatpush1.msk.msra.mxu0 %vm12035_vm12, %v2073_v1  ;;  %7572 = vmatpush1.msk.msra.mxu1 %vm12036_vm9, %v2075_v3  ;;  %vm12041_vm9 = vcmp.le.s32.totalorder %v9570_v54, 14 }
 0x1bb   :  { %1908 = vmatprep.mubr.f32.mxu0 %v11905_v2  ;;  %1997 = vmatprep.mubr.f32.mxu1 %v11905_v2  ;;  %vm9868_vm12 = vmand %vm9772_vm15, %vm12041_vm9  ;;  %vm12046_vm9 = vcmp.le.s32.totalorder %v9547_v48, 14 }
 0x1bc   :  { %v2066_v9 = vpop.permute.xlu1 %2065  ;;  %v2290_v10 = vpop.permute.xlu0 %2289  ;;  %v12043_v12 = vsel %vm9868_vm12, 4294967295, %v12042_v12 }
 0x1bd   :  { %7556 = vmatmul.mubr.msk.f32.gmra.mrb[4].mxu0 %vm396_vm6, %v1809_v47  ;;  %7562 = vmatmul.mubr.msk.f32.gmra.mrb[4].mxu1 %vm396_vm6, %v1809_v47  ;;  %12044 = vst [vmem:[#allocation7_spill] sm:$0xff] %v12043_v12 }
 0x1be   :  { %1914 = vmatprep.mubr.f32.mxu0 %v11905_v2  ;;  %2003 = vmatprep.mubr.f32.mxu1 %v11905_v2 }
 0x1c0   :  { %v2292_v13 = vpop.permute.xlu1 %2291  ;;  %v2294_v14 = vpop.permute.xlu0 %2293 }
 0x1c1   :  { %v2297_v18 = vsel %vm11903_vm8, %v2290_v10, %v2292_v13  ;;  %v2303_v19 = vsel %vm11903_vm8, %v2294_v14, 0.0  ;;  %7557 = vmatmul.mubr.msk.f32.gmra.mrb[6].mxu0 %vm396_vm6, %v1811_v51  ;;  %7563 = vmatmul.mubr.msk.f32.gmra.mrb[6].mxu1 %vm396_vm6, %v1811_v51  ;;  %v2298_v28 = vsel %vm11903_vm8, %v2292_v13, %v2294_v14 }
 0x1c2   :  { %v2317_v27 = vsel %vm9858_vm7, %v2297_v18, 0.0  ;;  %v2319_v45 = vsel %vm9868_vm12, %v2303_v19, 0.0  ;;  %1920 = vmatprep.mubr.f32.mxu0 %v11905_v2  ;;  %2009 = vmatprep.mubr.f32.mxu1 %v11905_v2  ;;  %v2318_v23 = vsel %vm12045_vm11, %v2298_v28, 0.0  ;;  %vm12047_vm12 = vcmask 1041408  }
 0x1c3   :  { %v2333_v50 = vrot.slane %v2317_v27, 4  ;;  %v2335_v30 = vrot.slane %v2319_v45, 4  ;;  %vm12048_vm7 = vmmov %vm12047_vm12  ;;  %v2334_v24 = vrot.slane %v2318_v23, 4 }
 0x1c4   :  { %v2288_v31 = vpop.permute.xlu1 %2287  ;;  %vm12049_vm11 = vmmov %vm12048_vm7  ;;  %v2068_v38 = vpop.permute.xlu0 %2067 }
 0x1c5   :  { %v2296_v32 = vsel %vm11903_vm8, %v2288_v31, %v2290_v10  ;;  %7558 = vmatmul.mubr.msk.f32.gmra.mrb[8].mxu0 %vm396_vm6, %v1813_v61  ;;  %7564 = vmatmul.mubr.msk.f32.gmra.mrb[8].mxu1 %vm396_vm6, %v1813_v61  ;;  %vm12050_vm8 = vmmov %vm12048_vm7 }
 0x1c6   :  { %v2316_v34 = vsel %vm12046_vm9, %v2296_v32, 0.0  ;;  %7577 = vmatprep.subr.msk.mxu0 %vm12047_vm12, %v2333_v50  ;;  %7583 = vmatprep.subr.msk.mxu1 %vm12048_vm7, %v2335_v30 }
 0x1c7   :  { %v2332_v37 = vrot.slane %v2316_v34, 4  ;;  %2157 = vmatprep.mubr.f32.mxu0 %v11905_v2  ;;  %2246 = vmatprep.mubr.f32.mxu1 %v11905_v2 }
 0x1c9   :  { %7567 = vmatmul.mubr.msk.f32.vlgmr.msra.gmra.mrb[2].mxu0 %vm396_vm6, %v2062_v6  ;;  %7573 = vmatmul.mubr.msk.f32.vlgmr.msra.gmra.mrb[2].mxu1 %vm396_vm6, %v2062_v6 }
 0x1ca   :  { %7578 = vmatpush1.msk.msra.mxu0 %vm12049_vm11, %v2332_v37  ;;  %7584 = vmatpush1.msk.msra.mxu1 %vm12050_vm8, %v2334_v24  ;;  %v2321_v39 = vpop.permute.xlu1 %2320  ;;  %v2323_v25 = vpop.permute.xlu0 %2322 }
 0x1cb   :  { %2163 = vmatprep.mubr.f32.mxu0 %v11905_v2  ;;  %2252 = vmatprep.mubr.f32.mxu1 %v11905_v2 }
 0x1cd   :  { %7568 = vmatmul.mubr.msk.f32.gmra.mrb[4].mxu0 %vm396_vm6, %v2064_v7  ;;  %7574 = vmatmul.mubr.msk.f32.gmra.mrb[4].mxu1 %vm396_vm6, %v2064_v7 }
 0x1ce   :  { %2169 = vmatprep.mubr.f32.mxu0 %v11905_v2  ;;  %2258 = vmatprep.mubr.f32.mxu1 %v11905_v2  ;;  %v2325_v40 = vpop.permute.xlu1 %2324  ;;  %v2327_v41 = vpop.permute.xlu0 %2326 }
 0x1d1   :  { %7569 = vmatmul.mubr.msk.f32.gmra.mrb[6].mxu0 %vm396_vm6, %v2066_v9  ;;  %7575 = vmatmul.mubr.msk.f32.gmra.mrb[6].mxu1 %vm396_vm6, %v2066_v9 }
 0x1d2   :  { %2175 = vmatprep.mubr.f32.mxu0 %v11905_v2  ;;  %2264 = vmatprep.mubr.f32.mxu1 %v11905_v2 }
 0x1d5   :  { %7570 = vmatmul.mubr.msk.f32.gmra.mrb[8].mxu0 %vm396_vm6, %v2068_v38  ;;  %7576 = vmatmul.mubr.msk.f32.gmra.mrb[8].mxu1 %vm396_vm6, %v2068_v38 }
 0x1d6   :  { %2416 = vmatprep.mubr.f32.mxu0 %v11905_v2  ;;  %2505 = vmatprep.mubr.f32.mxu1 %v11905_v2 }
 0x1d9   :  { %7579 = vmatmul.mubr.msk.f32.vlgmr.msra.gmra.mrb[2].mxu0 %vm396_vm6, %v2321_v39  ;;  %7585 = vmatmul.mubr.msk.f32.vlgmr.msra.gmra.mrb[2].mxu1 %vm396_vm6, %v2321_v39 }
 0x1da   :  { %2422 = vmatprep.mubr.f32.mxu0 %v11905_v2  ;;  %2511 = vmatprep.mubr.f32.mxu1 %v11905_v2 }
 0x1dd   :  { %7580 = vmatmul.mubr.msk.f32.gmra.mrb[4].mxu0 %vm396_vm6, %v2323_v25  ;;  %7586 = vmatmul.mubr.msk.f32.gmra.mrb[4].mxu1 %vm396_vm6, %v2323_v25 }
 0x1de   :  { %2428 = vmatprep.mubr.f32.mxu0 %v11905_v2  ;;  %2517 = vmatprep.mubr.f32.mxu1 %v11905_v2 }
 0x1e1   :  { %7581 = vmatmul.mubr.msk.f32.gmra.mrb[6].mxu0 %vm396_vm6, %v2325_v40  ;;  %7587 = vmatmul.mubr.msk.f32.gmra.mrb[6].mxu1 %vm396_vm6, %v2325_v40 }
 0x1e2   :  { %2434 = vmatprep.mubr.f32.mxu0 %v11905_v2  ;;  %2523 = vmatprep.mubr.f32.mxu1 %v11905_v2 }
 0x1e5   :  { %7582 = vmatmul.mubr.msk.f32.gmra.mrb[8].mxu0 %vm396_vm6, %v2327_v41  ;;  %7588 = vmatmul.mubr.msk.f32.gmra.mrb[8].mxu1 %vm396_vm6, %v2327_v41  ;;  %vm12061_vm6 = vcmask 130048  }
 0x1e6   :  { %2827 = vmatprep.mubr.f32.mxu0 %v11905_v2  ;;  %2916 = vmatprep.mubr.f32.mxu1 %v11905_v2  ;;  %vm12062_vm7 = vmmov %vm12061_vm6 }
 0x1e7   :  { %vm12063_vm8 = vmmov %vm12061_vm6 }
 0x1e8   :  { %vm12064_vm12 = vmmov %vm12061_vm6 }
 0x1e9   :  { %vm12065_vm9 = vmmov %vm12061_vm6 }
 0x1ea   :  { %vm12066_vm11 = vmmov %vm12061_vm6 }
 0x1eb   :  { %vm12067_vm1 = vmmov %vm12061_vm6 }
 0x1ec   :  { %vm12068_vm15 = vmmov %vm12067_vm1 }
 0x2ac   :  { %v2418_v46 = vpop.f32.mrb[2].mxu0  ;;  %v2507_v47 = vpop.f32.mrb[2].mxu1 }
 0x2ad   :  { %v9942_v51 = vmax.f32 %v2418_v46, 0.0  ;;  %v2548_v52 = vmax.f32 %v2507_v47, 0.0  ;;  %v2420_v20 = vpop.f32.mrb[3].mxu0  ;;  %v2509_v56 = vpop.f32.mrb[3].mxu1 }
 0x2ae   :  { %v9944_v57 = vmax.f32 %v2420_v20, 0.0  ;;  %v2549_v58 = vmax.f32 %v2509_v56, 0.0 }
 0x2af   :  { %12051 = vst [vmem:[#allocation8_spill] sm:$0xff] %v9942_v51 }
 0x2b0   :  { %v2424_v21 = vpop.f32.mrb[4].mxu0  ;;  %v2513_v59 = vpop.f32.mrb[4].mxu1  ;;  %v9946_v60 = vpack.i.bf16 %v2549_v58, %v2548_v52  ;;  %v9950_v17 = vpack.i.bf16 %v9944_v57, %v9942_v51  ;;  %v9961_v6 = vpack.i.bf16 %v2548_v52, %v9944_v57 }
 0x2b1   :  { %v9952_v61 = vmax.f32 %v2424_v21, 0.0  ;;  %v2552_v16 = vmax.f32 %v2513_v59, 0.0  ;;  %v2426_v63 = vpop.f32.mrb[5].mxu0  ;;  %v2515_v0 = vpop.f32.mrb[5].mxu1 }
 0x2b2   :  { %v9954_v1 = vmax.f32 %v2426_v63, 0.0  ;;  %v2553_v3 = vmax.f32 %v2515_v0, 0.0  ;;  %8649 = vrot.lane.b32.xlu0 %v9946_v60, %s9307_s0  ;;  %8644 = vrot.lane.b32.xlu1 %v9950_v17, %s9307_s0 }
 0x2b3   :  { %v9965_v7 = vpack.i.bf16 %v9952_v61, %v9942_v51  ;;  %v10018_v0 = vpack.c.bf16 %v2552_v16, %v2548_v52  ;;  %v10111_v52 = vld [vmem:[%s11882_s2 + $0x68] sm:$0xff] }
 0x2b4   :  { %v2430_v9 = vpop.f32.mrb[6].mxu0  ;;  %v2519_v10 = vpop.f32.mrb[6].mxu1  ;;  %v9967_v13 = vpack.i.bf16 %v2553_v3, %v2552_v16  ;;  %v8673_v14 = vpack.i.bf16 %v9954_v1, %v9952_v61  ;;  %v9980_v30 = vpack.i.bf16 %v9954_v1, %v2549_v58  ;;  %v10014_v59 = vpack.c.bf16 %v2553_v3, %v2549_v58 }
 0x2b5   :  { %v9971_v18 = vmax.f32 %v2430_v9, 0.0  ;;  %v2556_v19 = vmax.f32 %v2519_v10, 0.0  ;;  %v2432_v27 = vpop.f32.mrb[7].mxu0  ;;  %v2521_v28 = vpop.f32.mrb[7].mxu1  ;;  %12056 = vst [vmem:[#allocation13_spill] sm:$0xff] %v10018_v0 }
 0x2b6   :  { %v9973_v45 = vmax.f32 %v2432_v27, 0.0  ;;  %v2557_v50 = vmax.f32 %v2521_v28, 0.0  ;;  %8659 = vrot.lane.b32.xlu0 %v9946_v60, %s9309_s9  ;;  %8654 = vrot.lane.b32.xlu1 %v9950_v17, %s9309_s9  ;;  %v10113_v58 = vpop.permute.xlu1 %2746 }
 0x2b7   :  { %12052 = vst [vmem:[#allocation9_spill] sm:$0xff] %v9971_v18 }
 0x2b8   :  { %12053 = vst [vmem:[#allocation10_spill] sm:$0xff] %v9973_v45  ;;  %v2436_v31 = vpop.f32.mrb[8].mxu0  ;;  %v2525_v23 = vpop.f32.mrb[8].mxu1  ;;  %v8708_v32 = vpack.i.bf16 %v2557_v50, %v2556_v19  ;;  %v8703_v34 = vpack.i.bf16 %v9973_v45, %v9971_v18  ;;  %v9997_v46 = vpack.i.bf16 %v2556_v19, %v9973_v45 }
 0x2b9   :  { %v9984_v37 = vmax.f32 %v2436_v31, 0.0  ;;  %v2560_v24 = vmax.f32 %v2525_v23, 0.0  ;;  %v2438_v38 = vpop.f32.mrb[9].mxu0  ;;  %v2527_v39 = vpop.f32.mrb[9].mxu1 }
 0x2ba   :  { %v9986_v25 = vmax.f32 %v2438_v38, 0.0  ;;  %v2561_v40 = vmax.f32 %v2527_v39, 0.0  ;;  %8669 = vrot.lane.b32.xlu0 %v9946_v60, %s9310_s12  ;;  %8664 = vrot.lane.b32.xlu1 %v9950_v17, %s9310_s12  ;;  %v10130_v16 = vpop.permute.xlu1 %2750 }
 0x2bb   :  { %12054 = vst [vmem:[#allocation11_spill] sm:$0xff] %v9984_v37  ;;  %v9994_v41 = vpack.i.bf16 %v9984_v37, %v9971_v18  ;;  %v10026_v28 = vpack.c.bf16 %v2560_v24, %v2556_v19 }
 0x2bc   :  { %12055 = vst [vmem:[#allocation12_spill] sm:$0xff] %v9986_v25  ;;  %v9999_v47 = vpack.i.bf16 %v2561_v40, %v2560_v24  ;;  %v8723_v20 = vpack.i.bf16 %v9986_v25, %v9984_v37  ;;  %v10007_v56 = vpack.i.bf16 %v9986_v25, %v2557_v50  ;;  %v10022_v10 = vpack.c.bf16 %v2561_v40, %v2557_v50 }
 0x2bd   :  { %12058 = vst [vmem:[#allocation15_spill] sm:$0xff] %v10026_v28 }
 0x2be   :  { %8679 = vrot.lane.b32.xlu0 %v9967_v13, %s9307_s0  ;;  %8674 = vrot.lane.b32.xlu1 %v8673_v14, %s9307_s0  ;;  %12057 = vst [vmem:[#allocation14_spill] sm:$0xff] %v10022_v10 }
 0x2c2   :  { %8689 = vrot.lane.b32.xlu0 %v9967_v13, %s9309_s9  ;;  %8684 = vrot.lane.b32.xlu1 %v8673_v14, %s9309_s9 }
 0x2c6   :  { %8699 = vrot.lane.b32.xlu0 %v9967_v13, %s9310_s12  ;;  %8694 = vrot.lane.b32.xlu1 %v8673_v14, %s9310_s12 }
 0x2ca   :  { %8709 = vrot.lane.b32.xlu0 %v8708_v32, %s9307_s0  ;;  %8704 = vrot.lane.b32.xlu1 %v8703_v34, %s9307_s0 }
 0x2ce   :  { %8714 = vrot.lane.b32.xlu0 %v8703_v34, %s9309_s9  ;;  %8719 = vrot.lane.b32.xlu1 %v8708_v32, %s9309_s9 }
 0x2d2   :  { %8734 = vrot.lane.b32.xlu0 %v9999_v47, %s9307_s0  ;;  %8724 = vrot.lane.b32.xlu1 %v8723_v20, %s9307_s0 }
 0x2d6   :  { %8739 = vrot.lane.b32.xlu0 %v8708_v32, %s9310_s12  ;;  %8729 = vrot.lane.b32.xlu1 %v8703_v34, %s9310_s12 }
 0x2da   :  { %3209 = vrot.lane.b32.xlu0 %v9615_v5, %s9323_s7  ;;  %3207 = vrot.lane.b32.xlu1 %v9610_v4, %s9323_s7 }
 0x2de   :  { %8749 = vrot.lane.b32.xlu0 %v9946_v60, %s9312_s14  ;;  %8744 = vrot.lane.b32.xlu1 %v9950_v17, %s9312_s14  ;;  %v10115_v60 = vpop.permute.xlu0 %2748  ;;  %v10124_v17 = vld [vmem:[%s11882_s2 + $0x98] sm:$0xff] }
 0x2e2   :  { %8754 = vrot.lane.b32.xlu0 %v8723_v20, %s9309_s9  ;;  %8759 = vrot.lane.b32.xlu1 %v9999_v47, %s9309_s9  ;;  %v10132_v3 = vpop.permute.xlu0 %2752 }
 0x2e6   :  { %8769 = vrot.lane.b32.xlu0 %v9967_v13, %s9312_s14  ;;  %8764 = vrot.lane.b32.xlu1 %v8673_v14, %s9312_s14 }
 0x2ea   :  { %8774 = vrot.lane.b32.xlu0 %v8703_v34, %s9312_s14  ;;  %3211 = vrot.lane.b32.xlu1 %v9931_v42, %s9323_s7 }
 0x2ee   :  { %3213 = vrot.lane.b32.xlu0 %v9936_v43, %s9323_s7  ;;  %8779 = vrot.lane.b32.xlu1 %v8708_v32, %s9312_s14 }
 0x2f2   :  { %8789 = vrot.lane.b32.xlu0 %v9999_v47, %s9310_s12  ;;  %8784 = vrot.lane.b32.xlu1 %v8723_v20, %s9310_s12 }
 0x2f6   :  { %3499 = vrot.lane.b32.xlu0 %v9615_v5, %s9324_s8  ;;  %3497 = vrot.lane.b32.xlu1 %v9610_v4, %s9324_s8  ;;  %v10089_v4 = vld [vmem:[%s11882_s2 + $0x38] sm:$0xff]  ;;  %v10094_v5 = vld [vmem:[%s11882_s2 + $0x8] sm:$0xff] }
 0x2f7   :  { %12059 = vst [vmem:[#allocation16_spill] sm:$0xff] %v10089_v4  ;;  %12060 = vst [vmem:[#allocation17_spill] sm:$0xff] %v10094_v5 }
 0x2fa   :  { %3503 = vrot.lane.b32.xlu0 %v9936_v43, %s9324_s8  ;;  %3501 = vrot.lane.b32.xlu1 %v9931_v42, %s9324_s8 }
 0x2fe   :  { %8799 = vrot.lane.b32.xlu0 %v9980_v30, %s9315_s17  ;;  %8794 = vrot.lane.b32.xlu1 %v9961_v6, %s9315_s17 }
 0x302   :  { %8804 = vrot.lane.b32.xlu0 %v8723_v20, %s9312_s14  ;;  %8809 = vrot.lane.b32.xlu1 %v9999_v47, %s9312_s14 }
 0x306   :  { %8819 = vrot.lane.b32.xlu0 %v9965_v7, %s9315_s17  ;;  %8814 = vrot.lane.b32.xlu1 %v9967_v13, %s9315_s17 }
 0x30a   :  { %8829 = vrot.lane.b32.xlu0 %v9994_v41, %s9315_s17  ;;  %8824 = vrot.lane.b32.xlu1 %v9997_v46, %s9315_s17 }
 0x30e   :  { %3999 = vrot.lane.b32.xlu0 %v10089_v4, %s9322_s27  ;;  %3997 = vrot.lane.b32.xlu1 %v10094_v5, %s9322_s27 }
 0x312   :  { %8839 = vrot.lane.b32.xlu0 %v9980_v30, %s9317_s19  ;;  %8834 = vrot.lane.b32.xlu1 %v9961_v6, %s9317_s19 }
 0x316   :  { %8849 = vrot.lane.b32.xlu0 %v9965_v7, %s9317_s19  ;;  %8844 = vrot.lane.b32.xlu1 %v9967_v13, %s9317_s19 }
 0x31a   :  { %8854 = vrot.lane.b32.xlu0 %v9997_v46, %s9317_s19  ;;  %4001 = vrot.lane.b32.xlu1 %v10111_v52, %s9322_s27 }
 0x31e   :  { %4003 = vrot.lane.b32.xlu0 %v10124_v17, %s9322_s27  ;;  %8859 = vrot.lane.b32.xlu1 %v9994_v41, %s9317_s19 }
 0x322   :  { %8864 = vrot.lane.b32.xlu0 %v10007_v56, %s9315_s17  ;;  %8869 = vrot.lane.b32.xlu1 %v9999_v47, %s9315_s17 }
 0x324   :  { %v8645_v14 = vpop.permute.xlu1 %8644  ;;  %v8650_v19 = vpop.permute.xlu0 %8649 }
 0x325   :  { %v8647_v34 = vunpack.i.h.bf16 %v8645_v14  ;;  %v8646_v24 = vunpack.i.l.bf16 %v8645_v14  ;;  %v8652_v38 = vunpack.i.h.bf16 %v8650_v19  ;;  %v8651_v39 = vunpack.i.l.bf16 %v8650_v19 }
 0x326   :  { %4289 = vrot.lane.b32.xlu0 %v10089_v4, %s9323_s7  ;;  %4287 = vrot.lane.b32.xlu1 %v10094_v5, %s9323_s7 }
 0x327   :  { %v2722_v21 = vsel %vm12061_vm6, 0.0, %v8646_v24  ;;  %v2695_v2 = vsel %vm12062_vm7, %v8647_v34, %v8651_v39  ;;  %v2694_v14 = vsel %vm12063_vm8, %v8646_v24, %v8647_v34  ;;  %v2696_v19 = vsel %vm12064_vm12, %v8651_v39, %v8652_v38  ;;  %vm10177_vm6 = vmpackc.low %vm9513_vm3, %vm9513_vm3 }
 0x328   :  { %v10142_v50 = vpop.permute.xlu1 %8654  ;;  %v10144_v31 = vpop.permute.xlu0 %8659  ;;  %v12069_v34 = vmov 0  ;;  %vm12073_vm3 = vcmask 138240   ;;  %vm12076_vm8 = vmmov %vm12062_vm7 }
 0x329   :  { %v12070_v34 = vsel %vm10177_vm6, 4294967295, %v12069_v34  ;;  %v8657_v38 = vunpack.i.h.bf16 %v10142_v50  ;;  %v8656_v39 = vunpack.i.l.bf16 %v10142_v50  ;;  %vm12077_vm12 = vmmov %vm12062_vm7 }
 0x32a   :  { %8879 = vrot.lane.b32.xlu0 %v9980_v30, %s9319_s21  ;;  %8874 = vrot.lane.b32.xlu1 %v9961_v6, %s9319_s21 }
 0x32c   :  { %v10150_v23 = vpop.permute.xlu1 %8664  ;;  %v10152_v32 = vpop.permute.xlu0 %8669 }
 0x32e   :  { %8889 = vrot.lane.b32.xlu0 %v9965_v7, %s9319_s21  ;;  %8884 = vrot.lane.b32.xlu1 %v9967_v13, %s9319_s21 }
 0x330   :  { %v8675_v40 = vpop.permute.xlu1 %8674  ;;  %v8680_v20 = vpop.permute.xlu0 %8679 }
 0x331   :  { %v8677_v26 = vunpack.i.h.bf16 %v8675_v40  ;;  %v8676_v27 = vunpack.i.l.bf16 %v8675_v40  ;;  %v8682_v9 = vunpack.i.h.bf16 %v8680_v20  ;;  %v8681_v63 = vunpack.i.l.bf16 %v8680_v20 }
 0x332   :  { %8899 = vrot.lane.b32.xlu0 %v9999_v47, %s9317_s19  ;;  %8894 = vrot.lane.b32.xlu1 %v10007_v56, %s9317_s19 }
 0x333   :  { %v2723_v12 = vsel %vm12065_vm9, 0.0, %v8676_v27  ;;  %v2698_v40 = vsel %vm12066_vm11, %v8677_v26, %v8681_v63  ;;  %v2697_v20 = vsel %vm12067_vm1, %v8676_v27, %v8677_v26  ;;  %v2699_v11 = vsel %vm12068_vm15, %v8681_v63, %v8682_v9  ;;  %vm10184_vm1 = vmpackc.low %vm9521_vm4, %vm9521_vm4 }
 0x334   :  { %v7915_v22 = vpack.c.bf16 %v2723_v12, %v2722_v21  ;;  %v7925_v29 = vpack.c.bf16 %v2698_v40, %v2695_v2  ;;  %v10170_v44 = vpop.permute.xlu1 %8684  ;;  %v10172_v36 = vpop.permute.xlu0 %8689  ;;  %v7913_v28 = vpack.c.bf16 %v2697_v20, %v2694_v14  ;;  %v7923_v18 = vpack.c.bf16 %v2699_v11, %v2696_v19  ;;  %vm12074_vm4 = vmmov %vm12073_vm3 }
 0x335   :  { %v12071_v26 = vmov 0  ;;  %v8692_v12 = vunpack.i.h.bf16 %v10172_v36  ;;  %vm12075_vm15 = vmmov %vm12062_vm7 }
 0x336   :  { %v12072_v26 = vsel %vm10184_vm1, 4294967295, %v12071_v26  ;;  %7914 = vmatprep.subr.bf16.mxu0 %v7913_v28  ;;  %8904 = vrot.lane.b32.xlu0 %v9997_v46, %s9319_s21  ;;  %vm12078_vm9 = vmmov %vm12062_vm7 }
 0x337   :  { %4291 = vrot.lane.b32.xlu1 %v10111_v52, %s9323_s7  ;;  %7924 = vmatprep.subr.bf16.mxu1 %v7923_v18  ;;  %v8691_v18 = vunpack.i.l.bf16 %v10172_v36  ;;  %v8662_v36 = vunpack.i.h.bf16 %v10144_v31  ;;  %vm12079_vm11 = vmmov %vm12062_vm7 }
 0x338   :  { %7917 = vmatpush1.bf16.msk.msra.mxu0 %vm10177_vm6, %v7915_v22  ;;  %7927 = vmatpush1.bf16.msk.msra.mxu1 %vm10184_vm1, %v7925_v29  ;;  %v10196_v2 = vpop.permute.xlu1 %8694  ;;  %v10198_v33 = vpop.permute.xlu0 %8699  ;;  %v8687_v22 = vunpack.i.h.bf16 %v10170_v44  ;;  %v8686_v29 = vunpack.i.l.bf16 %v10170_v44  ;;  %v8661_v44 = vunpack.i.l.bf16 %v10144_v31 }
 0x339   :  { %v2619_v19 = vsel %vm12074_vm4, %v8691_v18, %v8692_v12 }
 0x33a   :  { %4293 = vrot.lane.b32.xlu0 %v10124_v17, %s9323_s7  ;;  %v2617_v14 = vsel %vm12073_vm3, %v8686_v29, %v8687_v22  ;;  %vm12080_vm3 = vmmov %vm12062_vm7 }
 0x33b   :  { %8909 = vrot.lane.b32.xlu1 %v9994_v41, %s9319_s21  ;;  %vm12081_vm4 = vmmov %vm12080_vm3 }
 0x33c   :  { %v8705_v35 = vpop.permute.xlu1 %8704  ;;  %v8710_v11 = vpop.permute.xlu0 %8709 }
 0x33d   :  { %v8707_v9 = vunpack.i.h.bf16 %v8705_v35  ;;  %v8706_v27 = vunpack.i.l.bf16 %v8705_v35  ;;  %v8712_v28 = vunpack.i.h.bf16 %v8710_v11  ;;  %v8711_v24 = vunpack.i.l.bf16 %v8710_v11 }
 0x33e   :  { %4579 = vrot.lane.b32.xlu0 %v10089_v4, %s9324_s8 }
 0x33f   :  { %4577 = vrot.lane.b32.xlu1 %v10094_v5, %s9324_s8  ;;  %v2724_v37 = vsel %vm12075_vm15, 0.0, %v8706_v27  ;;  %v2701_v50 = vsel %vm12062_vm7, %v8707_v9, %v8711_v24  ;;  %v2700_v10 = vsel %vm12076_vm8, %v8706_v27, %v8707_v9  ;;  %v2702_v31 = vsel %vm12077_vm12, %v8711_v24, %v8712_v28 }
 0x340   :  { %v10212_v21 = vpop.permute.xlu1 %8719  ;;  %v10214_v63 = vpop.permute.xlu0 %8714  ;;  %vm12082_vm15 = vcmp.ge.s32.totalorder %v9553_v49, 1  ;;  %v12083_v28 = vmov 0  ;;  %vm12085_vm8 = vcmp.ge.s32.totalorder %v9570_v54, 1 }
 0x341   :  { %vm10245_vm7 = vmpackc.low %vm12082_vm15, %vm12082_vm15  ;;  %vm11928_vm15 = vcmask 261120  }
 0x342   :  { %8924 = vrot.lane.b32.xlu0 %v9999_v47, %s9319_s21  ;;  %v12084_v28 = vsel %vm10245_vm7, 4294967295, %v12083_v28  ;;  %vm10252_vm12 = vmpackc.low %vm12085_vm8, %vm12085_vm8 }
 0x343   :  { %8914 = vrot.lane.b32.xlu1 %v10007_v56, %s9319_s21 }
 0x344   :  { %v8725_v40 = vpop.permute.xlu1 %8724  ;;  %v8735_v20 = vpop.permute.xlu0 %8734 }
 0x345   :  { %v8727_v35 = vunpack.i.h.bf16 %v8725_v40  ;;  %v8726_v11 = vunpack.i.l.bf16 %v8725_v40  ;;  %v8737_v4 = vunpack.i.h.bf16 %v8735_v20  ;;  %v8736_v5 = vunpack.i.l.bf16 %v8735_v20 }
 0x346   :  { %8929 = vrot.lane.b32.xlu0 %v9980_v30, %s9321_s23 }
 0x347   :  { %v2725_v45 = vsel %vm12078_vm9, 0.0, %v8726_v11  ;;  %v2704_v12 = vsel %vm12079_vm11, %v8727_v35, %v8736_v5  ;;  %8919 = vrot.lane.b32.xlu1 %v9961_v6, %s9321_s23  ;;  %v2703_v40 = vsel %vm12080_vm3, %v8726_v11, %v8727_v35  ;;  %v2705_v20 = vsel %vm12081_vm4, %v8736_v5, %v8737_v4 }
 0x348   :  { %v7920_v25 = vpack.c.bf16 %v2725_v45, %v2724_v37  ;;  %v7930_v0 = vpack.c.bf16 %v2704_v12, %v2701_v50  ;;  %v10238_v51 = vpop.permute.xlu1 %8729  ;;  %v10240_v30 = vpop.permute.xlu0 %8739  ;;  %v7918_v9 = vpack.c.bf16 %v2703_v40, %v2700_v10  ;;  %v7928_v27 = vpack.c.bf16 %v2705_v20, %v2702_v31 }
 0x349   :  { %vm12088_vm9 = vcmask 138240   ;;  %v8722_v35 = vunpack.i.h.bf16 %v10212_v21  ;;  %v8666_v40 = vunpack.i.l.bf16 %v10150_v23  ;;  %v8671_v20 = vunpack.i.l.bf16 %v10152_v32 }
 0x34a   :  { %v2614_v45 = vsel %vm12088_vm9, %v8656_v39, %v8657_v38  ;;  %vm12089_vm11 = vmmov %vm12088_vm9  ;;  %8939 = vrot.lane.b32.xlu0 %v9965_v7, %s9321_s23  ;;  %7919 = vmatprep.subr.bf16.mxu0 %v7918_v9  ;;  %v8732_v8 = vunpack.i.h.bf16 %v10238_v51 }
 0x34b   :  { %v2616_v37 = vsel %vm12089_vm11, %v8661_v44, %v8662_v36  ;;  %vm12090_vm3 = vmmov %vm12088_vm9  ;;  %8934 = vrot.lane.b32.xlu1 %v9967_v13, %s9321_s23  ;;  %7929 = vmatprep.subr.bf16.mxu1 %v7928_v27  ;;  %v7933_v4 = vpack.c.bf16 %v2617_v14, %v2614_v45  ;;  %v12093_v13 = vmov 0  ;;  %v8696_v14 = vunpack.i.l.bf16 %v10196_v2 }
 0x34c   :  { %v2643_v10 = vsel %vm12090_vm3, 0.0, %v8686_v29  ;;  %v7945_v5 = vpack.c.bf16 %v2619_v19, %v2616_v37  ;;  %vm12091_vm4 = vmmov %vm12090_vm3  ;;  %7922 = vmatpush1.bf16.msk.msra.mxu0 %vm10177_vm6, %v7920_v25  ;;  %7932 = vmatpush1.bf16.msk.msra.mxu1 %vm10184_vm1, %v7930_v0  ;;  %v10268_v36 = vpop.permute.xlu1 %3207  ;;  %v10270_v7 = vpop.permute.xlu0 %3209  ;;  %v8702_v19 = vunpack.i.h.bf16 %v10198_v33  ;;  %vm12103_vm1 = vcmask 121856  }
 0x34d   :  { %v2618_v24 = vsel %vm12091_vm4, %v8687_v22, %v8691_v18  ;;  %vm12092_vm8 = vmmov %vm12090_vm3  ;;  %7935 = vmatprep.subr.msk.bf16.mxu0 %vm10245_vm7, %v7933_v4  ;;  %v12096_v22 = vmov 0 }
 0x34e   :  { %v2642_v29 = vsel %vm12092_vm8, 0.0, %v8656_v39  ;;  %7947 = vmatprep.subr.msk.bf16.mxu1 %vm10252_vm12, %v7945_v5  ;;  %vm10280_vm9 = vmpackc.low %vm9576_vm10, %vm9576_vm10  ;;  %8944 = vrot.lane.b32.xlu0 %v9997_v46, %s9321_s23  ;;  %v12098_v46 = vmov 0.0   ;;  %v8716_v39 = vunpack.i.l.bf16 %v10214_v63 }
 0x34f   :  { %v12094_v13 = vsel %vm10280_vm9, 4294967295, %v12093_v13  ;;  %vm12095_vm11 = vmmov %vm12090_vm3  ;;  %v7936_v0 = vpack.c.bf16 %v2643_v10, %v2642_v29  ;;  %4581 = vrot.lane.b32.xlu1 %v10111_v52, %s9324_s8  ;;  %7593 = vmatmul.mubr.msk.f32.vlgmr.msra.gmra.mrb[10].mxu0 %vm11928_vm15, %v10113_v58 }
 0x350   :  { %v2615_v25 = vsel %vm12095_vm11, %v8657_v38, %v8661_v44  ;;  %vm10290_vm3 = vmpackc.low %vm9597_vm13, %vm9597_vm13  ;;  %7601 = vmatmul.mubr.msk.f32.vlgmr.msra.gmra.mrb[10].mxu1 %vm11928_vm15, %v10113_v58  ;;  %v10302_v55 = vpop.permute.xlu1 %8744  ;;  %v10304_v62 = vpop.permute.xlu0 %8749  ;;  %2833 = vmatprep.mubr.f32.mxu0 %v12098_v46  ;;  %v8717_v38 = vunpack.i.h.bf16 %v10214_v63  ;;  %v8667_v58 = vunpack.i.h.bf16 %v10150_v23  ;;  %v8697_v44 = vunpack.i.h.bf16 %v10196_v2 }
 0x351   :  { %v12097_v22 = vsel %vm10290_vm3, 4294967295, %v12096_v22  ;;  %v7948_v18 = vpack.c.bf16 %v2618_v24, %v2615_v25  ;;  %7938 = vmatpush1.bf16.msk.msra.mxu0 %vm10280_vm9, %v7936_v0  ;;  %2922 = vmatprep.mubr.f32.mxu1 %v12098_v46  ;;  %v8701_v63 = vunpack.i.l.bf16 %v10198_v33  ;;  %v8672_v33 = vunpack.i.h.bf16 %v10152_v32  ;;  %vm12099_vm10 = vmmov %vm12091_vm4 }
 0x352   :  { %8959 = vrot.lane.b32.xlu0 %v9999_v47, %s9321_s23  ;;  %v8721_v47 = vunpack.i.l.bf16 %v10212_v21  ;;  %v2620_v21 = vsel %vm12099_vm10, %v8716_v39, %v8717_v38  ;;  %vm12100_vm13 = vmmov %vm12091_vm4  ;;  %v3162_v23 = vsel %vm12103_vm1, %v8696_v14, %v8697_v44 }
 0x353   :  { %7950 = vmatpush1.bf16.msk.msra.mxu1 %vm10290_vm3, %v7948_v18  ;;  %8949 = vrot.lane.b32.xlu1 %v10007_v56, %s9321_s23  ;;  %vm12101_vm8 = vmmov %vm12091_vm4  ;;  %v12111_v18 = vmov 0 }
 0x354   :  { %7594 = vmatmul.mubr.msk.f32.gmra.mrb[12].mxu0 %vm11928_vm15, %v10115_v60  ;;  %7602 = vmatmul.mubr.msk.f32.gmra.mrb[12].mxu1 %vm11928_vm15, %v10115_v60  ;;  %v8760_v11 = vpop.permute.xlu1 %8759  ;;  %v8755_v50 = vpop.permute.xlu0 %8754  ;;  %vm12102_vm11 = vmmov %vm12091_vm4  ;;  %v2622_v24 = vsel %vm12091_vm4, %v8721_v47, %v8722_v35 }
 0x355   :  { %2839 = vmatprep.mubr.f32.mxu0 %v12098_v46  ;;  %v8762_v2 = vunpack.i.h.bf16 %v8760_v11  ;;  %v8761_v56 = vunpack.i.l.bf16 %v8760_v11  ;;  %v8757_v31 = vunpack.i.h.bf16 %v8755_v50  ;;  %v8756_v12 = vunpack.i.l.bf16 %v8755_v50  ;;  %2928 = vmatprep.mubr.f32.mxu1 %v12098_v46  ;;  %vm12104_vm10 = vmmov %vm12091_vm4 }
 0x356   :  { %4583 = vrot.lane.b32.xlu0 %v10124_v17, %s9324_s8  ;;  %v2621_v32 = vsel %vm12104_vm10, %v8717_v38, %v8721_v47  ;;  %vm12105_vm6 = vmmov %vm12091_vm4 }
 0x357   :  { %v2625_v60 = vsel %vm12100_vm13, %v8761_v56, %v8762_v2  ;;  %v2624_v9 = vsel %vm12091_vm4, %v8757_v31, %v8761_v56  ;;  %v2623_v27 = vsel %vm12101_vm8, %v8756_v12, %v8757_v31  ;;  %v2645_v45 = vsel %vm12102_vm11, 0.0, %v8756_v12  ;;  %8954 = vrot.lane.b32.xlu1 %v9994_v41, %s9321_s23  ;;  %vm12106_vm13 = vmmov %vm12103_vm1 }
 0x358   :  { %7595 = vmatmul.mubr.msk.f32.gmra.mrb[14].mxu0 %vm11928_vm15, %v10130_v16  ;;  %v2644_v37 = vsel %vm12105_vm6, 0.0, %v8716_v39  ;;  %7603 = vmatmul.mubr.msk.f32.gmra.mrb[14].mxu1 %vm11928_vm15, %v10130_v16  ;;  %v10348_v10 = vpop.permute.xlu1 %8764  ;;  %v10350_v4 = vpop.permute.xlu0 %8769  ;;  %v7939_v5 = vpack.c.bf16 %v2623_v27, %v2620_v21  ;;  %v3164_v41 = vsel %vm12106_vm13, %v8701_v63, %v8702_v19  ;;  %v7954_v25 = vpack.c.bf16 %v2624_v9, %v2621_v32  ;;  %vm12113_vm10 = vmmov %vm12106_vm13  ;;  %v10443_v9 = vld [vmem:[%s11882_s2 + $0x58] sm:$0xff] }
 0x359   :  { %2845 = vmatprep.mubr.f32.mxu0 %v12098_v46  ;;  %v7942_v29 = vpack.c.bf16 %v2645_v45, %v2644_v37  ;;  %2934 = vmatprep.mubr.f32.mxu1 %v12098_v46  ;;  %vm12107_vm6 = vcmp.le.s32.totalorder %v9553_v49, 14  ;;  %v12108_v16 = vmov 0  ;;  %v7951_v0 = vpack.c.bf16 %v2625_v60, %v2622_v24  ;;  %vm12114_vm13 = vmmov %vm12113_vm10  ;;  %v10438_v60 = vld [vmem:[%s11882_s2 + $0x28] sm:$0xff]  ;;  %v9304_v37 = vld [vmem:[%s11882_s2 + $0x30] sm:$0xff] }
 0x35a   :  { %vm10359_vm1 = vmpackc.low %vm12107_vm6, %vm12107_vm6  ;;  %7941 = vmatprep.subr.msk.bf16.mxu0 %vm10245_vm7, %v7939_v5  ;;  %vm12110_vm8 = vcmp.le.s32.totalorder %v9570_v54, 14  ;;  %v3159_v38 = vsel %vm12113_vm10, %v8666_v40, %v8667_v58  ;;  %v3161_v49 = vsel %vm12114_vm13, %v8671_v20, %v8672_v33  ;;  %v8731_v2 = vunpack.i.l.bf16 %v10238_v51 }
 0x35b   :  { %v12109_v16 = vsel %vm10359_vm1, 4294967295, %v12108_v16  ;;  %vm10368_vm11 = vmpackc.low %vm12110_vm8, %vm12110_vm8  ;;  %7953 = vmatprep.subr.msk.bf16.mxu1 %vm10252_vm12, %v7951_v0  ;;  %v7957_v47 = vpack.c.bf16 %v3162_v23, %v3159_v38  ;;  %v7969_v11 = vpack.c.bf16 %v3164_v41, %v3161_v49  ;;  %7944 = vmatpush1.bf16.msk.msra.mxu0 %vm10280_vm9, %v7942_v29  ;;  %v8742_v56 = vunpack.i.h.bf16 %v10240_v30 }
 0x35c   :  { %v12112_v18 = vsel %vm10368_vm11, 4294967295, %v12111_v18  ;;  %vm12115_vm4 = vmmov %vm12113_vm10  ;;  %7596 = vmatmul.mubr.msk.f32.gmra.mrb[16].mxu0 %vm11928_vm15, %v10132_v3  ;;  %7604 = vmatmul.mubr.msk.f32.gmra.mrb[16].mxu1 %vm11928_vm15, %v10132_v3  ;;  %v10382_v54 = vpop.permute.xlu1 %3211  ;;  %v10384_v35 = vpop.permute.xlu0 %8774  ;;  %v12119_v3 = vmov 0  ;;  %v8741_v31 = vunpack.i.l.bf16 %v10240_v30  ;;  %v9325_v21 = vmov 0  }
 0x35d   :  { %v3188_v39 = vsel %vm12115_vm4, 0.0, %v8696_v14  ;;  %vm12116_vm6 = vmmov %vm12115_vm4  ;;  %7956 = vmatpush1.bf16.msk.msra.mxu1 %vm10290_vm3, %v7954_v25  ;;  %7959 = vmatprep.subr.msk.bf16.mxu0 %vm10359_vm1, %v7957_v47  ;;  %v8767_v27 = vunpack.i.h.bf16 %v10348_v10  ;;  %v8766_v45 = vunpack.i.l.bf16 %v10348_v10  ;;  %v8772_v23 = vunpack.i.h.bf16 %v10350_v4 }
 0x35e   :  { %v3163_v19 = vsel %vm12116_vm6, %v8697_v44, %v8701_v63  ;;  %vm12117_vm8 = vmmov %vm12115_vm4  ;;  %7971 = vmatprep.subr.msk.bf16.mxu1 %vm10368_vm11, %v7969_v11  ;;  %3013 = vmatprep.mubr.f32.mxu0 %v12098_v46  ;;  %v8771_v32 = vunpack.i.l.bf16 %v10350_v4  ;;  %v8747_v10 = vunpack.i.h.bf16 %v10302_v55  ;;  %v8746_v4 = vunpack.i.l.bf16 %v10302_v55  ;;  %v10469_v55 = vld [vmem:[%s11882_s2 + $0x88] sm:$0xff] }
 0x35f   :  { %v3187_v50 = vsel %vm12117_vm8, 0.0, %v8666_v40  ;;  %vm12118_vm10 = vmmov %vm12115_vm4  ;;  %3102 = vmatprep.mubr.f32.mxu1 %v12098_v46  ;;  %8963 = vset.pattern.permute.xlu1 %v9325_v21  ;;  %v8752_v38 = vunpack.i.h.bf16 %v10304_v62  ;;  %v8751_v49 = vunpack.i.l.bf16 %v10304_v62  ;;  %vm12155_vm9 = vcmask 261120  }
 0x360   :  { %v3160_v14 = vsel %vm12118_vm10, %v8667_v58, %v8671_v20  ;;  %vm10395_vm13 = vmpackc.low %vm9628_vm0, %vm9628_vm0  ;;  %v7960_v44 = vpack.c.bf16 %v3188_v39, %v3187_v50  ;;  %v12121_v58 = vmov 0  ;;  %7613 = vmatmul.mubr.msk.f32.vlgmr.msra.gmra.mrb[10].mxu0 %vm11928_vm15, %v9303_v15  ;;  %7625 = vmatmul.mubr.msk.f32.vlgmr.msra.gmra.mrb[10].mxu1 %vm11928_vm15, %v9303_v15  ;;  %v10421_v12 = vpop.permute.xlu1 %8779  ;;  %v10423_v40 = vpop.permute.xlu0 %3213 }
 0x361   :  { %v12120_v3 = vsel %vm10395_vm13, 4294967295, %v12119_v3  ;;  %v7972_v63 = vpack.c.bf16 %v3163_v19, %v3160_v14  ;;  %vm10406_vm4 = vmpackc.low %vm9656_vm2, %vm9656_vm2  ;;  %3019 = vmatprep.mubr.f32.mxu0 %v12098_v46  ;;  %3108 = vmatprep.mubr.f32.mxu1 %v12098_v46 }
 0x362   :  { %v12122_v58 = vsel %vm10406_vm4, 4294967295, %v12121_v58  ;;  %7962 = vmatpush1.bf16.msk.msra.mxu0 %vm10395_vm13, %v7960_v44  ;;  %vm12123_vm2 = vmmov %vm12116_vm6  ;;  %8964 = vset.pattern.permute.xlu0 %v9325_v21 }
 0x363   :  { %7974 = vmatpush1.bf16.msk.msra.mxu1 %vm10406_vm4, %v7972_v63  ;;  %v3165_v51 = vsel %vm12123_vm2, %v8731_v2, %v8732_v8  ;;  %vm12124_vm0 = vmmov %vm12123_vm2  ;;  %5083 = vperm.xlu1 %8963, %v10438_v60  }
 0x364   :  { %v3189_v30 = vsel %vm12124_vm0, 0.0, %v8731_v2  ;;  %vm12125_vm6 = vmmov %vm12124_vm0  ;;  %7614 = vmatmul.mubr.msk.f32.gmra.mrb[12].mxu0 %vm11928_vm15, %v9304_v37  ;;  %7626 = vmatmul.mubr.msk.f32.gmra.mrb[12].mxu1 %vm11928_vm15, %v9304_v37  ;;  %v8785_v5 = vpop.permute.xlu1 %8784  ;;  %v8790_v41 = vpop.permute.xlu0 %8789 }
 0x365   :  { %v3166_v33 = vsel %vm12125_vm6, %v8732_v8, %v8741_v31  ;;  %vm12126_vm8 = vmmov %vm12124_vm0  ;;  %v8787_v24 = vunpack.i.h.bf16 %v8785_v5  ;;  %v8786_v29 = vunpack.i.l.bf16 %v8785_v5  ;;  %v8792_v25 = vunpack.i.h.bf16 %v8790_v41  ;;  %3025 = vmatprep.mubr.f32.mxu0 %v12098_v46  ;;  %3114 = vmatprep.mubr.f32.mxu1 %v12098_v46 }
 0x366   :  { %v3167_v20 = vsel %vm12126_vm8, %v8741_v31, %v8742_v56  ;;  %v8791_v0 = vunpack.i.l.bf16 %v8790_v41  ;;  %5088 = vperm.xlu0 %8964, %v10443_v9   ;;  %vm12127_vm10 = vmmov %vm12124_vm0  ;;  %vm12130_vm8 = vcmask 7168  }
 0x367   :  { %v3168_v39 = vsel %vm12127_vm10, %v8786_v29, %v8787_v24  ;;  %vm12128_vm2 = vmmov %vm12124_vm0  ;;  %v3452_v50 = vsel %vm12130_vm8, %v8766_v45, %v8767_v27  ;;  %5093 = vperm.xlu1 %8963, %v10469_v55  }
 0x368   :  { %v3190_v19 = vsel %vm12128_vm2, 0.0, %v8786_v29  ;;  %v3169_v47 = vsel %vm12124_vm0, %v8787_v24, %v8791_v0  ;;  %vm12129_vm6 = vmmov %vm12124_vm0  ;;  %7615 = vmatmul.mubr.msk.f32.gmra.mrb[14].mxu0 %vm11928_vm15, %v9931_v42  ;;  %7627 = vmatmul.mubr.msk.f32.gmra.mrb[14].mxu1 %vm11928_vm15, %v9931_v42  ;;  %v10476_v14 = vpop.permute.xlu1 %3497  ;;  %v10478_v44 = vpop.permute.xlu0 %3499  ;;  %v7963_v63 = vpack.c.bf16 %v3168_v39, %v3165_v51  ;;  %v8777_v29 = vunpack.i.h.bf16 %v10384_v35 }
 0x369   :  { %v3170_v11 = vsel %vm12129_vm6, %v8791_v0, %v8792_v25  ;;  %v7966_v62 = vpack.c.bf16 %v3190_v19, %v3189_v30  ;;  %vm12131_vm10 = vmmov %vm12130_vm8  ;;  %v7978_v2 = vpack.c.bf16 %v3169_v47, %v3166_v33  ;;  %3031 = vmatprep.mubr.f32.mxu0 %v12098_v46  ;;  %3120 = vmatprep.mubr.f32.mxu1 %v12098_v46  ;;  %v8776_v25 = vunpack.i.l.bf16 %v10384_v35 }
 0x36a   :  { %v3454_v8 = vsel %vm12131_vm10, %v8771_v32, %v8772_v23  ;;  %v7975_v56 = vpack.c.bf16 %v3170_v11, %v3167_v20  ;;  %vm12132_vm2 = vmmov %vm12130_vm8  ;;  %7965 = vmatprep.subr.msk.bf16.mxu0 %vm10359_vm1, %v7963_v63  ;;  %v10505_v23 = vld [vmem:[%s11882_s2 + $0xb8] sm:$0xff]  ;;  %vm12136_vm10 = vcmp.ge.s32.totalorder %v9547_v48, 1  ;;  %v8781_v0 = vunpack.i.l.bf16 %v10421_v12 }
 0x36b   :  { %v3449_v31 = vsel %vm12132_vm2, %v8746_v4, %v8747_v10  ;;  %vm12133_vm0 = vmmov %vm12132_vm2  ;;  %7968 = vmatpush1.bf16.msk.msra.mxu0 %vm10395_vm13, %v7966_v62  ;;  %5098 = vperm.xlu1 %8963, %v10505_v23  }
 0x36c   :  { %v3451_v42 = vsel %vm12133_vm0, %v8751_v49, %v8752_v38  ;;  %7977 = vmatprep.subr.msk.bf16.mxu1 %vm10368_vm11, %v7975_v56  ;;  %v7981_v15 = vpack.c.bf16 %v3452_v50, %v3449_v31  ;;  %vm12134_vm6 = vmmov %vm12133_vm0  ;;  %7616 = vmatmul.mubr.msk.f32.gmra.mrb[16].mxu0 %vm11928_vm15, %v9936_v43  ;;  %v10498_v33 = vpop.permute.xlu1 %3501  ;;  %v10500_v20 = vpop.permute.xlu0 %3503 }
 0x36d   :  { %v3478_v51 = vsel %vm12134_vm6, 0.0, %v8766_v45  ;;  %vm12135_vm8 = vmmov %vm12133_vm0  ;;  %7628 = vmatmul.mubr.msk.f32.gmra.mrb[16].mxu1 %vm11928_vm15, %v9936_v43  ;;  %v7993_v21 = vpack.c.bf16 %v3454_v8, %v3451_v42  ;;  %vm12140_vm0 = vcmp.ge.s32.totalorder %v9563_v53, 1  ;;  %v12141_v43 = vmov 0  ;;  %3287 = vmatprep.mubr.f32.mxu0 %v12098_v46 }
 0x36e   :  { %v3453_v30 = vsel %vm12135_vm8, %v8767_v27, %v8771_v32  ;;  %vm10510_vm2 = vmpackc.low %vm12136_vm10, %vm12136_vm10  ;;  %v12137_v27 = vmov 0  ;;  %7980 = vmatpush1.bf16.msk.msra.mxu1 %vm10406_vm4, %v7978_v2  ;;  %7983 = vmatprep.subr.msk.bf16.mxu0 %vm10245_vm7, %v7981_v15  ;;  %v3477_v45 = vsel %vm12135_vm8, 0.0, %v8746_v4  ;;  %vm12145_vm10 = vcmask 261120  }
 0x36f   :  { %v12138_v27 = vsel %vm10510_vm2, 4294967295, %v12137_v27  ;;  %vm10521_vm6 = vmpackc.low %vm12140_vm0, %vm12140_vm0  ;;  %7995 = vmatprep.subr.msk.bf16.mxu1 %vm10252_vm12, %v7993_v21  ;;  %v7984_v37 = vpack.c.bf16 %v3478_v51, %v3477_v45  ;;  %3376 = vmatprep.mubr.f32.mxu1 %v12098_v46  ;;  %v12160_v21 = vpack.c.bf16 %v9954_v1, %v9944_v57 }
 0x370   :  { %12139 = vst [vmem:[#allocation18_spill] sm:$0xff] %v12138_v27  ;;  %v12142_v43 = vsel %vm10521_vm6, 4294967295, %v12141_v43  ;;  %vm12144_vm15 = vmmov %vm12135_vm8  ;;  %7637 = vmatmul.mubr.msk.f32.vlgmr.msra.gmra.mrb[10].mxu0 %vm12145_vm10, %v10268_v36  ;;  %v10536_v41 = vpop.permute.xlu1 %8794  ;;  %v10538_v24 = vpop.permute.xlu0 %8799 }
 0x371   :  { %12143 = vst [vmem:[#allocation19_spill] sm:$0xff] %v12142_v43  ;;  %v3450_v32 = vsel %vm12144_vm15, %v8747_v10, %v8751_v49  ;;  %vm12146_vm0 = vmmov %vm12145_vm10  ;;  %7986 = vmatpush1.bf16.msk.msra.mxu0 %vm10510_vm2, %v7984_v37  ;;  %3293 = vmatprep.mubr.f32.mxu0 %v12098_v46  ;;  %vm12149_vm10 = vcmask 7168   ;;  %v8802_v37 = vunpack.i.h.bf16 %v10538_v24  ;;  %v8801_v57 = vunpack.i.l.bf16 %v10538_v24  ;;  %v12168_v24 = vld [vmem:[#allocation12_spill] sm:$0xff] }
 0x372   :  { %v7996_v5 = vpack.c.bf16 %v3453_v30, %v3450_v32  ;;  %7649 = vmatmul.mubr.msk.f32.vlgmr.msra.gmra.mrb[10].mxu1 %vm12146_vm0, %v10268_v36  ;;  %v8782_v36 = vunpack.i.h.bf16 %v10421_v12  ;;  %vm12147_vm15 = vmmov %vm12146_vm0  ;;  %v3455_v19 = vsel %vm12149_vm10, %v8776_v25, %v8777_v29  ;;  %v8796_v32 = vunpack.i.l.bf16 %v10536_v41 }
 0x373   :  { %3382 = vmatprep.mubr.f32.mxu1 %v12098_v46  ;;  %vm12148_vm8 = vmmov %vm12146_vm0 }
 0x374   :  { %7998 = vmatpush1.bf16.msk.msra.mxu1 %vm10521_vm6, %v7996_v5  ;;  %7638 = vmatmul.mubr.msk.f32.gmra.mrb[12].mxu0 %vm12147_vm15, %v10270_v7  ;;  %v8810_v10 = vpop.permute.xlu1 %8809  ;;  %v8805_v4 = vpop.permute.xlu0 %8804  ;;  %vm12150_vm0 = vmmov %vm12149_vm10 }
 0x375   :  { %v8812_v38 = vunpack.i.h.bf16 %v8810_v10  ;;  %v8811_v49 = vunpack.i.l.bf16 %v8810_v10  ;;  %v8807_v39 = vunpack.i.h.bf16 %v8805_v4  ;;  %v8806_v35 = vunpack.i.l.bf16 %v8805_v4  ;;  %3299 = vmatprep.mubr.f32.mxu0 %v12098_v46  ;;  %vm12151_vm4 = vmmov %vm12150_vm0 }
 0x376   :  { %7650 = vmatmul.mubr.msk.f32.gmra.mrb[12].mxu1 %vm12148_vm8, %v10270_v7  ;;  %v3479_v12 = vsel %vm12150_vm0, 0.0, %v8776_v25  ;;  %vm12152_vm15 = vmmov %vm12150_vm0 }
 0x377   :  { %3388 = vmatprep.mubr.f32.mxu1 %v12098_v46  ;;  %v3460_v47 = vsel %vm12151_vm4, %v8811_v49, %v8812_v38  ;;  %v3459_v11 = vsel %vm12152_vm15, %v8807_v39, %v8811_v49  ;;  %vm12153_vm13 = vmmov %vm12150_vm0  ;;  %v12172_v38 = vld [vmem:[#allocation14_spill] sm:$0xff] }
 0x378   :  { %v3458_v7 = vsel %vm12153_vm13, %v8806_v35, %v8807_v39  ;;  %vm12154_vm8 = vmmov %vm12150_vm0  ;;  %7639 = vmatmul.mubr.msk.f32.gmra.mrb[14].mxu0 %vm12155_vm9, %v10382_v54  ;;  %v10566_v63 = vpop.permute.xlu1 %8814  ;;  %v10568_v8 = vpop.permute.xlu0 %8819 }
 0x379   :  { %v3480_v50 = vsel %vm12154_vm8, 0.0, %v8806_v35  ;;  %vm12156_vm3 = vmmov %vm12155_vm9  ;;  %v7987_v2 = vpack.c.bf16 %v3458_v7, %v3455_v19  ;;  %3305 = vmatprep.mubr.f32.mxu0 %v12098_v46  ;;  %v8816_v30 = vunpack.i.l.bf16 %v10566_v63  ;;  %v8817_v45 = vunpack.i.h.bf16 %v10566_v63  ;;  %v12175_v19 = vld [vmem:[#allocation11_spill] sm:$0xff] }
 0x37a   :  { %v7990_v62 = vpack.c.bf16 %v3480_v50, %v3479_v12  ;;  %7651 = vmatmul.mubr.msk.f32.gmra.mrb[14].mxu1 %vm12156_vm3, %v10382_v54  ;;  %vm12157_vm10 = vmmov %vm12150_vm0  ;;  %v12176_v12 = vld [vmem:[#allocation9_spill] sm:$0xff]  ;;  %v8822_v7 = vunpack.i.h.bf16 %v10568_v8  ;;  %v8821_v50 = vunpack.i.l.bf16 %v10568_v8 }
 0x37b   :  { %v3456_v56 = vsel %vm12157_vm10, %v8777_v29, %v8781_v0  ;;  %vm12158_vm4 = vmmov %vm12150_vm0  ;;  %3394 = vmatprep.mubr.f32.mxu1 %v12098_v46  ;;  %7989 = vmatprep.subr.msk.bf16.mxu0 %vm10245_vm7, %v7987_v2  ;;  %vm12162_vm0 = vcmask 1039360  }
 0x37c   :  { %v3457_v31 = vsel %vm12158_vm4, %v8781_v0, %v8782_v36  ;;  %v8002_v42 = vpack.c.bf16 %v3459_v11, %v3456_v56  ;;  %7992 = vmatpush1.bf16.msk.msra.mxu0 %vm10510_vm2, %v7990_v62  ;;  %vm12159_vm9 = vmmov %vm12156_vm3  ;;  %v10582_v54 = vpop.permute.xlu1 %8824  ;;  %v10584_v51 = vpop.permute.xlu0 %8829  ;;  %v3953_v29 = vsel %vm12162_vm0, %v8802_v37, %v8816_v30  ;;  %v12167_v36 = vld [vmem:[#allocation13_spill] sm:$0xff]  ;;  %v12169_v0 = vld [vmem:[#allocation10_spill] sm:$0xff] }
 0x37d   :  { %v7999_v15 = vpack.c.bf16 %v3460_v47, %v3457_v31  ;;  %7640 = vmatmul.mubr.msk.f32.gmra.mrb[16].mxu0 %vm12159_vm9, %v10423_v40  ;;  %8006 = vmatprep.subr.bf16.mxu0 %v12160_v21  ;;  %vm12161_vm13 = vmmov %vm12156_vm3  ;;  %v12170_v10 = vpack.c.bf16 %v12168_v24, %v12169_v0  ;;  %v12177_v47 = vpack.c.bf16 %v12175_v19, %v12176_v12  ;;  %v12178_v11 = vld [vmem:[#allocation15_spill] sm:$0xff]  ;;  %v8831_v21 = vunpack.i.l.bf16 %v10584_v51  ;;  %v12199_v24 = vld [vmem:[#allocation16_spill] sm:$0xff] }
 0x37e   :  { %7652 = vmatmul.mubr.msk.f32.gmra.mrb[16].mxu1 %vm12156_vm3, %v10423_v40  ;;  %3577 = vmatprep.mubr.f32.mxu0 %v12098_v46  ;;  %v8797_v40 = vunpack.i.h.bf16 %v10536_v41  ;;  %vm12163_vm15 = vmmov %vm12156_vm3  ;;  %v12164_v41 = vld [vmem:[#allocation8_spill] sm:$0xff] }
 0x37f   :  { %8001 = vmatprep.subr.msk.bf16.mxu1 %vm10252_vm12, %v7999_v15  ;;  %3666 = vmatprep.mubr.f32.mxu1 %v12098_v46  ;;  %v12165_v25 = vpack.c.bf16 %v9952_v61, %v12164_v41  ;;  %vm12166_vm8 = vmmov %vm12162_vm0  ;;  %v12191_v15 = vmov 0 }
 0x380   :  { %8004 = vmatpush1.bf16.msk.msra.mxu1 %vm10521_vm6, %v8002_v42  ;;  %v10604_v1 = vpop.permute.xlu1 %3997  ;;  %v10606_v5 = vpop.permute.xlu0 %3999  ;;  %vm12171_vm10 = vmmov %vm12162_vm0 }
 0x381   :  { %8014 = vmatprep.subr.bf16.mxu1 %v10014_v59  ;;  %7661 = vmatmul.mubr.msk.f32.vlgmr.msra.gmra.mrb[10].mxu0 %vm12161_vm13, %v10476_v14  ;;  %v3978_v59 = vsel %vm12166_vm8, %v8817_v45, 0.0  ;;  %v3950_v4 = vsel %vm12171_vm10, %v8796_v32, %v8797_v40  ;;  %vm12173_vm4 = vmmov %vm12162_vm0 }
 0x382   :  { %8008 = vmatpush1.bf16.msra.mxu0 %v12165_v25  ;;  %3583 = vmatprep.mubr.f32.mxu0 %v12098_v46  ;;  %vm12174_vm9 = vmmov %vm12156_vm3  ;;  %v8021_v39 = vpack.c.bf16 %v3953_v29, %v3950_v4  ;;  %v3954_v31 = vsel %vm12173_vm4, %v8816_v30, %v8817_v45  ;;  %v8827_v30 = vunpack.i.h.bf16 %v10582_v54 }
 0x383   :  { %7673 = vmatmul.mubr.msk.f32.vlgmr.msra.gmra.mrb[10].mxu1 %vm12163_vm15, %v10476_v14  ;;  %8010 = vmatprep.subr.bf16.mxu0 %v12170_v10  ;;  %v3977_v14 = vsel %vm12173_vm4, %v8801_v57, 0.0  ;;  %vm12179_vm13 = vmmov %vm12156_vm3 }
 0x384   :  { %8016 = vmatpush1.bf16.msra.mxu1 %v12167_v36  ;;  %3672 = vmatprep.mubr.f32.mxu1 %v12098_v46  ;;  %v10626_v61 = vpop.permute.xlu1 %8834  ;;  %v10628_v49 = vpop.permute.xlu0 %8839  ;;  %v8033_v35 = vpack.c.bf16 %v3978_v59, %v3977_v14  ;;  %vm12180_vm0 = vmmov %vm12156_vm3 }
 0x385   :  { %8018 = vmatprep.subr.bf16.mxu1 %v12172_v38  ;;  %7662 = vmatmul.mubr.msk.f32.gmra.mrb[12].mxu0 %vm12174_vm9, %v10478_v44  ;;  %vm12181_vm15 = vmmov %vm12173_vm4  ;;  %v8837_v41 = vunpack.i.h.bf16 %v10626_v61  ;;  %v8836_v25 = vunpack.i.l.bf16 %v10626_v61  ;;  %v8842_v59 = vunpack.i.h.bf16 %v10628_v49  ;;  %v8841_v61 = vunpack.i.l.bf16 %v10628_v49 }
 0x386   :  { %8012 = vmatpush1.bf16.msra.mxu0 %v12177_v47  ;;  %3589 = vmatprep.mubr.f32.mxu0 %v12098_v46  ;;  %v3949_v63 = vsel %vm12181_vm15, %v8821_v50, %v8796_v32  ;;  %vm12182_vm8 = vmmov %vm12173_vm4  ;;  %vm12190_vm15 = vcmp.le.s32.totalorder %v9563_v53, 14  ;;  %v12194_v32 = vld [vmem:[#allocation17_spill] sm:$0xff] }
 0x387   :  { %7674 = vmatmul.mubr.msk.f32.gmra.mrb[12].mxu1 %vm12156_vm3, %v10478_v44  ;;  %8023 = vmatprep.subr.msk.bf16.mxu0 %vm10359_vm1, %v8021_v39  ;;  %v3952_v8 = vsel %vm12182_vm8, %v8822_v7, %v8802_v37  ;;  %vm12183_vm10 = vmmov %vm12180_vm0  ;;  %vm12185_vm3 = vcmp.le.s32.totalorder %v9547_v48, 14  ;;  %v8826_v48 = vunpack.i.l.bf16 %v10582_v54 }
 0x388   :  { %8020 = vmatpush1.bf16.msra.mxu1 %v12178_v11  ;;  %3678 = vmatprep.mubr.f32.mxu1 %v12098_v46  ;;  %v10646_v44 = vpop.permute.xlu1 %8844  ;;  %v10648_v62 = vpop.permute.xlu0 %8849  ;;  %vm12184_vm9 = vmmov %vm12180_vm0 }
 0x389   :  { %8035 = vmatprep.subr.msk.bf16.mxu1 %vm10368_vm11, %v8033_v35  ;;  %7663 = vmatmul.mubr.msk.f32.gmra.mrb[14].mxu0 %vm12179_vm13, %v10498_v33  ;;  %vm10669_vm13 = vmpackc.low %vm12185_vm3, %vm12185_vm3  ;;  %v8846_v53 = vunpack.i.l.bf16 %v10646_v44  ;;  %v8847_v36 = vunpack.i.h.bf16 %v10646_v44  ;;  %v8852_v35 = vunpack.i.h.bf16 %v10648_v62  ;;  %v8851_v19 = vunpack.i.l.bf16 %v10648_v62 }
 0x38a   :  { %3595 = vmatprep.mubr.f32.mxu0 %v12098_v46  ;;  %vm10678_vm8 = vmpackc.low %vm12190_vm15, %vm12190_vm15 }
 0x38b   :  { %7675 = vmatmul.mubr.msk.f32.gmra.mrb[14].mxu1 %vm12180_vm0, %v10498_v33  ;;  %v12186_v33 = vmov 0  ;;  %vm12189_vm0 = vmmov %vm12173_vm4  ;;  %v12192_v15 = vsel %vm10678_vm8, 4294967295, %v12191_v15 }
 0x38c   :  { %3684 = vmatprep.mubr.f32.mxu1 %v12098_v46  ;;  %v10658_v2 = vpop.permute.xlu1 %4001  ;;  %v10660_v56 = vpop.permute.xlu0 %8854  ;;  %v12187_v33 = vsel %vm10669_vm13, 4294967295, %v12186_v33  ;;  %v3951_v42 = vsel %vm12189_vm0, %v8797_v40, %v8801_v57  ;;  %12193 = vst [vmem:[#allocation13_spill] sm:$0xff] %v12192_v15  ;;  %vm12196_vm4 = vmmov %vm12184_vm9  ;;  %v8832_v57 = vunpack.i.h.bf16 %v10584_v51 }
 0x38d   :  { %7664 = vmatmul.mubr.msk.f32.gmra.mrb[16].mxu0 %vm12183_vm10, %v10500_v20  ;;  %12188 = vst [vmem:[#allocation8_spill] sm:$0xff] %v12187_v33  ;;  %v8036_v45 = vpack.c.bf16 %v3954_v31, %v3951_v42  ;;  %vm12195_vm10 = vmmov %vm12184_vm9 }
 0x38e   :  { %3787 = vmatprep.mubr.f32.mxu0 %v12098_v46  ;;  %vm12198_vm3 = vmmov %vm12189_vm0 }
 0x38f   :  { %7676 = vmatmul.mubr.msk.f32.gmra.mrb[16].mxu1 %vm12184_vm9, %v10500_v20  ;;  %v8024_v20 = vpack.c.bf16 %v3952_v8, %v3949_v63  ;;  %vm12197_vm9 = vmmov %vm12189_vm0  ;;  %v3955_v29 = vsel %vm12198_vm3, %v8831_v21, %v8826_v48  ;;  %v12213_v21 = vmov 0 }
 0x390   :  { %3876 = vmatprep.mubr.f32.mxu1 %v12098_v46  ;;  %v10687_v40 = vpop.permute.xlu1 %8859  ;;  %v10689_v37 = vpop.permute.xlu0 %4003  ;;  %v3956_v54 = vsel %vm12197_vm9, %v8826_v48, %v8827_v30  ;;  %vm12200_vm0 = vmmov %vm12196_vm4 }
 0x391   :  { %7677 = vmatmul.mubr.msk.f32.vlgmr.msra.gmra.mrb[10].mxu0 %vm12195_vm10, %v12194_v32  ;;  %vm12201_vm15 = vmmov %vm12200_vm0  ;;  %vm12202_vm10 = vcmask 924672  }
 0x392   :  { %8026 = vmatpush1.bf16.msk.msra.mxu0 %vm10669_vm13, %v8024_v20  ;;  %3793 = vmatprep.mubr.f32.mxu0 %v12098_v46  ;;  %v4243_v39 = vsel %vm12202_vm10, %v8842_v59, %v8846_v53  ;;  %vm12204_vm9 = vmmov %vm12198_vm3  ;;  %vm12208_vm10 = vcmask 261120  }
 0x393   :  { %7681 = vmatmul.mubr.msk.f32.vlgmr.msra.gmra.mrb[10].mxu1 %vm12196_vm4, %v12194_v32  ;;  %vm12203_vm4 = vmmov %vm12198_vm3 }
 0x394   :  { %8038 = vmatpush1.bf16.msk.msra.mxu1 %vm10678_vm8, %v8036_v45  ;;  %3882 = vmatprep.mubr.f32.mxu1 %v12098_v46  ;;  %v8870_v0 = vpop.permute.xlu1 %8869  ;;  %v8865_v10 = vpop.permute.xlu0 %8864 }
 0x395   :  { %7678 = vmatmul.mubr.msk.f32.gmra.mrb[12].mxu0 %vm12200_vm0, %v12199_v24  ;;  %v8872_v51 = vunpack.i.h.bf16 %v8870_v0  ;;  %v8871_v4 = vunpack.i.l.bf16 %v8870_v0  ;;  %v8867_v38 = vunpack.i.h.bf16 %v8865_v10  ;;  %v8866_v14 = vunpack.i.l.bf16 %v8865_v10  ;;  %vm12205_vm0 = vmmov %vm12198_vm3 }
 0x396   :  { %3799 = vmatprep.mubr.f32.mxu0 %v12098_v46  ;;  %vm12207_vm7 = vmmov %vm12205_vm0 }
 0x397   :  { %7682 = vmatmul.mubr.msk.f32.gmra.mrb[12].mxu1 %vm12201_vm15, %v12199_v24  ;;  %v3980_v12 = vsel %vm12203_vm4, %v8872_v51, 0.0  ;;  %v3960_v47 = vsel %vm12204_vm9, %v8871_v4, %v8872_v51  ;;  %v3959_v11 = vsel %vm12198_vm3, %v8867_v38, %v8871_v4  ;;  %v3957_v7 = vsel %vm12205_vm0, %v8827_v30, %v8866_v14  ;;  %vm12206_vm15 = vmmov %vm12205_vm0 }
 0x398   :  { %3888 = vmatprep.mubr.f32.mxu1 %v12098_v46  ;;  %v3958_v50 = vsel %vm12206_vm15, %v8832_v57, %v8867_v38  ;;  %v3979_v49 = vsel %vm12207_vm7, %v8866_v14, 0.0  ;;  %v8042_v44 = vpack.c.bf16 %v3960_v47, %v3957_v7  ;;  %v10725_v63 = vpop.permute.xlu1 %4287  ;;  %v10727_v62 = vpop.permute.xlu0 %4289  ;;  %v8027_v8 = vpack.c.bf16 %v3959_v11, %v3956_v54  ;;  %vm12210_vm9 = vmmov %vm12208_vm10 }
 0x399   :  { %7679 = vmatmul.mubr.msk.f32.gmra.mrb[14].mxu0 %vm12208_vm10, %v10111_v52  ;;  %vm12209_vm4 = vcmask 924672   ;;  %v8030_v42 = vpack.c.bf16 %v3958_v50, %v3955_v29  ;;  %v8039_v20 = vpack.c.bf16 %v3980_v12, %v3979_v49  ;;  %vm10740_vm7 = vmpackc.low %vm9782_vm14, %vm9782_vm14  ;;  %v12218_v54 = vmov 0 }
 0x39a   :  { %v4268_v31 = vsel %vm12209_vm4, %v8847_v36, 0.0  ;;  %3805 = vmatprep.mubr.f32.mxu0 %v12098_v46  ;;  %vm12211_vm3 = vmmov %vm12209_vm4  ;;  %8029 = vmatprep.subr.msk.bf16.mxu0 %vm10359_vm1, %v8027_v8  ;;  %v12214_v21 = vsel %vm10740_vm7, 4294967295, %v12213_v21  ;;  %v8857_v4 = vunpack.i.h.bf16 %v10660_v56  ;;  %v8856_v38 = vunpack.i.l.bf16 %v10660_v56 }
 0x39b   :  { %7683 = vmatmul.mubr.msk.f32.gmra.mrb[14].mxu1 %vm12210_vm9, %v10111_v52  ;;  %v4240_v30 = vsel %vm12211_vm3, %v8836_v25, %v8837_v41  ;;  %12215 = vst [vmem:[#allocation12_spill] sm:$0xff] %v12214_v21  ;;  %vm12216_vm0 = vmmov %vm12211_vm3  ;;  %8041 = vmatprep.subr.msk.bf16.mxu1 %vm10368_vm11, %v8039_v20 }
 0x39c   :  { %3894 = vmatprep.mubr.f32.mxu1 %v12098_v46  ;;  %v4267_v45 = vsel %vm12216_vm0, %v8841_v61, 0.0  ;;  %8032 = vmatpush1.bf16.msk.msra.mxu0 %vm10669_vm13, %v8030_v42  ;;  %v8045_v52 = vpack.c.bf16 %v4243_v39, %v4240_v30  ;;  %vm10752_vm15 = vmpackc.low %vm9792_vm5, %vm9792_vm5  ;;  %v10762_v0 = vpop.permute.xlu1 %8874  ;;  %v10764_v10 = vpop.permute.xlu0 %8879 }
 0x39d   :  { %v12219_v54 = vsel %vm10752_vm15, 4294967295, %v12218_v54  ;;  %v8057_v57 = vpack.c.bf16 %v4268_v31, %v4267_v45  ;;  %vm12221_vm14 = vmmov %vm12216_vm0  ;;  %8044 = vmatpush1.bf16.msk.msra.mxu1 %vm10678_vm8, %v8042_v44  ;;  %v8882_v44 = vunpack.i.h.bf16 %v10764_v10 }
 0x39e   :  { %12220 = vst [vmem:[#allocation10_spill] sm:$0xff] %v12219_v54  ;;  %v4239_v29 = vsel %vm12221_vm14, %v8851_v19, %v8836_v25  ;;  %vm12222_vm10 = vmmov %vm12216_vm0  ;;  %8047 = vmatprep.subr.msk.bf16.mxu0 %vm10740_vm7, %v8045_v52  ;;  %v8881_v19 = vunpack.i.l.bf16 %v10764_v10 }
 0x39f   :  { %v4242_v24 = vsel %vm12222_vm10, %v8852_v35, %v8842_v59  ;;  %vm12223_vm4 = vmmov %vm12210_vm9  ;;  %8059 = vmatprep.subr.msk.bf16.mxu1 %vm10752_vm15, %v8057_v57  ;;  %v8877_v35 = vunpack.i.h.bf16 %v10762_v0 }
 0x3a0   :  { %7680 = vmatmul.mubr.msk.f32.gmra.mrb[16].mxu0 %vm12223_vm4, %v10124_v17  ;;  %vm12224_vm9 = vmmov %vm12216_vm0  ;;  %v8048_v59 = vpack.c.bf16 %v4242_v24, %v4239_v29 }
 0x3a1   :  { %v4244_v51 = vsel %vm12224_vm9, %v8846_v53, %v8847_v36  ;;  %vm12225_vm5 = vmmov %vm12223_vm4  ;;  %4077 = vmatprep.mubr.f32.mxu0 %v12098_v46  ;;  %v8861_v53 = vunpack.i.l.bf16 %v10687_v40  ;;  %v8885_v36 = vpop.permute.xlu1 %8884 }
 0x3a2   :  { %7684 = vmatmul.mubr.msk.f32.gmra.mrb[16].mxu1 %vm12225_vm5, %v10124_v17  ;;  %vm12226_vm3 = vmmov %vm12216_vm0  ;;  %v8887_v56 = vunpack.i.h.bf16 %v8885_v36  ;;  %v8886_v12 = vunpack.i.l.bf16 %v8885_v36 }
 0x3a3   :  { %v4241_v25 = vsel %vm12226_vm3, %v8837_v41, %v8841_v61  ;;  %4166 = vmatprep.mubr.f32.mxu1 %v12098_v46  ;;  %vm12227_vm0 = vmmov %vm12223_vm4  ;;  %v8890_v41 = vpop.permute.xlu0 %8889  ;;  %v8862_v61 = vunpack.i.h.bf16 %v10687_v40 }
 0x3a4   :  { %v8060_v17 = vpack.c.bf16 %v4244_v51, %v4241_v25  ;;  %7693 = vmatmul.mubr.msk.f32.vlgmr.msra.gmra.mrb[10].mxu0 %vm12227_vm0, %v10604_v1  ;;  %vm12228_vm14 = vmmov %vm12227_vm0  ;;  %v8892_v31 = vunpack.i.h.bf16 %v8890_v41  ;;  %v8891_v42 = vunpack.i.l.bf16 %v8890_v41 }
 0x3a5   :  { %8050 = vmatpush1.bf16.msk.msra.mxu0 %vm10510_vm2, %v8048_v59  ;;  %4083 = vmatprep.mubr.f32.mxu0 %v12098_v46  ;;  %vm12229_vm10 = vmmov %vm12226_vm3  ;;  %v8895_v47 = vpop.permute.xlu1 %8894  ;;  %v12244_v59 = vld [vmem:[#allocation3_spill] sm:$0xff] }
 0x3a6   :  { %7705 = vmatmul.mubr.msk.f32.vlgmr.msra.gmra.mrb[10].mxu1 %vm12228_vm14, %v10604_v1  ;;  %v4246_v14 = vsel %vm12229_vm10, %v8856_v38, %v8857_v4  ;;  %vm12230_vm4 = vmmov %vm12226_vm3  ;;  %v8876_v1 = vunpack.i.l.bf16 %v10762_v0  ;;  %v8897_v40 = vunpack.i.h.bf16 %v8895_v47  ;;  %v8896_v7 = vunpack.i.l.bf16 %v8895_v47 }
 0x3a7   :  { %8062 = vmatpush1.bf16.msk.msra.mxu1 %vm10521_vm6, %v8060_v17  ;;  %v4245_v39 = vsel %vm12230_vm4, %v8861_v53, %v8856_v38  ;;  %4172 = vmatprep.mubr.f32.mxu1 %v12098_v46  ;;  %vm12231_vm9 = vmmov %vm12227_vm0  ;;  %v8900_v11 = vpop.permute.xlu0 %8899  ;;  %vm12233_vm3 = vcmask 916480   ;;  %v12250_v53 = vld [vmem:[#allocation2_spill] sm:$0xff]  ;;  %v12252_v17 = vmov 0 }
 0x3a8   :  { %7694 = vmatmul.mubr.msk.f32.gmra.mrb[12].mxu0 %vm12231_vm9, %v10606_v5  ;;  %vm12232_vm5 = vmmov %vm12227_vm0  ;;  %v8902_v50 = vunpack.i.h.bf16 %v8900_v11  ;;  %v8901_v49 = vunpack.i.l.bf16 %v8900_v11  ;;  %v4558_v8 = vsel %vm12233_vm3, %v8887_v56, 0.0 }
 0x3a9   :  { %4089 = vmatprep.mubr.f32.mxu0 %v12098_v46  ;;  %vm12234_vm0 = vmmov %vm12230_vm4  ;;  %v10815_v51 = vpop.permute.xlu1 %4291 }
 0x3aa   :  { %7706 = vmatmul.mubr.msk.f32.gmra.mrb[12].mxu1 %vm12232_vm5, %v10606_v5  ;;  %v4247_v20 = vsel %vm12234_vm0, %v8857_v4, %v8896_v7  ;;  %vm12235_vm14 = vmmov %vm12234_vm0  ;;  %v12246_v4 = vmov 0 }
 0x3ab   :  { %4178 = vmatprep.mubr.f32.mxu1 %v12098_v46  ;;  %v4248_v30 = vsel %vm12235_vm14, %v8862_v61, %v8897_v40  ;;  %vm12236_vm10 = vmmov %vm12234_vm0  ;;  %v8905_v29 = vpop.permute.xlu0 %8904  ;;  %vm12245_vm14 = vnez %v12244_v59 }
 0x3ac   :  { %v4269_v5 = vsel %vm12236_vm10, %v8896_v7, 0.0  ;;  %vm12237_vm4 = vmmov %vm12234_vm0  ;;  %v8054_v0 = vpack.c.bf16 %v4248_v30, %v4245_v39  ;;  %vm12251_vm10 = vnez %v12250_v53 }
 0x3ad   :  { %v4270_v48 = vsel %vm12237_vm4, %v8902_v50, 0.0  ;;  %vm12238_vm9 = vmmov %vm12233_vm3  ;;  %vm12241_vm3 = vcmask 261120   ;;  %v8910_v47 = vpop.permute.xlu1 %8909 }
 0x3ae   :  { %v4533_v45 = vsel %vm12238_vm9, %v8882_v44, %v8886_v12  ;;  %v8063_v52 = vpack.c.bf16 %v4270_v48, %v4269_v5  ;;  %vm12239_vm5 = vmmov %vm12234_vm0  ;;  %7695 = vmatmul.mubr.msk.f32.gmra.mrb[14].mxu0 %vm12241_vm3, %v10658_v2  ;;  %v4529_v36 = vsel %vm12238_vm9, %v8891_v42, %v8876_v1 }
 0x3af   :  { %v4249_v32 = vsel %vm12239_vm5, %v8897_v40, %v8901_v49  ;;  %vm12240_vm1 = vmmov %vm12234_vm0  ;;  %4095 = vmatprep.mubr.f32.mxu0 %v12098_v46  ;;  %v8907_v40 = vunpack.i.h.bf16 %v8905_v29 }
 0x3b0   :  { %v4250_v57 = vsel %vm12240_vm1, %v8901_v49, %v8902_v50  ;;  %vm12242_vm11 = vmmov %vm12238_vm9  ;;  %v8051_v25 = vpack.c.bf16 %v4249_v32, %v4246_v14  ;;  %8065 = vmatprep.subr.msk.bf16.mxu1 %vm10752_vm15, %v8063_v52  ;;  %v4294_v14 = vpop.permute.xlu0 %4293 }
 0x3b1   :  { %v4557_v24 = vsel %vm12242_vm11, %v8881_v19, 0.0  ;;  %v8066_v10 = vpack.c.bf16 %v4250_v57, %v4247_v20  ;;  %vm12243_vm0 = vmmov %vm12241_vm3 }
 0x3b2   :  { %7707 = vmatmul.mubr.msk.f32.gmra.mrb[14].mxu1 %vm12243_vm0, %v10658_v2  ;;  %vm10821_vm1 = vmpackc.low %vm12245_vm14, %vm12245_vm14  ;;  %v8079_v38 = vpack.c.bf16 %v4558_v8, %v4557_v24  ;;  %8053 = vmatprep.subr.msk.bf16.mxu0 %vm10740_vm7, %v8051_v25  ;;  %vm12270_vm7 = vcmask 261120  }
 0x3b3   :  { %v12247_v4 = vsel %vm10821_vm1, 4294967295, %v12246_v4  ;;  %4184 = vmatprep.mubr.f32.mxu1 %v12098_v46  ;;  %vm12249_vm11 = vmmov %vm12238_vm9  ;;  %8068 = vmatpush1.bf16.msk.msra.mxu1 %vm10521_vm6, %v8066_v10 }
 0x3b4   :  { %12248 = vst [vmem:[#allocation14_spill] sm:$0xff] %v12247_v4  ;;  %v4530_v2 = vsel %vm12249_vm11, %v8876_v1, %v8877_v35  ;;  %vm10836_vm4 = vmpackc.low %vm12251_vm10, %vm12251_vm10  ;;  %8081 = vmatprep.subr.msk.bf16.mxu1 %vm10821_vm1, %v8079_v38  ;;  %8056 = vmatpush1.bf16.msk.msra.mxu0 %vm10510_vm2, %v8054_v0 }
 0x3b5   :  { %v12253_v17 = vsel %vm10836_vm4, 4294967295, %v12252_v17  ;;  %vm12255_vm5 = vmmov %vm12238_vm9  ;;  %v8069_v61 = vpack.c.bf16 %v4533_v45, %v4530_v2 }
 0x3b6   :  { %12254 = vst [vmem:[#allocation11_spill] sm:$0xff] %v12253_v17  ;;  %v4532_v41 = vsel %vm12255_vm5, %v8892_v31, %v8882_v44  ;;  %vm12256_vm3 = vmmov %vm12243_vm0  ;;  %v8912_v44 = vunpack.i.h.bf16 %v8910_v47 }
 0x3b7   :  { %7696 = vmatmul.mubr.msk.f32.gmra.mrb[16].mxu0 %vm12256_vm3, %v10689_v37  ;;  %vm12257_vm0 = vmmov %vm12255_vm5  ;;  %8071 = vmatprep.subr.msk.bf16.mxu0 %vm10836_vm4, %v8069_v61  ;;  %v8072_v11 = vpack.c.bf16 %v4532_v41, %v4529_v36 }
 0x3b8   :  { %v4534_v39 = vsel %vm12257_vm0, %v8886_v12, %v8887_v56  ;;  %vm12258_vm14 = vmmov %vm12256_vm3  ;;  %4367 = vmatprep.mubr.f32.mxu0 %v12098_v46  ;;  %v10858_v12 = vpop.permute.xlu0 %4579 }
 0x3b9   :  { %7708 = vmatmul.mubr.msk.f32.gmra.mrb[16].mxu1 %vm12258_vm14, %v10689_v37  ;;  %vm12259_vm11 = vmmov %vm12257_vm0  ;;  %v10862_v37 = vpop.permute.xlu1 %4577 }
 0x3ba   :  { %v4531_v1 = vsel %vm12259_vm11, %v8877_v35, %v8881_v19  ;;  %4456 = vmatprep.mubr.f32.mxu1 %v12098_v46  ;;  %vm12260_vm10 = vmmov %vm12256_vm3  ;;  %v8906_v35 = vunpack.i.l.bf16 %v8905_v29  ;;  %v8911_v19 = vunpack.i.l.bf16 %v8910_v47 }
 0x3bb   :  { %7717 = vmatmul.mubr.msk.f32.vlgmr.msra.gmra.mrb[10].mxu0 %vm12260_vm10, %v10725_v63  ;;  %v8082_v56 = vpack.c.bf16 %v4534_v39, %v4531_v1  ;;  %vm12261_vm9 = vmmov %vm12256_vm3 }
 0x3bc   :  { %8073 = vmatpush1.bf16.msra.mxu0 %v8072_v11  ;;  %4373 = vmatprep.mubr.f32.mxu0 %v12098_v46  ;;  %vm12262_vm5 = vmmov %vm12256_vm3  ;;  %v8925_v7 = vpop.permute.xlu0 %8924  ;;  %v4536_v42 = vsel %vm12257_vm0, %v8906_v35, %v8907_v40 }
 0x3bd   :  { %7729 = vmatmul.mubr.msk.f32.vlgmr.msra.gmra.mrb[10].mxu1 %vm12261_vm9, %v10725_v63  ;;  %v8915_v50 = vpop.permute.xlu1 %8914  ;;  %v8927_v63 = vunpack.i.h.bf16 %v8925_v7  ;;  %v8926_v49 = vunpack.i.l.bf16 %v8925_v7  ;;  %vm12263_vm14 = vmmov %vm12257_vm0 }
 0x3be   :  { %8083 = vmatpush1.bf16.msra.mxu1 %v8082_v56  ;;  %4462 = vmatprep.mubr.f32.mxu1 %v12098_v46  ;;  %v8917_v8 = vunpack.i.h.bf16 %v8915_v50  ;;  %v8916_v31 = vunpack.i.l.bf16 %v8915_v50  ;;  %v4535_v20 = vsel %vm12263_vm14, %v8911_v19, %v8906_v35  ;;  %vm12264_vm11 = vmmov %vm12257_vm0  ;;  %vm12274_vm14 = vcmask 908288  }
 0x3bf   :  { %7718 = vmatmul.mubr.msk.f32.gmra.mrb[12].mxu0 %vm12262_vm5, %v10727_v62  ;;  %v4560_v30 = vsel %vm12264_vm11, %v8927_v63, 0.0  ;;  %vm12265_vm10 = vmmov %vm12257_vm0  ;;  %v12281_v35 = vmov 0 }
 0x3c0   :  { %4379 = vmatprep.mubr.f32.mxu0 %v12098_v46  ;;  %v4540_v5 = vsel %vm12265_vm10, %v8926_v49, %v8927_v63  ;;  %vm12266_vm9 = vmmov %vm12257_vm0  ;;  %v8930_v32 = vpop.permute.xlu0 %8929 }
 0x3c1   :  { %7730 = vmatmul.mubr.msk.f32.gmra.mrb[12].mxu1 %vm12256_vm3, %v10727_v62  ;;  %v4537_v62 = vsel %vm12266_vm9, %v8907_v40, %v8916_v31  ;;  %vm12267_vm5 = vmmov %vm12257_vm0  ;;  %v8920_v10 = vpop.permute.xlu1 %8919  ;;  %v8931_v38 = vunpack.i.l.bf16 %v8930_v32  ;;  %v8932_v53 = vunpack.i.h.bf16 %v8930_v32  ;;  %v12279_v40 = vld [vmem:[#allocation6_spill] sm:$0xff] }
 0x3c2   :  { %4468 = vmatprep.mubr.f32.mxu1 %v12098_v46  ;;  %v4538_v48 = vsel %vm12267_vm5, %v8912_v44, %v8917_v8  ;;  %vm12268_vm3 = vmmov %vm12257_vm0  ;;  %v8087_v0 = vpack.c.bf16 %v4540_v5, %v4537_v62  ;;  %v8922_v25 = vunpack.i.h.bf16 %v8920_v10  ;;  %v8921_v59 = vunpack.i.l.bf16 %v8920_v10  ;;  %v12288_v44 = vld [vmem:[#allocation7_spill] sm:$0xff] }
 0x3c3   :  { %v4559_v45 = vsel %vm12268_vm3, %v8916_v31, 0.0  ;;  %vm12269_vm15 = vmmov %vm12257_vm0  ;;  %7719 = vmatmul.mubr.msk.f32.gmra.mrb[14].mxu0 %vm12270_vm7, %v10815_v51  ;;  %v8077_v57 = vpack.c.bf16 %v4538_v48, %v4535_v20  ;;  %vm12280_vm3 = vnez %v12279_v40  ;;  %v9326_v40 = vmov 1  }
 0x3c4   :  { %v4539_v52 = vsel %vm12269_vm15, %v8917_v8, %v8926_v49  ;;  %v8084_v29 = vpack.c.bf16 %v4560_v30, %v4559_v45  ;;  %vm12271_vm0 = vmmov %vm12270_vm7  ;;  %4385 = vmatprep.mubr.f32.mxu0 %v12098_v46  ;;  %v8940_v2 = vpop.permute.xlu0 %8939  ;;  %v4824_v61 = vsel %vm12274_vm14, %v8921_v59, %v8922_v25  ;;  %v12290_v8 = vmov 0  ;;  %8965 = vset.pattern.permute.xlu0 %v9326_v40 }
 0x3c5   :  { %v8074_v24 = vpack.c.bf16 %v4539_v52, %v4536_v42  ;;  %7731 = vmatmul.mubr.msk.f32.gmra.mrb[14].mxu1 %vm12271_vm0, %v10815_v51  ;;  %vm12272_vm7 = vmmov %vm12271_vm0  ;;  %v8935_v51 = vpop.permute.xlu1 %8934  ;;  %v8942_v36 = vunpack.i.h.bf16 %v8940_v2  ;;  %v8941_v41 = vunpack.i.l.bf16 %v8940_v2  ;;  %8966 = vset.pattern.permute.xlu1 %v9326_v40 }
 0x3c6   :  { %4474 = vmatprep.mubr.f32.mxu1 %v12098_v46  ;;  %8086 = vmatprep.subr.msk.bf16.mxu1 %vm10821_vm1, %v8084_v29  ;;  %vm12273_vm15 = vmmov %vm12271_vm0  ;;  %v8937_v39 = vunpack.i.h.bf16 %v8935_v51  ;;  %v8936_v47 = vunpack.i.l.bf16 %v8935_v51 }
 0x3c7   :  { %8076 = vmatprep.subr.msk.bf16.mxu0 %vm10836_vm4, %v8074_v24  ;;  %7720 = vmatmul.mubr.msk.f32.gmra.mrb[16].mxu0 %vm12272_vm7, %v4294_v14  ;;  %vm12275_vm11 = vmmov %vm12274_vm14 }
 0x3c8   :  { %8088 = vmatpush1.bf16.msra.mxu1 %v8087_v0  ;;  %8078 = vmatpush1.bf16.msra.mxu0 %v8077_v57  ;;  %v4825_v1 = vsel %vm12275_vm11, %v8922_v25, %v8931_v38  ;;  %vm12276_vm10 = vmmov %vm12275_vm11  ;;  %vm12287_vm11 = vcmask 261120   ;;  %v8945_v49 = vpop.permute.xlu0 %8944 }
 0x3c9   :  { %7732 = vmatmul.mubr.msk.f32.gmra.mrb[16].mxu1 %vm12273_vm15, %v4294_v14  ;;  %4657 = vmatprep.mubr.f32.mxu0 %v12098_v46  ;;  %v4851_v11 = vsel %vm12276_vm10, %v8931_v38, 0.0  ;;  %vm12277_vm9 = vmmov %vm12276_vm10  ;;  %vm12289_vm10 = vnez %v12288_v44  ;;  %v4582_v30 = vpop.permute.xlu1 %4581  ;;  %v8947_v5 = vunpack.i.h.bf16 %v8945_v49  ;;  %v8946_v62 = vunpack.i.l.bf16 %v8945_v49 }
 0x3ca   :  { %4746 = vmatprep.mubr.f32.mxu1 %v12098_v46  ;;  %v4823_v56 = vsel %vm12277_vm9, %v8941_v41, %v8921_v59  ;;  %vm12278_vm5 = vmmov %vm12277_vm9  ;;  %5138 = vperm.xlu0 %8965, %v10438_v60  }
 0x3cb   :  { %v4826_v14 = vsel %vm12278_vm5, %v8942_v36, %v8932_v53  ;;  %vm10902_vm0 = vmpackc.low %vm12280_vm3, %vm12280_vm3  ;;  %7737 = vmatmul.mubr.msk.f32.vlgmr.msra.gmra.mrb[10].mxu0 %vm12287_vm11, %v10862_v37  ;;  %5142 = vperm.xlu1 %8966, %v10443_v9  }
 0x3cc   :  { %v12282_v35 = vsel %vm10902_vm0, 4294967295, %v12281_v35  ;;  %vm12284_vm7 = vmmov %vm12278_vm5  ;;  %v8092_v63 = vpack.c.bf16 %v4826_v14, %v4823_v56  ;;  %4663 = vmatprep.mubr.f32.mxu0 %v12098_v46  ;;  %v4789_v56 = vld [vmem:[%s11882_s2 + $0x70] sm:$0xff]  ;;  %v4790_v14 = vld [vmem:[%s11882_s2 + $0xa0] sm:$0xff] }
 0x3cd   :  { %12283 = vst [vmem:[#allocation9_spill] sm:$0xff] %v12282_v35  ;;  %v4852_v19 = vsel %vm12284_vm7, %v8937_v39, 0.0  ;;  %vm12285_vm15 = vmmov %vm12278_vm5  ;;  %v8950_v48 = vpop.permute.xlu1 %8949 }
 0x3ce   :  { %v4827_v7 = vsel %vm12285_vm15, %v8932_v53, %v8936_v47  ;;  %vm12286_vm14 = vmmov %vm12278_vm5  ;;  %v8101_v42 = vpack.c.bf16 %v4852_v19, %v4851_v11  ;;  %v8952_v32 = vunpack.i.h.bf16 %v8950_v48  ;;  %v8951_v57 = vunpack.i.l.bf16 %v8950_v48  ;;  %v4788_v11 = vld [vmem:[%s11882_s2 + $0x40] sm:$0xff]  ;;  %5150 = vperm.xlu0 %8965, %v10505_v23  }
 0x3cf   :  { %v4828_v50 = vsel %vm12286_vm14, %v8936_v47, %v8937_v39  ;;  %vm10914_vm9 = vmpackc.low %vm12289_vm10, %vm12289_vm10  ;;  %v8089_v31 = vpack.c.bf16 %v4827_v7, %v4824_v61  ;;  %5146 = vperm.xlu1 %8966, %v10469_v55  }
 0x3d0   :  { %v12291_v8 = vsel %vm10914_vm9, 4294967295, %v12290_v8  ;;  %v8104_v20 = vpack.c.bf16 %v4828_v50, %v4825_v1  ;;  %vm12293_vm5 = vmmov %vm12287_vm11  ;;  %8103 = vmatprep.subr.msk.bf16.mxu1 %vm10914_vm9, %v8101_v42  ;;  %v4787_v1 = vld [vmem:[%s11882_s2 + $0x10] sm:$0xff] }
 0x3d1   :  { %12292 = vst [vmem:[#allocation15_spill] sm:$0xff] %v12291_v8  ;;  %7745 = vmatmul.mubr.msk.f32.vlgmr.msra.gmra.mrb[10].mxu1 %vm12293_vm5, %v10862_v37  ;;  %8091 = vmatprep.subr.msk.bf16.mxu0 %vm10902_vm0, %v8089_v31  ;;  %vm12294_vm3 = vmmov %vm12293_vm5  ;;  %v8960_v37 = vpop.permute.xlu0 %8959  ;;  %v8955_v53 = vpop.permute.xlu1 %8954 }
 0x3d2   :  { %4752 = vmatprep.mubr.f32.mxu1 %v12098_v46  ;;  %7738 = vmatmul.mubr.msk.f32.gmra.mrb[12].mxu0 %vm12294_vm3, %v10858_v12  ;;  %vm12295_vm7 = vmmov %vm12294_vm3  ;;  %v8962_v45 = vunpack.i.h.bf16 %v8960_v37  ;;  %v8961_v52 = vunpack.i.l.bf16 %v8960_v37  ;;  %v8957_v36 = vunpack.i.h.bf16 %v8955_v53  ;;  %v8956_v41 = vunpack.i.l.bf16 %v8955_v53 }
 0x3d3   :  { %8106 = vmatpush1.bf16.msk.msra.mxu1 %vm10678_vm8, %v8104_v20  ;;  %8094 = vmatpush1.bf16.msk.msra.mxu0 %vm10669_vm13, %v8092_v63  ;;  %vm12296_vm15 = vmmov %vm12286_vm14 }
 0x3d4   :  { %4669 = vmatprep.mubr.f32.mxu0 %v12098_v46  ;;  %v4854_v29 = vsel %vm12296_vm15, %v8962_v45, 0.0  ;;  %v4834_v24 = vsel %vm12286_vm14, %v8961_v52, %v8962_v45  ;;  %vm12297_vm11 = vmmov %vm12286_vm14 }
 0x3d5   :  { %7746 = vmatmul.mubr.msk.f32.gmra.mrb[12].mxu1 %vm12295_vm7, %v10858_v12  ;;  %v4830_v0 = vsel %vm12297_vm11, %v8946_v62, %v8947_v5  ;;  %vm12298_vm10 = vmmov %vm12297_vm11  ;;  %v4584_v51 = vpop.permute.xlu0 %4583 }
 0x3d6   :  { %4758 = vmatprep.mubr.f32.mxu1 %v12098_v46  ;;  %v4831_v12 = vsel %vm12298_vm10, %v8947_v5, %v8951_v57  ;;  %vm12299_vm5 = vmmov %vm12298_vm10  ;;  %7739 = vmatmul.mubr.msk.f32.gmra.mrb[14].mxu0 %vm12295_vm7, %v4582_v30 }
 0x3d7   :  { %v4853_v10 = vsel %vm12299_vm5, %v8951_v57, 0.0  ;;  %vm12300_vm3 = vmmov %vm12299_vm5  ;;  %v8110_v2 = vpack.c.bf16 %v4834_v24, %v4831_v12  ;;  %4675 = vmatprep.mubr.f32.mxu0 %v12098_v46 }
 0x3d8   :  { %v4833_v25 = vsel %vm12300_vm3, %v8952_v32, %v8961_v52  ;;  %v8107_v59 = vpack.c.bf16 %v4854_v29, %v4853_v10  ;;  %vm12301_vm1 = vmmov %vm12295_vm7 }
 0x3d9   :  { %v8095_v38 = vpack.c.bf16 %v4833_v25, %v4830_v0  ;;  %7747 = vmatmul.mubr.msk.f32.gmra.mrb[14].mxu1 %vm12301_vm1, %v4582_v30  ;;  %vm12302_vm15 = vmmov %vm12300_vm3 }
 0x3da   :  { %4764 = vmatprep.mubr.f32.mxu1 %v12098_v46  ;;  %8109 = vmatprep.subr.msk.bf16.mxu1 %vm10914_vm9, %v8107_v59  ;;  %v4829_v61 = vsel %vm12302_vm15, %v8956_v41, %v8946_v62  ;;  %vm12303_vm14 = vmmov %vm12300_vm3 }
 0x3db   :  { %8097 = vmatprep.subr.msk.bf16.mxu0 %vm10902_vm0, %v8095_v38  ;;  %v4832_v39 = vsel %vm12303_vm14, %v8957_v36, %v8952_v32  ;;  %8112 = vmatpush1.bf16.msk.msra.mxu1 %vm10678_vm8, %v8110_v2  ;;  %vm12304_vm11 = vmmov %vm12301_vm1 }
 0x3dc   :  { %7740 = vmatmul.mubr.msk.f32.gmra.mrb[16].mxu0 %vm12301_vm1, %v4584_v51  ;;  %v8098_v47 = vpack.c.bf16 %v4832_v39, %v4829_v61  ;;  %vm12305_vm10 = vmmov %vm12301_vm1 }
 0x3dd   :  { %7748 = vmatmul.mubr.msk.f32.gmra.mrb[16].mxu1 %vm12304_vm11, %v4584_v51  ;;  %4947 = vmatprep.mubr.f32.mxu0 %v12098_v46  ;;  %vm12306_vm5 = vmmov %vm12301_vm1 }
 0x3de   :  { %5036 = vmatprep.mubr.f32.mxu1 %v12098_v46  ;;  %8100 = vmatpush1.bf16.msk.msra.mxu0 %vm10669_vm13, %v8098_v47  ;;  %vm12307_vm3 = vmmov %vm12301_vm1 }
 0x3df   :  { %vm12308_vm7 = vmmov %vm12301_vm1 }
 0x3e0   :  { %vm12309_vm15 = vmmov %vm12301_vm1 }
 0x3e1   :  { %7769 = vmatmul.mubr.msk.f32.vlgmr.msra.gmra.mrb[10].mxu1 %vm12305_vm10, %v4787_v1  ;;  %7757 = vmatmul.mubr.msk.f32.vlgmr.msra.gmra.mrb[10].mxu0 %vm12306_vm5, %v4787_v1  ;;  %vm12310_vm14 = vmmov %vm12301_vm1 }
 0x3e2   :  { %5042 = vmatprep.mubr.f32.mxu1 %v12098_v46  ;;  %4953 = vmatprep.mubr.f32.mxu0 %v12098_v46  ;;  %vm12311_vm11 = vmmov %vm12301_vm1  ;;  %v5084_v19 = vpop.permute.xlu1 %5083 }
 0x3e3   :  { %vm12312_vm10 = vmmov %vm12301_vm1 }
 0x3e4   :  { %vm12313_vm5 = vmmov %vm12301_vm1 }
 0x3e5   :  { %7770 = vmatmul.mubr.msk.f32.gmra.mrb[12].mxu1 %vm12307_vm3, %v4788_v11  ;;  %7758 = vmatmul.mubr.msk.f32.gmra.mrb[12].mxu0 %vm12308_vm7, %v4788_v11  ;;  %v5089_v49 = vpop.permute.xlu0 %5088  ;;  %vm12314_vm3 = vmmov %vm12301_vm1 }
 0x3e6   :  { %5048 = vmatprep.mubr.f32.mxu1 %v12098_v46  ;;  %4959 = vmatprep.mubr.f32.mxu0 %v12098_v46  ;;  %v5094_v45 = vpop.permute.xlu1 %5093  ;;  %vm12315_vm7 = vmmov %vm12301_vm1 }
 0x3e9   :  { %7771 = vmatmul.mubr.msk.f32.gmra.mrb[14].mxu1 %vm12309_vm15, %v4789_v56  ;;  %7759 = vmatmul.mubr.msk.f32.gmra.mrb[14].mxu0 %vm12310_vm14, %v4789_v56  ;;  %vm12316_vm15 = vmmov %vm12301_vm1 }
 0x3ea   :  { %5054 = vmatprep.mubr.f32.mxu1 %v12098_v46  ;;  %4965 = vmatprep.mubr.f32.mxu0 %v12098_v46  ;;  %v5099_v1 = vpop.permute.xlu1 %5098  ;;  %vm12317_vm14 = vmmov %vm12301_vm1 }
 0x3ed   :  { %7772 = vmatmul.mubr.msk.f32.gmra.mrb[16].mxu1 %vm12301_vm1, %v4790_v14  ;;  %7760 = vmatmul.mubr.msk.f32.gmra.mrb[16].mxu0 %vm12311_vm11, %v4790_v14  ;;  %vm12318_vm11 = vmmov %vm12301_vm1 }
 0x3ee   :  { %5318 = vmatprep.mubr.f32.mxu1 %v12098_v46  ;;  %5229 = vmatprep.mubr.f32.mxu0 %v12098_v46 }
 0x4b4   :  { %v5038_v7 = vpop.f32.mrb[10].mxu1  ;;  %v4949_v63 = vpop.f32.mrb[10].mxu0 }
 0x4b5   :  { %v5040_v50 = vpop.f32.mrb[11].mxu1  ;;  %v4951_v44 = vpop.f32.mrb[11].mxu0  ;;  %v5103_v31 = vadd.f32 %v5084_v19, %v5038_v7  ;;  %v5101_v20 = vadd.f32 %v5084_v19, %v4949_v63 }
 0x4b6   :  { %v5104_v42 = vadd.f32 %v5084_v19, %v5040_v50  ;;  %v5102_v5 = vadd.f32 %v5084_v19, %v4951_v44 }
 0x4b7   :  { %v5119_v52 = vmax.f32 %v5103_v31, 0.0  ;;  %v5117_v29 = vmax.f32 %v5101_v20, 0.0 }
 0x4b8   :  { %v5044_v30 = vpop.f32.mrb[12].mxu1  ;;  %v4955_v60 = vpop.f32.mrb[12].mxu0  ;;  %v5120_v57 = vmax.f32 %v5104_v42, 0.0  ;;  %v5118_v10 = vmax.f32 %v5102_v5, 0.0 }
 0x4b9   :  { %v5107_v62 = vadd.f32 %v5089_v49, %v5044_v30  ;;  %v5046_v37 = vpop.f32.mrb[13].mxu1  ;;  %v5105_v9 = vadd.f32 %v5089_v49, %v4955_v60  ;;  %v4957_v23 = vpop.f32.mrb[13].mxu0 }
 0x4ba   :  { %v5108_v48 = vadd.f32 %v5089_v49, %v5046_v37  ;;  %v5106_v32 = vadd.f32 %v5089_v49, %v4957_v23  ;;  %v5133_v23 = vld [vmem:[%s11882_s2 + $0x18] sm:$0xff] }
 0x4bb   :  { %v5123_v55 = vmax.f32 %v5107_v62, 0.0  ;;  %v5121_v0 = vmax.f32 %v5105_v9, 0.0 }
 0x4bc   :  { %v5124_v24 = vmax.f32 %v5108_v48, 0.0  ;;  %v5050_v12 = vpop.f32.mrb[14].mxu1  ;;  %v5122_v59 = vmax.f32 %v5106_v32, 0.0  ;;  %v4961_v2 = vpop.f32.mrb[14].mxu0  ;;  %v5136_v32 = vld [vmem:[%s11882_s2 + $0xa8] sm:$0xff] }
 0x4bd   :  { %v8123_v25 = vpack.c.bf16 %v5123_v55, %v5119_v52  ;;  %v5052_v38 = vpop.f32.mrb[15].mxu1  ;;  %v8115_v51 = vpack.c.bf16 %v5121_v0, %v5117_v29  ;;  %v4963_v36 = vpop.f32.mrb[15].mxu0  ;;  %v5111_v61 = vadd.f32 %v5094_v45, %v5050_v12  ;;  %v5109_v47 = vadd.f32 %v5094_v45, %v4961_v2  ;;  %v5134_v52 = vld [vmem:[%s11882_s2 + $0x48] sm:$0xff]  ;;  %v5135_v55 = vld [vmem:[%s11882_s2 + $0x78] sm:$0xff]  ;;  %v5827_v29 = vld [vmem:[%s11883_s3] sm:$0xf] }
 0x4be   :  { %v8121_v53 = vpack.c.bf16 %v5124_v24, %v5120_v57  ;;  %v8113_v41 = vpack.c.bf16 %v5122_v59, %v5118_v10  ;;  %v5112_v39 = vadd.f32 %v5094_v45, %v5052_v38  ;;  %v5110_v56 = vadd.f32 %v5094_v45, %v4963_v36  ;;  %v11023_v57 = vld [vmem:[%s11883_s3] sm:$0xf]  ;;  %5909 = vrot.lane.b32.xlu0 %v5827_v29, %s9323_s7  ;;  %v5139_v12 = vpop.permute.xlu0 %5138 }
 0x4bf   :  { %v5127_v49 = vmax.f32 %v5111_v61, 0.0  ;;  %v5125_v20 = vmax.f32 %v5109_v47, 0.0  ;;  %5537 = vrot.lane.b32.xlu1 %v11023_v57, %s9322_s27  ;;  %v6059_v24 = vld [vmem:[%s11883_s3] sm:$0xf] }
 0x4c0   :  { %v5056_v11 = vpop.f32.mrb[16].mxu1  ;;  %8122 = vmatprep.subr.bf16.mxu1 %v8121_v53  ;;  %v4967_v19 = vpop.f32.mrb[16].mxu0  ;;  %8114 = vmatprep.subr.bf16.mxu0 %v8113_v41  ;;  %v5128_v42 = vmax.f32 %v5112_v39, 0.0  ;;  %v5126_v62 = vmax.f32 %v5110_v56, 0.0 }
 0x4c1   :  { %v5115_v14 = vadd.f32 %v5099_v1, %v5056_v11  ;;  %v5058_v40 = vpop.f32.mrb[17].mxu1  ;;  %8124 = vmatpush1.bf16.msra.mxu1 %v8123_v25  ;;  %v5113_v50 = vadd.f32 %v5099_v1, %v4967_v19  ;;  %v4969_v63 = vpop.f32.mrb[17].mxu0  ;;  %8116 = vmatpush1.bf16.msra.mxu0 %v8115_v51 }
 0x4c2   :  { %v5116_v7 = vadd.f32 %v5099_v1, %v5058_v40  ;;  %v5114_v31 = vadd.f32 %v5099_v1, %v4969_v63  ;;  %v5143_v51 = vpop.permute.xlu1 %5142 }
 0x4c3   :  { %v5131_v44 = vmax.f32 %v5115_v14, 0.0  ;;  %v5129_v5 = vmax.f32 %v5113_v50, 0.0  ;;  %6141 = vrot.lane.b32.xlu1 %v6059_v24, %s9324_s8 }
 0x4c4   :  { %v5132_v30 = vmax.f32 %v5116_v7, 0.0  ;;  %v5130_v60 = vmax.f32 %v5114_v31, 0.0 }
 0x4c5   :  { %v8127_v37 = vpack.c.bf16 %v5131_v44, %v5127_v49  ;;  %v8119_v9 = vpack.c.bf16 %v5129_v5, %v5125_v20 }
 0x4c6   :  { %v8125_v48 = vpack.c.bf16 %v5132_v30, %v5128_v42  ;;  %v8117_v45 = vpack.c.bf16 %v5130_v60, %v5126_v62  ;;  %v5147_v63 = vpop.permute.xlu1 %5146 }
 0x4c8   :  { %8126 = vmatprep.subr.bf16.mxu1 %v8125_v48  ;;  %8118 = vmatprep.subr.bf16.mxu0 %v8117_v45 }
 0x4c9   :  { %8128 = vmatpush1.bf16.msra.mxu1 %v8127_v37  ;;  %8120 = vmatpush1.bf16.msra.mxu0 %v8119_v9 }
 0x4cc   :  { %7777 = vmatmul.mubr.msk.f32.vlgmr.msra.gmra.mrb[18].mxu1 %vm12312_vm10, %v5133_v23  ;;  %7773 = vmatmul.mubr.msk.f32.vlgmr.msra.gmra.mrb[18].mxu0 %vm12313_vm5, %v5133_v23  ;;  %vm12333_vm10 = vcmask 121856   ;;  %vm12334_vm5 = vcmask 7168  }
 0x4cd   :  { %5324 = vmatprep.mubr.f32.mxu1 %v12098_v46  ;;  %5235 = vmatprep.mubr.f32.mxu0 %v12098_v46 }
 0x4d0   :  { %7778 = vmatmul.mubr.msk.f32.gmra.mrb[20].mxu1 %vm12314_vm3, %v5134_v52  ;;  %7774 = vmatmul.mubr.msk.f32.gmra.mrb[20].mxu0 %vm12315_vm7, %v5134_v52  ;;  %vm12337_vm3 = vcmask 1039360   ;;  %vm12339_vm7 = vcmask 130048  }
 0x4d1   :  { %5330 = vmatprep.mubr.f32.mxu1 %v12098_v46  ;;  %5241 = vmatprep.mubr.f32.mxu0 %v12098_v46 }
 0x4d4   :  { %7779 = vmatmul.mubr.msk.f32.gmra.mrb[22].mxu1 %vm12316_vm15, %v5135_v55  ;;  %7775 = vmatmul.mubr.msk.f32.gmra.mrb[22].mxu0 %vm12317_vm14, %v5135_v55  ;;  %vm12340_vm15 = vmmov %vm12339_vm7 }
 0x4d5   :  { %5336 = vmatprep.mubr.f32.mxu1 %v12098_v46  ;;  %5247 = vmatprep.mubr.f32.mxu0 %v12098_v46  ;;  %vm12341_vm14 = vmmov %vm12339_vm7 }
 0x4d8   :  { %7780 = vmatmul.mubr.msk.f32.gmra.mrb[24].mxu1 %vm12301_vm1, %v5136_v32  ;;  %7776 = vmatmul.mubr.msk.f32.gmra.mrb[24].mxu0 %vm12318_vm11, %v5136_v32  ;;  %vm12342_vm1 = vmmov %vm12339_vm7 }
 0x4d9   :  { %5676 = vmatprep.mubr.f32.mxu1 %v12098_v46  ;;  %5605 = vmatprep.mubr.f32.mxu0 %v12098_v46  ;;  %vm12343_vm11 = vmmov %vm12342_vm1 }
 0x59f   :  { %v5320_v0 = vpop.f32.mrb[18].mxu1  ;;  %v5231_v59 = vpop.f32.mrb[18].mxu0 }
 0x5a0   :  { %v5321_v10 = vadd.f32 %v5320_v0, %v5139_v12  ;;  %v5322_v25 = vpop.f32.mrb[19].mxu1  ;;  %v5232_v2 = vadd.f32 %v5231_v59, %v5139_v12  ;;  %v5233_v53 = vpop.f32.mrb[19].mxu0 }
 0x5a1   :  { %v5323_v38 = vadd.f32 %v5322_v25, %v5139_v12  ;;  %v5234_v41 = vadd.f32 %v5233_v53, %v5139_v12 }
 0x5a2   :  { %v11035_v36 = vmax.f32 %v5321_v10, 0.0  ;;  %v11039_v39 = vmax.f32 %v5232_v2, 0.0  ;;  %v5151_v10 = vpop.permute.xlu0 %5150 }
 0x5a3   :  { %v11037_v61 = vmax.f32 %v5323_v38, 0.0  ;;  %v5326_v47 = vpop.f32.mrb[20].mxu1  ;;  %v11041_v1 = vmax.f32 %v5234_v41, 0.0  ;;  %v5237_v14 = vpop.f32.mrb[20].mxu0 }
 0x5a4   :  { %12319 = vst [vmem:[#allocation17_spill] sm:$0xff] %v11039_v39  ;;  %v11043_v11 = vadd.f32 %v5326_v47, %v5143_v51  ;;  %v5328_v56 = vpop.f32.mrb[21].mxu1  ;;  %v5238_v7 = vadd.f32 %v5237_v14, %v5143_v51  ;;  %v5239_v50 = vpop.f32.mrb[21].mxu0 }
 0x5a5   :  { %12320 = vst [vmem:[#allocation16_spill] sm:$0xff] %v11041_v1  ;;  %v8972_v40 = vpack.i.bf16 %v11037_v61, %v11035_v36  ;;  %v5329_v19 = vadd.f32 %v5328_v56, %v5143_v51  ;;  %v8967_v44 = vpack.i.bf16 %v11041_v1, %v11039_v39  ;;  %v5240_v31 = vadd.f32 %v5239_v50, %v5143_v51 }
 0x5a6   :  { %v5349_v49 = vmax.f32 %v11043_v11, 0.0  ;;  %v11051_v20 = vmax.f32 %v5238_v7, 0.0  ;;  %v11058_v23 = vpack.i.bf16 %v11035_v36, %v11041_v1 }
 0x5a7   :  { %8973 = vrot.lane.b32.xlu0 %v8972_v40, %s9307_s0  ;;  %v5350_v42 = vmax.f32 %v5329_v19, 0.0  ;;  %v5332_v30 = vpop.f32.mrb[22].mxu1  ;;  %8968 = vrot.lane.b32.xlu1 %v8967_v44, %s9307_s0  ;;  %v11054_v5 = vmax.f32 %v5240_v31, 0.0  ;;  %v5243_v37 = vpop.f32.mrb[22].mxu0 }
 0x5a8   :  { %12321 = vst [vmem:[#allocation4_spill] sm:$0xff] %v11051_v20  ;;  %v5334_v62 = vpop.f32.mrb[23].mxu1  ;;  %v5333_v60 = vadd.f32 %v5332_v30, %v5147_v63  ;;  %v5244_v48 = vadd.f32 %v5243_v37, %v5147_v63  ;;  %v5245_v45 = vpop.f32.mrb[23].mxu0  ;;  %v11062_v52 = vpack.i.bf16 %v11051_v20, %v11039_v39 }
 0x5a9   :  { %12322 = vst [vmem:[#allocation5_spill] sm:$0xff] %v11054_v5  ;;  %v5335_v9 = vadd.f32 %v5334_v62, %v5147_v63  ;;  %v5246_v32 = vadd.f32 %v5245_v45, %v5147_v63  ;;  %v9022_v29 = vpack.i.bf16 %v11054_v5, %v11051_v20  ;;  %v11069_v25 = vpack.i.bf16 %v5350_v42, %v5349_v49 }
 0x5aa   :  { %v5353_v55 = vmax.f32 %v5333_v60, 0.0  ;;  %v11067_v0 = vmax.f32 %v5244_v48, 0.0  ;;  %v11076_v14 = vpack.i.bf16 %v11054_v5, %v11037_v61  ;;  %v11116_v45 = vpack.c.bf16 %v5349_v49, %v11035_v36  ;;  %v11169_v36 = vld [vmem:[%s11883_s3 + $0x4] sm:$0xf]  ;;  %v11199_v49 = vpop.permute.xlu1 %5537 }
 0x5ab   :  { %8983 = vrot.lane.b32.xlu0 %v8972_v40, %s9309_s9  ;;  %v5338_v24 = vpop.f32.mrb[24].mxu1  ;;  %v5354_v12 = vmax.f32 %v5335_v9, 0.0  ;;  %v11071_v38 = vmax.f32 %v5246_v32, 0.0  ;;  %v5249_v53 = vpop.f32.mrb[24].mxu0  ;;  %8978 = vrot.lane.b32.xlu1 %v8967_v44, %s9309_s9  ;;  %12331 = vst [vmem:[#allocation24_spill] sm:$0xff] %v11169_v36 }
 0x5ac   :  { %12323 = vst [vmem:[#allocation3_spill] sm:$0xff] %v11067_v0  ;;  %v5339_v59 = vadd.f32 %v5338_v24, %v5151_v10  ;;  %v5340_v2 = vpop.f32.mrb[25].mxu1  ;;  %v5250_v41 = vadd.f32 %v5249_v53, %v5151_v10  ;;  %v5251_v47 = vpop.f32.mrb[25].mxu0  ;;  %12328 = vst [vmem:[#allocation21_spill] sm:$0xff] %v11116_v45  ;;  %v6903_v53 = vld [vmem:[%s11883_s3 + $0x4] sm:$0xf] }
 0x5ad   :  { %12324 = vst [vmem:[#allocation2_spill] sm:$0xff] %v11071_v38  ;;  %v5341_v51 = vadd.f32 %v5340_v2, %v5151_v10  ;;  %v5252_v56 = vadd.f32 %v5251_v47, %v5151_v10  ;;  %v9082_v63 = vpack.i.bf16 %v5354_v12, %v5353_v55  ;;  %v9077_v31 = vpack.i.bf16 %v11071_v38, %v11067_v0 }
 0x5ae   :  { %v5357_v11 = vmax.f32 %v5339_v59, 0.0  ;;  %v11078_v7 = vmax.f32 %v5250_v41, 0.0  ;;  %v11087_v30 = vpack.i.bf16 %v5353_v55, %v11071_v38 }
 0x5af   :  { %v5358_v19 = vmax.f32 %v5341_v51, 0.0  ;;  %8988 = vrot.lane.b32.xlu0 %v8967_v44, %s9310_s12  ;;  %v11081_v50 = vmax.f32 %v5252_v56, 0.0  ;;  %8993 = vrot.lane.b32.xlu1 %v8972_v40, %s9310_s12 }
 0x5b0   :  { %12325 = vst [vmem:[#allocation6_spill] sm:$0xff] %v11078_v7  ;;  %v11091_v62 = vpack.i.bf16 %v11078_v7, %v11067_v0  ;;  %v11125_v59 = vpack.c.bf16 %v5357_v11, %v5353_v55  ;;  %v11211_v55 = vpop.permute.xlu1 %6141 }
 0x5b1   :  { %12326 = vst [vmem:[#allocation7_spill] sm:$0xff] %v11081_v50  ;;  %v11093_v37 = vpack.i.bf16 %v5358_v19, %v5357_v11  ;;  %v9127_v60 = vpack.i.bf16 %v11081_v50, %v11078_v7  ;;  %v11102_v48 = vpack.i.bf16 %v11081_v50, %v5354_v12  ;;  %v11121_v24 = vpack.c.bf16 %v5358_v19, %v5354_v12 }
 0x5b2   :  { %12330 = vst [vmem:[#allocation23_spill] sm:$0xff] %v11125_v59  ;;  %12332 = vst [vmem:[#allocation25_spill] sm:$0xff] %v11211_v55 }
 0x5b3   :  { %8998 = vrot.lane.b32.xlu0 %v8967_v44, %s9312_s14  ;;  %9003 = vrot.lane.b32.xlu1 %v8972_v40, %s9312_s14  ;;  %v11111_v44 = vpack.c.bf16 %v5350_v42, %v11037_v61  ;;  %12329 = vst [vmem:[#allocation22_spill] sm:$0xff] %v11121_v24  ;;  %v6671_v61 = vld [vmem:[%s11883_s3 + $0x4] sm:$0xf]  ;;  %v11207_v42 = vpop.permute.xlu0 %5909 }
 0x5b5   :  { %12327 = vst [vmem:[#allocation20_spill] sm:$0xff] %v11111_v44 }
 0x5b7   :  { %9008 = vrot.lane.b32.xlu0 %v11058_v23, %s9315_s17  ;;  %9018 = vrot.lane.b32.xlu1 %v11062_v52, %s9315_s17 }
 0x5bb   :  { %9013 = vrot.lane.b32.xlu0 %v11058_v23, %s9317_s19  ;;  %9023 = vrot.lane.b32.xlu1 %v9022_v29, %s9307_s0 }
 0x5bf   :  { %9028 = vrot.lane.b32.xlu0 %v11069_v25, %s9307_s0  ;;  %9033 = vrot.lane.b32.xlu1 %v9022_v29, %s9309_s9 }
 0x5c3   :  { %9038 = vrot.lane.b32.xlu0 %v11069_v25, %s9309_s9  ;;  %9048 = vrot.lane.b32.xlu1 %v11069_v25, %s9310_s12 }
 0x5c7   :  { %9043 = vrot.lane.b32.xlu0 %v9022_v29, %s9310_s12  ;;  %9058 = vrot.lane.b32.xlu1 %v11069_v25, %s9312_s14 }
 0x5cb   :  { %9053 = vrot.lane.b32.xlu0 %v9022_v29, %s9312_s14  ;;  %9063 = vrot.lane.b32.xlu1 %v11076_v14, %s9315_s17 }
 0x5cf   :  { %9068 = vrot.lane.b32.xlu0 %v11069_v25, %s9315_s17  ;;  %9073 = vrot.lane.b32.xlu1 %v11076_v14, %s9317_s19 }
 0x5d3   :  { %9083 = vrot.lane.b32.xlu0 %v9082_v63, %s9307_s0  ;;  %9078 = vrot.lane.b32.xlu1 %v9077_v31, %s9307_s0 }
 0x5d7   :  { %9088 = vrot.lane.b32.xlu0 %v9077_v31, %s9309_s9  ;;  %9093 = vrot.lane.b32.xlu1 %v9082_v63, %s9309_s9 }
 0x5db   :  { %9098 = vrot.lane.b32.xlu0 %v9077_v31, %s9310_s12  ;;  %9103 = vrot.lane.b32.xlu1 %v9082_v63, %s9310_s12 }
 0x5df   :  { %9113 = vrot.lane.b32.xlu0 %v9082_v63, %s9312_s14  ;;  %9108 = vrot.lane.b32.xlu1 %v9077_v31, %s9312_s14  ;;  %v9327_v63 = vmov 33  }
 0x5e0   :  { %9288 = vset.pattern.permute.xlu0 %v9327_v63  ;;  %v7383_v63 = vld [vmem:[%s11883_s3 + $0x8] sm:$0x3] }
 0x5e3   :  { %9118 = vrot.lane.b32.xlu0 %v11087_v30, %s9315_s17  ;;  %9123 = vrot.lane.b32.xlu1 %v11091_v62, %s9315_s17 }
 0x5e7   :  { %9133 = vrot.lane.b32.xlu0 %v11093_v37, %s9307_s0  ;;  %9128 = vrot.lane.b32.xlu1 %v9127_v60, %s9307_s0 }
 0x5eb   :  { %9138 = vrot.lane.b32.xlu0 %v11069_v25, %s9317_s19  ;;  %9143 = vrot.lane.b32.xlu1 %v11062_v52, %s9317_s19 }
 0x5ef   :  { %9148 = vrot.lane.b32.xlu0 %v9127_v60, %s9309_s9  ;;  %9153 = vrot.lane.b32.xlu1 %v11093_v37, %s9309_s9 }
 0x5f3   :  { %6521 = vrot.lane.b32.xlu0 %v11169_v36, %s9322_s27  ;;  %9158 = vrot.lane.b32.xlu1 %v11087_v30, %s9317_s19 }
 0x5f7   :  { %9163 = vrot.lane.b32.xlu0 %v9127_v60, %s9310_s12  ;;  %9173 = vrot.lane.b32.xlu1 %v11093_v37, %s9310_s12 }
 0x5fb   :  { %9168 = vrot.lane.b32.xlu0 %v11091_v62, %s9317_s19  ;;  %9178 = vrot.lane.b32.xlu1 %v11058_v23, %s9319_s21 }
 0x5ff   :  { %9188 = vrot.lane.b32.xlu0 %v11093_v37, %s9312_s14  ;;  %9183 = vrot.lane.b32.xlu1 %v9127_v60, %s9312_s14  ;;  %v9328_v60 = vmov 32  }
 0x600   :  { %9287 = vset.pattern.permute.xlu1 %v9328_v60 }
 0x603   :  { %9193 = vrot.lane.b32.xlu0 %v11076_v14, %s9319_s21  ;;  %9198 = vrot.lane.b32.xlu1 %v11069_v25, %s9319_s21 }
 0x607   :  { %9203 = vrot.lane.b32.xlu0 %v11062_v52, %s9319_s21  ;;  %6753 = vrot.lane.b32.xlu1 %v6671_v61, %s9323_s7 }
 0x60b   :  { %9208 = vrot.lane.b32.xlu0 %v11087_v30, %s9319_s21  ;;  %9213 = vrot.lane.b32.xlu1 %v11091_v62, %s9319_s21 }
 0x60f   :  { %9223 = vrot.lane.b32.xlu0 %v11093_v37, %s9315_s17  ;;  %9218 = vrot.lane.b32.xlu1 %v11102_v48, %s9315_s17 }
 0x613   :  { %9228 = vrot.lane.b32.xlu0 %v11058_v23, %s9321_s23  ;;  %9233 = vrot.lane.b32.xlu1 %v11076_v14, %s9321_s23 }
 0x617   :  { %9238 = vrot.lane.b32.xlu0 %v11102_v48, %s9317_s19  ;;  %9248 = vrot.lane.b32.xlu1 %v11093_v37, %s9317_s19 }
 0x619   :  { %v8974_v29 = vpop.permute.xlu0 %8973  ;;  %v8969_v12 = vpop.permute.xlu1 %8968 }
 0x61a   :  { %v8971_v10 = vunpack.i.h.bf16 %v8969_v12  ;;  %v8970_v60 = vunpack.i.l.bf16 %v8969_v12 }
 0x61b   :  { %9243 = vrot.lane.b32.xlu0 %v11069_v25, %s9321_s23  ;;  %9253 = vrot.lane.b32.xlu1 %v11062_v52, %s9321_s23 }
 0x61c   :  { %v5488_v12 = vsel %vm12341_vm14, %v8970_v60, %v8971_v10  ;;  %vm12351_vm14 = vcmask 1039360  }
 0x61d   :  { %v11221_v23 = vpop.permute.xlu0 %8983  ;;  %v11223_v2 = vpop.permute.xlu1 %8978 }
 0x61f   :  { %9263 = vrot.lane.b32.xlu0 %v11093_v37, %s9319_s21  ;;  %9258 = vrot.lane.b32.xlu1 %v11102_v48, %s9319_s21 }
 0x621   :  { %v11232_v51 = vpop.permute.xlu0 %8988  ;;  %v11234_v25 = vpop.permute.xlu1 %8993 }
 0x622   :  { %v11952_v52 = vunpack.i.h.bf16 %v11232_v51  ;;  %v11951_v41 = vunpack.i.l.bf16 %v11234_v25  ;;  %v8996_v59 = vunpack.i.h.bf16 %v11234_v25 }
 0x623   :  { %6985 = vrot.lane.b32.xlu0 %v6903_v53, %s9324_s8  ;;  %9268 = vrot.lane.b32.xlu1 %v11087_v30, %s9321_s23  ;;  %v11273_v53 = vld [vmem:[%s11883_s3 + $0x8] sm:$0xf] }
 0x624   :  { %v11246_v47 = vsel %vm12333_vm10, %v11952_v52, %v11951_v41  ;;  %12336 = vst [vmem:[#allocation27_spill] sm:$0xff] %v11273_v53  ;;  %v8975_v41 = vunpack.i.l.bf16 %v8974_v29  ;;  %v5516_v52 = vsel %vm12339_vm7, 0.0, %v8970_v60  ;;  %vm12344_vm10 = vmmov %vm12342_vm1  ;;  %vm12347_vm7 = vnez %v12070_v34 }
 0x625   :  { %v11248_v11 = vpop.permute.xlu0 %8998  ;;  %v11250_v56 = vpop.permute.xlu1 %9003 }
 0x626   :  { %v11950_v14 = vunpack.i.h.bf16 %v11248_v11  ;;  %v11949_v19 = vunpack.i.l.bf16 %v11250_v56 }
 0x627   :  { %9273 = vrot.lane.b32.xlu0 %v11102_v48, %s9321_s23  ;;  %9278 = vrot.lane.b32.xlu1 %v11093_v37, %s9321_s23 }
 0x628   :  { %v11263_v31 = vsel %vm12334_vm5, %v11950_v14, %v11949_v19  ;;  %v8976_v14 = vunpack.i.h.bf16 %v8974_v29  ;;  %vm12345_vm5 = vmmov %vm12342_vm1 }
 0x629   :  { %v11265_v30 = vpop.permute.xlu0 %9008  ;;  %v9019_v61 = vpop.permute.xlu1 %9018 }
 0x62a   :  { %12335 = vst [vmem:[#allocation26_spill] sm:$0xff] %v11265_v30  ;;  %v11961_v48 = vunpack.i.l.bf16 %v11265_v30  ;;  %v9020_v37 = vunpack.i.l.bf16 %v9019_v61  ;;  %v5490_v29 = vsel %vm12345_vm5, %v8975_v41, %v8976_v14  ;;  %v9021_v14 = vunpack.i.h.bf16 %v9019_v61 }
 0x62b   :  { %9283 = vrot.lane.b32.xlu0 %v11091_v62, %s9321_s23  ;;  %7366 = vperm.xlu1 %9287, %v11273_v53  }
 0x62c   :  { %v11282_v32 = vsel %vm12337_vm3, %v9020_v37, %v11961_v48  ;;  %vm12346_vm3 = vmmov %vm12342_vm1 }
 0x62d   :  { %12338 = vst [vmem:[#allocation28_spill] sm:$0xff] %v11282_v32  ;;  %v11284_v62 = vpop.permute.xlu0 %9013  ;;  %v9024_v40 = vpop.permute.xlu1 %9023 }
 0x62e   :  { %v9026_v9 = vunpack.i.h.bf16 %v9024_v40  ;;  %v9025_v19 = vunpack.i.l.bf16 %v9024_v40  ;;  %v5489_v40 = vsel %vm12343_vm11, %v8971_v10, %v8975_v41  ;;  %vm12356_vm11 = vcmask 138240  }
 0x62f   :  { %7390 = vperm.xlu0 %9288, %v7383_v63  }
 0x630   :  { %v5517_v53 = vsel %vm12340_vm15, 0.0, %v9025_v19  ;;  %v5491_v35 = vsel %vm12342_vm1, %v9025_v19, %v9026_v9  ;;  %vm12348_vm15 = vnez %v12072_v26  ;;  %vm12354_vm1 = vcmask 924672  }
 0x631   :  { %v9029_v8 = vpop.permute.xlu0 %9028  ;;  %v8131_v4 = vpack.c.bf16 %v5517_v53, %v5516_v52  ;;  %v11290_v17 = vpop.permute.xlu1 %9033  ;;  %v8129_v54 = vpack.c.bf16 %v5491_v35, %v5488_v12 }
 0x632   :  { %v9031_v37 = vunpack.i.h.bf16 %v9029_v8  ;;  %v9030_v48 = vunpack.i.l.bf16 %v9029_v8  ;;  %v9036_v32 = vunpack.i.h.bf16 %v11290_v17 }
 0x633   :  { %8130 = vmatprep.subr.bf16.mxu0 %v8129_v54 }
 0x634   :  { %v5492_v63 = vsel %vm12344_vm10, %v9026_v9, %v9030_v48  ;;  %v5493_v21 = vsel %vm12346_vm3, %v9030_v48, %v9031_v37  ;;  %8133 = vmatpush1.bf16.msk.msra.mxu0 %vm12347_vm7, %v8131_v4  ;;  %v8981_v48 = vunpack.i.h.bf16 %v11223_v2  ;;  %vm12357_vm10 = vmmov %vm12356_vm11 }
 0x635   :  { %v8141_v15 = vpack.c.bf16 %v5492_v63, %v5489_v40  ;;  %v11296_v33 = vpop.permute.xlu0 %9038  ;;  %v8139_v52 = vpack.c.bf16 %v5493_v21, %v5490_v29  ;;  %v11300_v8 = vpop.permute.xlu1 %9048  ;;  %vm12358_vm5 = vmmov %vm12357_vm10 }
 0x636   :  { %v9041_v0 = vunpack.i.h.bf16 %v11296_v33  ;;  %vm12359_vm3 = vmmov %vm12358_vm5 }
 0x637   :  { %8140 = vmatprep.subr.bf16.mxu1 %v8139_v52  ;;  %v8986_v52 = vunpack.i.h.bf16 %v11221_v23 }
 0x638   :  { %8143 = vmatpush1.bf16.msk.msra.mxu1 %vm12348_vm15, %v8141_v15  ;;  %v9016_v15 = vunpack.i.h.bf16 %v11284_v62 }
 0x639   :  { %v11304_v35 = vpop.permute.xlu0 %9043  ;;  %v11306_v54 = vpop.permute.xlu1 %9058 }
 0x63a   :  { %v9061_v34 = vunpack.i.h.bf16 %v11306_v54 }
 0x63d   :  { %v11308_v9 = vpop.permute.xlu0 %9053  ;;  %v11310_v10 = vpop.permute.xlu1 %9063 }
 0x63e   :  { %12349 = vst [vmem:[#allocation29_spill] sm:$0xff] %v11310_v10  ;;  %v11972_v41 = vunpack.i.h.bf16 %v11310_v10 }
 0x640   :  { %v11318_v21 = vsel %vm12351_vm14, %v9021_v14, %v11972_v41  ;;  %v8985_v14 = vunpack.i.l.bf16 %v11221_v23  ;;  %v8980_v41 = vunpack.i.l.bf16 %v11223_v2  ;;  %v9040_v23 = vunpack.i.l.bf16 %v11296_v33 }
 0x641   :  { %v11313_v19 = vpop.permute.xlu0 %9068  ;;  %12352 = vst [vmem:[#allocation31_spill] sm:$0xff] %v11318_v21  ;;  %v11320_v4 = vpop.permute.xlu1 %9073  ;;  %v9035_v21 = vunpack.i.l.bf16 %v11290_v17  ;;  %v12360_v17 = vunpack.i.h.bf16 %v11232_v51  ;;  %vm12361_vm14 = vcmask 121856   ;;  %v9015_v33 = vunpack.i.l.bf16 %v11284_v62 }
 0x642   :  { %12350 = vst [vmem:[#allocation30_spill] sm:$0xff] %v11313_v19  ;;  %12353 = vst [vmem:[#allocation32_spill] sm:$0xff] %v11320_v4  ;;  %v11973_v53 = vunpack.i.l.bf16 %v11320_v4  ;;  %v11354_v7 = vsel %vm12356_vm11, %v8985_v14, %v8986_v52  ;;  %v11357_v2 = vsel %vm12357_vm10, %v8980_v41, %v8981_v48  ;;  %v11360_v24 = vsel %vm12358_vm5, %v8981_v48, %v8985_v14 }
 0x643   :  { %v11363_v38 = vsel %vm12359_vm3, 0.0, %v8980_v41  ;;  %vm12364_vm11 = vmmov %vm12359_vm3  ;;  %v9051_v41 = vunpack.i.h.bf16 %v11300_v8  ;;  %v5413_v62 = vsel %vm12359_vm3, %v9040_v23, %v9041_v0 }
 0x644   :  { %v11329_v61 = vsel %vm12354_vm1, %v9016_v15, %v11973_v53  ;;  %v8990_v53 = vunpack.i.l.bf16 %v11232_v51  ;;  %vm12362_vm1 = vmmov %vm12361_vm14  ;;  %v11377_v39 = vsel %vm12364_vm11, %v9035_v21, %v9036_v32 }
 0x645   :  { %12355 = vst [vmem:[#allocation33_spill] sm:$0xff] %v11329_v61  ;;  %v9084_v60 = vpop.permute.xlu0 %9083  ;;  %v9079_v12 = vpop.permute.xlu1 %9078  ;;  %vm12365_vm10 = vmmov %vm12359_vm3  ;;  %v8149_v51 = vpack.c.bf16 %v11377_v39, %v11357_v2 }
 0x646   :  { %v11368_v50 = vsel %vm12361_vm14, %v8990_v53, %v12360_v17  ;;  %v11371_v45 = vsel %vm12362_vm1, 0.0, %v8990_v53  ;;  %v11380_v48 = vsel %vm12365_vm10, 0.0, %v9035_v21  ;;  %v12367_v17 = vunpack.i.l.bf16 %v11234_v25  ;;  %vm12368_vm5 = vmmov %vm12362_vm1 }
 0x647   :  { %v9086_v20 = vunpack.i.h.bf16 %v9084_v60  ;;  %v9085_v55 = vunpack.i.l.bf16 %v9084_v60  ;;  %v9081_v44 = vunpack.i.h.bf16 %v9079_v12  ;;  %v9080_v1 = vunpack.i.l.bf16 %v9079_v12  ;;  %vm12370_vm1 = vmmov %vm12359_vm3 }
 0x648   :  { %v11389_v53 = vsel %vm12368_vm5, %v12367_v17, %v8996_v59  ;;  %vm12369_vm14 = vcmask 924672   ;;  %v5412_v25 = vsel %vm12370_vm1, %v9036_v32, %v9040_v23  ;;  %v8161_v60 = vpack.c.bf16 %v5413_v62, %v11354_v7  ;;  %vm12372_vm11 = vmmov %vm12368_vm5 }
 0x649   :  { %v11331_v37 = vpop.permute.xlu0 %9088  ;;  %v11333_v40 = vpop.permute.xlu1 %9093  ;;  %v11395_v5 = vsel %vm12369_vm14, %v9015_v33, %v9016_v15  ;;  %v12371_v17 = vunpack.i.l.bf16 %v11300_v8  ;;  %vm12373_vm10 = vcmask 130048   ;;  %v8164_v43 = vpack.c.bf16 %v5412_v25, %v11360_v24 }
 0x64a   :  { %v5496_v2 = vsel %vm12373_vm10, %v9085_v55, %v9086_v20  ;;  %vm12374_vm5 = vmmov %vm12373_vm10  ;;  %v9096_v27 = vunpack.i.h.bf16 %v11333_v40 }
 0x64b   :  { %v11406_v21 = vsel %vm12372_vm11, %v12371_v17, %v9051_v41  ;;  %v5495_v59 = vsel %vm12374_vm5, %v9081_v44, %v9085_v55  ;;  %vm12375_vm3 = vmmov %vm12374_vm5  ;;  %vm12385_vm5 = vnez %v12084_v28  ;;  %v12442_v28 = vld [vmem:[#allocation16_spill] sm:$0xff] }
 0x64c   :  { %v5518_v32 = vsel %vm12375_vm3, 0.0, %v9080_v1  ;;  %vm12376_vm14 = vmmov %vm12375_vm3 }
 0x64d   :  { %v11335_v63 = vpop.permute.xlu0 %9098  ;;  %v11337_v29 = vpop.permute.xlu1 %9103  ;;  %vm12377_vm1 = vmmov %vm12375_vm3  ;;  %vm12386_vm3 = vcmask 261120  }
 0x64e   :  { %v5494_v23 = vsel %vm12377_vm1, %v9080_v1, %v9081_v44  ;;  %vm12378_vm9 = vmmov %vm12377_vm1 }
 0x64f   :  { %vm12379_vm11 = vmmov %vm12377_vm1 }
 0x650   :  { %vm12380_vm0 = vmmov %vm12377_vm1 }
 0x651   :  { %v11344_v61 = vpop.permute.xlu0 %9113  ;;  %v11348_v36 = vpop.permute.xlu1 %9108 }
 0x655   :  { %v11374_v52 = vpop.permute.xlu0 %9118  ;;  %v11384_v14 = vpop.permute.xlu1 %9123 }
 0x656   :  { %12363 = vst [vmem:[#allocation34_spill] sm:$0xff] %v11374_v52  ;;  %12366 = vst [vmem:[#allocation35_spill] sm:$0xff] %v11384_v14  ;;  %v9076_v14 = vunpack.i.h.bf16 %v11320_v4 }
 0x659   :  { %v9134_v0 = vpop.permute.xlu0 %9133  ;;  %v9129_v15 = vpop.permute.xlu1 %9128 }
 0x65a   :  { %v9136_v12 = vunpack.i.h.bf16 %v9134_v0  ;;  %v9135_v52 = vunpack.i.l.bf16 %v9134_v0  ;;  %v9131_v30 = vunpack.i.h.bf16 %v9129_v15  ;;  %v9130_v39 = vunpack.i.l.bf16 %v9129_v15 }
 0x65b   :  { %v9091_v15 = vunpack.i.h.bf16 %v11331_v37 }
 0x65c   :  { %v5499_v7 = vsel %vm12376_vm14, %v9135_v52, %v9136_v12  ;;  %v5498_v41 = vsel %vm12378_vm9, %v9131_v30, %v9135_v52  ;;  %v5519_v62 = vsel %vm12379_vm11, 0.0, %v9130_v39  ;;  %v5497_v4 = vsel %vm12380_vm0, %v9130_v39, %v9131_v30 }
 0x65d   :  { %v11416_v0 = vpop.permute.xlu0 %9138  ;;  %v8144_v17 = vpack.c.bf16 %v5499_v7, %v5496_v2  ;;  %v8136_v20 = vpack.c.bf16 %v5519_v62, %v5518_v32  ;;  %v8146_v19 = vpack.c.bf16 %v5498_v41, %v5495_v59  ;;  %v9144_v10 = vpop.permute.xlu1 %9143  ;;  %v9090_v12 = vunpack.i.l.bf16 %v11331_v37 }
 0x65e   :  { %v9140_v55 = vunpack.i.l.bf16 %v11416_v0  ;;  %v9146_v1 = vunpack.i.h.bf16 %v9144_v10  ;;  %v9145_v44 = vunpack.i.l.bf16 %v9144_v10  ;;  %v8134_v52 = vpack.c.bf16 %v5497_v4, %v5494_v23 }
 0x65f   :  { %8145 = vmatprep.subr.bf16.mxu1 %v8144_v17  ;;  %v9095_v2 = vunpack.i.l.bf16 %v11333_v40  ;;  %vm12381_vm0 = vcmask 924672   ;;  %v8185_v37 = vpack.c.bf16 %v11406_v21, %v11389_v53  ;;  %v9046_v10 = vunpack.i.h.bf16 %v11304_v35 }
 0x660   :  { %v11428_v30 = vsel %vm12381_vm0, %v9076_v14, %v9140_v55  ;;  %8148 = vmatpush1.bf16.msk.msra.mxu1 %vm12348_vm15, %v8146_v19  ;;  %vm12382_vm9 = vmmov %vm12381_vm0  ;;  %8135 = vmatprep.subr.bf16.mxu0 %v8134_v52  ;;  %v9045_v59 = vunpack.i.l.bf16 %v11304_v35  ;;  %vm12384_vm15 = vcmask 138240   ;;  %vm12390_vm11 = vnez %v12097_v22 }
 0x661   :  { %v8261_v24 = vpack.c.bf16 %v11428_v30, %v11395_v5  ;;  %v11438_v4 = vsel %vm12382_vm9, %v9145_v44, %v9015_v33  ;;  %v9149_v40 = vpop.permute.xlu0 %9148  ;;  %vm12383_vm10 = vmmov %vm12381_vm0  ;;  %8138 = vmatpush1.bf16.msk.msra.mxu0 %vm12347_vm7, %v8136_v20  ;;  %8163 = vmatprep.subr.msk.bf16.mxu1 %vm10252_vm12, %v8161_v60  ;;  %v9154_v53 = vpop.permute.xlu1 %9153  ;;  %v5414_v21 = vsel %vm12384_vm15, %v9090_v12, %v9091_v15  ;;  %v12399_v44 = vunpack.i.l.bf16 %v11300_v8 }
 0x662   :  { %v11442_v25 = vsel %vm12383_vm10, %v9146_v1, %v9076_v14  ;;  %v9151_v26 = vunpack.i.h.bf16 %v9149_v40  ;;  %v9150_v19 = vunpack.i.l.bf16 %v9149_v40  ;;  %v9156_v39 = vunpack.i.h.bf16 %v9154_v53  ;;  %8151 = vmatprep.subr.msk.bf16.mxu0 %vm12385_vm5, %v8149_v51  ;;  %vm12387_vm7 = vmmov %vm12384_vm15 }
 0x663   :  { %v8264_v33 = vpack.c.bf16 %v11442_v25, %v11438_v4  ;;  %v9155_v32 = vunpack.i.l.bf16 %v9154_v53  ;;  %7790 = vmatmul.mubr.msk.f32.vlgmr.msra.gmra.mrb[26].mxu1 %vm12386_vm3, %v11199_v49  ;;  %v5415_v35 = vsel %vm12387_vm7, %v9091_v15, %v9095_v2  ;;  %vm12388_vm14 = vmmov %vm12387_vm7  ;;  %v12397_v20 = vpack.c.bf16 %v11380_v48, %v11363_v38 }
 0x664   :  { %v5416_v14 = vsel %vm12388_vm14, %v9095_v2, %v9096_v27  ;;  %vm12389_vm1 = vmmov %vm12387_vm7  ;;  %8166 = vmatpush1.bf16.msk.msra.mxu1 %vm12390_vm11, %v8164_v43  ;;  %5820 = vmatprep.mubr.f32.mxu1 %v12098_v46  ;;  %vm12398_vm14 = vnez %v12094_v13  ;;  %v9060_v52 = vunpack.i.l.bf16 %v11306_v54  ;;  %v9101_v40 = vunpack.i.h.bf16 %v11335_v63 }
 0x665   :  { %v5417_v60 = vsel %vm12389_vm1, %v9150_v19, %v9151_v26  ;;  %vm12391_vm0 = vmmov %vm12389_vm1  ;;  %v11465_v62 = vpop.permute.xlu0 %6521  ;;  %v11476_v1 = vpop.permute.xlu1 %9158  ;;  %v9100_v38 = vunpack.i.l.bf16 %v11335_v63  ;;  %v9106_v48 = vunpack.i.h.bf16 %v11337_v29  ;;  %v12401_v8 = vunpack.i.h.bf16 %v11248_v11 }
 0x666   :  { %v5439_v7 = vsel %vm12391_vm0, 0.0, %v9150_v19  ;;  %v8155_v23 = vpack.c.bf16 %v5417_v60, %v5414_v21  ;;  %vm12392_vm9 = vmmov %vm12391_vm0  ;;  %v5438_v2 = vsel %vm12391_vm0, 0.0, %v9090_v12  ;;  %v12402_v54 = vunpack.i.l.bf16 %v11248_v11 }
 0x667   :  { %v5418_v51 = vsel %vm12392_vm9, %v9151_v26, %v9155_v32  ;;  %vm12393_vm10 = vmmov %vm12391_vm0  ;;  %v8158_v26 = vpack.c.bf16 %v5439_v7, %v5438_v2  ;;  %vm12403_vm9 = vcmask 7168   ;;  %v12405_v19 = vunpack.i.l.bf16 %v11250_v56 }
 0x668   :  { %v5419_v41 = vsel %vm12393_vm10, %v9155_v32, %v9156_v39  ;;  %vm12394_vm15 = vmmov %vm12386_vm3  ;;  %vm12395_vm3 = vcmask 121856   ;;  %v8170_v43 = vpack.c.bf16 %v5418_v51, %v5415_v35  ;;  %v6092_v12 = vsel %vm12403_vm9, %v12402_v54, %v12401_v8 }
 0x669   :  { %7785 = vmatmul.mubr.msk.f32.vlgmr.msra.gmra.mrb[26].mxu0 %vm12394_vm15, %v11199_v49  ;;  %v5863_v27 = vsel %vm12395_vm3, %v9045_v59, %v9046_v10  ;;  %vm12396_vm7 = vmmov %vm12395_vm3  ;;  %v8167_v15 = vpack.c.bf16 %v5419_v41, %v5416_v14  ;;  %v9164_v21 = vpop.permute.xlu0 %9163  ;;  %v9056_v39 = vunpack.i.h.bf16 %v11308_v9  ;;  %v9055_v32 = vunpack.i.l.bf16 %v11308_v9 }
 0x66a   :  { %v5889_v17 = vsel %vm12396_vm7, 0.0, %v9045_v59  ;;  %8154 = vmatpush1.bf16.msk.msra.mxu0 %vm12398_vm14, %v12397_v20  ;;  %5749 = vmatprep.mubr.f32.mxu0 %v12098_v46  ;;  %vm12400_vm1 = vmmov %vm12395_vm3  ;;  %v9105_v59 = vunpack.i.l.bf16 %v11337_v29  ;;  %v8173_v53 = vpack.c.bf16 %v5863_v27, %v11368_v50  ;;  %v9166_v35 = vunpack.i.h.bf16 %v9164_v21 }
 0x66b   :  { %v5864_v49 = vsel %vm12400_vm1, %v9046_v10, %v12399_v44  ;;  %8157 = vmatprep.subr.msk.bf16.mxu0 %vm12385_vm5, %v8155_v23  ;;  %8169 = vmatprep.subr.msk.bf16.mxu1 %vm10252_vm12, %v8167_v15  ;;  %v12404_v10 = vunpack.i.h.bf16 %v11250_v56  ;;  %vm12406_vm10 = vmmov %vm12403_vm9  ;;  %v8176_v29 = vpack.c.bf16 %v5889_v17, %v11371_v45  ;;  %v9165_v14 = vunpack.i.l.bf16 %v9164_v21  ;;  %v9174_v56 = vpop.permute.xlu1 %9173 }
 0x66c   :  { %8172 = vmatpush1.bf16.msk.msra.mxu1 %vm12390_vm11, %v8170_v43  ;;  %vm12407_vm15 = vnez %v12112_v18  ;;  %v8188_v50 = vpack.c.bf16 %v5864_v49, %v11246_v47  ;;  %vm12408_vm3 = vmmov %vm12403_vm9  ;;  %v9176_v60 = vunpack.i.h.bf16 %v9174_v56  ;;  %v9175_v22 = vunpack.i.l.bf16 %v9174_v56 }
 0x66d   :  { %v6094_v63 = vsel %vm12406_vm10, %v12405_v19, %v12404_v10  ;;  %8187 = vmatprep.subr.msk.bf16.mxu1 %vm12407_vm15, %v8185_v37  ;;  %v6097_v45 = vsel %vm12408_vm3, %v9060_v52, %v9061_v34  ;;  %vm12409_vm11 = vnez %v12109_v16  ;;  %vm12410_vm7 = vmmov %vm12400_vm1  ;;  %v5867_v7 = vsel %vm12400_vm1, %v9101_v40, %v9105_v59  ;;  %v11525_v41 = vpop.permute.xlu0 %9168 }
 0x66e   :  { %8160 = vmatpush1.bf16.msk.msra.mxu0 %vm12398_vm14, %v8158_v26  ;;  %v5866_v9 = vsel %vm12410_vm7, %v9100_v38, %v9101_v40  ;;  %vm12411_vm0 = vmmov %vm12400_vm1  ;;  %vm12413_vm9 = vcmask 261120   ;;  %vm12418_vm1 = vcmask 7168   ;;  %v9116_v49 = vunpack.i.h.bf16 %v11344_v61 }
 0x66f   :  { %8175 = vmatprep.subr.msk.bf16.mxu0 %vm12409_vm11, %v8173_v53  ;;  %v5868_v13 = vsel %vm12411_vm0, %v9105_v59, %v9106_v48  ;;  %vm12412_vm14 = vmmov %vm12411_vm0  ;;  %7808 = vmatmul.mubr.msk.f32.vlgmr.msra.gmra.mrb[26].mxu1 %vm12413_vm9, %v11023_v57  ;;  %v6095_v27 = vsel %vm12418_vm1, %v9055_v32, %v9056_v39  ;;  %v11534_v43 = vpop.permute.xlu1 %9178  ;;  %v9111_v40 = vunpack.i.h.bf16 %v11348_v36  ;;  %v9110_v48 = vunpack.i.l.bf16 %v11348_v36 }
 0x670   :  { %v5869_v23 = vsel %vm12412_vm14, %v9165_v14, %v9166_v35  ;;  %vm12414_vm10 = vmmov %vm12411_vm0  ;;  %vm12420_vm14 = vnez %v12122_v58  ;;  %6048 = vmatprep.mubr.f32.mxu1 %v12098_v46  ;;  %v8209_v26 = vpack.c.bf16 %v6097_v45, %v6094_v63  ;;  %v8197_v8 = vpack.c.bf16 %v6095_v27, %v6092_v12 }
 0x671   :  { %v5891_v47 = vsel %vm12414_vm10, 0.0, %v9165_v14  ;;  %v8179_v37 = vpack.c.bf16 %v5869_v23, %v5866_v9  ;;  %vm12415_vm3 = vmmov %vm12411_vm0  ;;  %8190 = vmatpush1.bf16.msk.msra.mxu1 %vm12420_vm14, %v8188_v50  ;;  %v6098_v12 = vsel %vm12418_vm1, %v9110_v48, %v9111_v40  ;;  %v12438_v23 = vld [vmem:[#allocation30_spill] sm:$0xff] }
 0x672   :  { %v5870_v34 = vsel %vm12415_vm3, %v9166_v35, %v9175_v22  ;;  %vm12416_vm4 = vmmov %vm12411_vm0  ;;  %vm12419_vm0 = vnez %v12120_v3 }
 0x673   :  { %v5871_v51 = vsel %vm12416_vm4, %v9175_v22, %v9176_v60  ;;  %vm12417_vm7 = vmmov %vm12413_vm9  ;;  %v8194_v15 = vpack.c.bf16 %v5870_v34, %v5867_v7  ;;  %v9184_v36 = vpop.permute.xlu1 %9183  ;;  %v12437_v7 = vld [vmem:[#allocation29_spill] sm:$0xff] }
 0x674   :  { %7799 = vmatmul.mubr.msk.f32.vlgmr.msra.gmra.mrb[26].mxu0 %vm12417_vm7, %v11023_v57  ;;  %v8191_v17 = vpack.c.bf16 %v5871_v51, %v5868_v13  ;;  %vm12421_vm9 = vmmov %vm12418_vm1  ;;  %v9115_v57 = vunpack.i.l.bf16 %v11344_v61  ;;  %v9186_v11 = vunpack.i.h.bf16 %v9184_v36  ;;  %v9185_v21 = vunpack.i.l.bf16 %v9184_v36 }
 0x675   :  { %8178 = vmatpush1.bf16.msk.msra.mxu0 %vm12419_vm0, %v8176_v29  ;;  %v6121_v20 = vsel %vm12421_vm9, 0.0, %v9055_v32  ;;  %vm12422_vm4 = vmmov %vm12415_vm3  ;;  %5977 = vmatprep.mubr.f32.mxu0 %v12098_v46  ;;  %v9065_v13 = vunpack.i.l.bf16 %v12437_v7 }
 0x676   :  { %v5890_v44 = vsel %vm12422_vm4, 0.0, %v9100_v38  ;;  %8181 = vmatprep.subr.msk.bf16.mxu0 %vm12409_vm11, %v8179_v37  ;;  %vm12423_vm10 = vmmov %vm12418_vm1  ;;  %8193 = vmatprep.subr.msk.bf16.mxu1 %vm12407_vm15, %v8191_v17  ;;  %v12424_v38 = vmov %v12402_v54  ;;  %v9189_v54 = vpop.permute.xlu0 %9188  ;;  %v12439_v37 = vld [vmem:[#allocation26_spill] sm:$0xff]  ;;  %v12441_v17 = vld [vmem:[#allocation5_spill] sm:$0xff] }
 0x677   :  { %v6096_v2 = vsel %vm12423_vm10, %v9056_v39, %v9060_v52  ;;  %v8182_v59 = vpack.c.bf16 %v5891_v47, %v5890_v44  ;;  %vm12425_vm3 = vmmov %vm12418_vm1  ;;  %v9191_v19 = vunpack.i.h.bf16 %v9189_v54  ;;  %v9190_v52 = vunpack.i.l.bf16 %v9189_v54  ;;  %8196 = vmatpush1.bf16.msk.msra.mxu1 %vm12420_vm14, %v8194_v15  ;;  %v11579_v9 = vpop.permute.xlu1 %9198 }
 0x678   :  { %v6120_v61 = vsel %vm12425_vm3, 0.0, %v12424_v38  ;;  %v8212_v53 = vpack.c.bf16 %v6096_v2, %v11263_v31  ;;  %vm12426_vm7 = vmmov %vm12418_vm1  ;;  %8211 = vmatprep.subr.msk.bf16.mxu1 %vm10252_vm12, %v8209_v26  ;;  %v9070_v47 = vunpack.i.l.bf16 %v12438_v23  ;;  %v9011_v34 = vunpack.i.h.bf16 %v12439_v37 }
 0x679   :  { %v8200_v10 = vpack.c.bf16 %v6121_v20, %v6120_v61  ;;  %8184 = vmatpush1.bf16.msk.msra.mxu0 %vm12419_vm0, %v8182_v59  ;;  %v6100_v29 = vsel %vm12426_vm7, %v9115_v57, %v9116_v49  ;;  %vm12427_vm9 = vmmov %vm12418_vm1  ;;  %vm12433_vm7 = vcmask 261120   ;;  %v12443_v15 = vpack.c.bf16 %v12441_v17, %v12442_v28  ;;  %v12444_v20 = vld [vmem:[#allocation20_spill] sm:$0xff]  ;;  %v12451_v61 = vld [vmem:[#allocation35_spill] sm:$0xff] }
 0x67a   :  { %8199 = vmatprep.subr.msk.bf16.mxu0 %vm12385_vm5, %v8197_v8  ;;  %v6099_v3 = vsel %vm12427_vm9, %v9111_v40, %v9115_v57  ;;  %vm12428_vm0 = vmmov %vm12418_vm1  ;;  %v11569_v14 = vpop.permute.xlu0 %9193  ;;  %v12447_v57 = vunpack.i.h.bf16 %v12437_v7  ;;  %v9125_v26 = vunpack.i.l.bf16 %v12451_v61  ;;  %v9141_v8 = vunpack.i.h.bf16 %v11416_v0  ;;  %v12472_v28 = vld [vmem:[#allocation6_spill] sm:$0xff] }
 0x67b   :  { %v6122_v58 = vsel %vm12428_vm0, 0.0, %v9110_v48  ;;  %vm12429_vm14 = vmmov %vm12428_vm0  ;;  %v11597_v6 = vpop.permute.xlu1 %6753  ;;  %v12450_v48 = vld [vmem:[#allocation34_spill] sm:$0xff]  ;;  %v9181_v0 = vunpack.i.h.bf16 %v11534_v43 }
 0x67c   :  { %v6103_v63 = vsel %vm12429_vm14, %v9190_v52, %v9191_v19  ;;  %vm12430_vm4 = vmmov %vm12428_vm0  ;;  %7817 = vmatmul.mubr.msk.f32.vlgmr.msra.gmra.mrb[26].mxu0 %vm12433_vm7, %v11207_v42  ;;  %v9121_v59 = vunpack.i.h.bf16 %v12450_v48  ;;  %v9120_v38 = vunpack.i.l.bf16 %v12450_v48  ;;  %v12455_v19 = vld [vmem:[#allocation4_spill] sm:$0xff]  ;;  %v9201_v48 = vunpack.i.h.bf16 %v11579_v9 }
 0x67d   :  { %v8215_v39 = vpack.c.bf16 %v6103_v63, %v6100_v29  ;;  %v6101_v31 = vsel %vm12430_vm4, %v9185_v21, %v9186_v11  ;;  %vm12431_vm10 = vmmov %vm12428_vm0  ;;  %8202 = vmatpush1.bf16.msk.msra.mxu0 %vm10510_vm2, %v8200_v10  ;;  %6209 = vmatprep.mubr.f32.mxu0 %v12098_v46  ;;  %v12452_v10 = vld [vmem:[#allocation25_spill] sm:$0xff] }
 0x67e   :  { %v6102_v32 = vsel %vm12431_vm10, %v9186_v11, %v9190_v52  ;;  %vm12432_vm3 = vmmov %vm12428_vm0  ;;  %v8203_v56 = vpack.c.bf16 %v6101_v31, %v6098_v12  ;;  %v11591_v51 = vpop.permute.xlu0 %9203  ;;  %v12456_v52 = vld [vmem:[#allocation17_spill] sm:$0xff]  ;;  %v12459_v11 = vunpack.i.l.bf16 %v12439_v37  ;;  %v9161_v37 = vunpack.i.h.bf16 %v11476_v1 }
 0x67f   :  { %v6123_v35 = vsel %vm12432_vm3, 0.0, %v9185_v21  ;;  %vm12434_vm1 = vmmov %vm12433_vm7  ;;  %v8218_v45 = vpack.c.bf16 %v6102_v32, %v6099_v3  ;;  %v12457_v36 = vpack.c.bf16 %v12455_v19, %v12456_v52  ;;  %v11626_v29 = vpop.permute.xlu1 %9213  ;;  %v12461_v3 = vld [vmem:[#allocation7_spill] sm:$0xff]  ;;  %vm12467_vm7 = vcmask 924672  }
 0x680   :  { %7826 = vmatmul.mubr.msk.f32.vlgmr.msra.gmra.mrb[26].mxu1 %vm12434_vm1, %v11207_v42  ;;  %v8206_v50 = vpack.c.bf16 %v6123_v35, %v6122_v58  ;;  %v9071_v42 = vunpack.i.h.bf16 %v12438_v23  ;;  %8205 = vmatprep.subr.msk.bf16.mxu0 %vm12385_vm5, %v8203_v56  ;;  %vm12453_vm4 = vmmov %vm12434_vm1  ;;  %v12462_v58 = vld [vmem:[#allocation2_spill] sm:$0xff]  ;;  %v12465_v35 = vld [vmem:[#allocation32_spill] sm:$0xff] }
 0x681   :  { %8214 = vmatpush1.bf16.msk.msra.mxu1 %vm10521_vm6, %v8212_v53  ;;  %6280 = vmatprep.mubr.f32.mxu1 %v12098_v46  ;;  %vm12454_vm10 = vmmov %vm12434_vm1  ;;  %v12458_v53 = vld [vmem:[#allocation21_spill] sm:$0xff]  ;;  %v12463_v63 = vpack.c.bf16 %v12461_v3, %v12462_v58  ;;  %v12466_v56 = vunpack.i.l.bf16 %v12465_v35  ;;  %v9205_v35 = vunpack.i.l.bf16 %v11591_v51 }
 0x682   :  { %8217 = vmatprep.subr.msk.bf16.mxu1 %vm10252_vm12, %v8215_v39  ;;  %8208 = vmatpush1.bf16.msk.msra.mxu0 %vm10510_vm2, %v8206_v50  ;;  %vm12440_vm12 = vcmask 1039360   ;;  %v11616_v54 = vpop.permute.xlu0 %9208  ;;  %v12464_v39 = vld [vmem:[#allocation22_spill] sm:$0xff] }
 0x683   :  { %v11600_v27 = vsel %vm12440_vm12, %v9011_v34, %v9065_v13  ;;  %8222 = vmatprep.subr.bf16.mxu0 %v12443_v15  ;;  %vm12445_vm5 = vmmov %vm12440_vm12  ;;  %v11639_v50 = vsel %vm12467_vm7, %v12466_v56, 0.0  ;;  %v12473_v15 = vld [vmem:[#allocation3_spill] sm:$0xff] }
 0x684   :  { %v6501_v44 = vsel %vm12445_vm5, %v9065_v13, 0.0  ;;  %vm12446_vm9 = vmmov %vm12445_vm5 }
 0x685   :  { %8220 = vmatpush1.bf16.msk.msra.mxu1 %vm10521_vm6, %v8218_v45  ;;  %v6502_v49 = vsel %vm12446_vm9, %v9071_v42, 0.0  ;;  %vm12448_vm0 = vmmov %vm12445_vm5  ;;  %7835 = vmatmul.mubr.msk.f32.vlgmr.msra.gmra.mrb[26].mxu0 %vm12453_vm4, %v12452_v10  ;;  %v9126_v45 = vunpack.i.h.bf16 %v12451_v61 }
 0x686   :  { %8230 = vmatprep.subr.bf16.mxu1 %v12444_v20  ;;  %v6477_v2 = vsel %vm12448_vm0, %v12447_v57, %v9070_v47  ;;  %vm12449_vm14 = vmmov %vm12448_vm0  ;;  %8224 = vmatpush1.bf16.msra.mxu0 %v12457_v36  ;;  %v8249_v12 = vpack.c.bf16 %v6502_v49, %v6501_v44  ;;  %v12474_v20 = vpack.c.bf16 %v12472_v28, %v12473_v15  ;;  %v12475_v44 = vld [vmem:[#allocation23_spill] sm:$0xff]  ;;  %v9219_v49 = vpop.permute.xlu1 %9218  ;;  %v9170_v57 = vunpack.i.l.bf16 %v11525_v41  ;;  %v12480_v36 = vld [vmem:[#allocation24_spill] sm:$0xff] }
 0x687   :  { %v6478_v40 = vsel %vm12449_vm14, %v9070_v47, %v9071_v42  ;;  %vm12460_vm3 = vmmov %vm12448_vm0  ;;  %8226 = vmatprep.subr.bf16.mxu0 %v12463_v63  ;;  %6359 = vmatprep.mubr.f32.mxu0 %v12098_v46  ;;  %v9224_v47 = vpop.permute.xlu0 %9223 }
 0x688   :  { %7844 = vmatmul.mubr.msk.f32.vlgmr.msra.gmra.mrb[26].mxu1 %vm12454_vm10, %v12452_v10  ;;  %v6474_v21 = vsel %vm12460_vm3, %v12459_v11, %v9011_v34  ;;  %v8252_v32 = vpack.c.bf16 %v6478_v40, %v11600_v27  ;;  %vm12468_vm1 = vmmov %vm12448_vm0  ;;  %v9160_v34 = vunpack.i.l.bf16 %v11476_v1  ;;  %v9226_v27 = vunpack.i.h.bf16 %v9224_v47 }
 0x689   :  { %8232 = vmatpush1.bf16.msra.mxu1 %v12458_v53  ;;  %v8237_v31 = vpack.c.bf16 %v6477_v2, %v6474_v21  ;;  %6430 = vmatprep.mubr.f32.mxu1 %v12098_v46  ;;  %v6480_v7 = vsel %vm12468_vm1, %v9120_v38, %v9121_v59  ;;  %vm12469_vm12 = vmmov %vm12448_vm0  ;;  %v9225_v17 = vunpack.i.l.bf16 %v9224_v47  ;;  %v9220_v2 = vunpack.i.l.bf16 %v9219_v49 }
 0x68a   :  { %8234 = vmatprep.subr.bf16.mxu1 %v12464_v39  ;;  %v6479_v13 = vsel %vm12469_vm12, %v9125_v26, %v9120_v38  ;;  %vm12470_vm5 = vmmov %vm12467_vm7  ;;  %8228 = vmatpush1.bf16.msra.mxu0 %v12474_v20  ;;  %v9180_v40 = vunpack.i.l.bf16 %v11534_v43  ;;  %v9200_v38 = vunpack.i.l.bf16 %v11579_v9  ;;  %v6504_v61 = vsel %vm12448_vm0, %v9226_v27, 0.0  ;;  %v11686_v63 = vpop.permute.xlu1 %9233 }
 0x68b   :  { %v11647_v23 = vsel %vm12470_vm5, %v9141_v8, 0.0  ;;  %vm12471_vm9 = vmmov %vm12470_vm5  ;;  %8239 = vmatprep.subr.msk.bf16.mxu0 %vm12409_vm11, %v8237_v31  ;;  %v11674_v52 = vpop.permute.xlu0 %9228  ;;  %vm12481_vm7 = vcmask 261120   ;;  %v9206_v31 = vunpack.i.h.bf16 %v11591_v51  ;;  %v6711_v47 = vsel %vm12470_vm5, %v9160_v34, %v9161_v37 }
 0x68c   :  { %v11652_v42 = vsel %vm12471_vm9, %v9140_v55, %v9141_v8  ;;  %v9221_v55 = vunpack.i.h.bf16 %v9219_v49  ;;  %vm12476_vm14 = vmmov %vm12448_vm0  ;;  %v8273_v39 = vpack.c.bf16 %v11647_v23, %v11639_v50  ;;  %v9196_v50 = vunpack.i.h.bf16 %v11569_v14  ;;  %v12497_v49 = vld [vmem:[#allocation12_spill] sm:$0xff] }
 0x68d   :  { %8236 = vmatpush1.bf16.msra.mxu1 %v12475_v44  ;;  %v6481_v26 = vsel %vm12476_vm14, %v9121_v59, %v9220_v2  ;;  %vm12477_vm4 = vmmov %vm12448_vm0  ;;  %7845 = vmatmul.mubr.msk.f32.vlgmr.msra.gmra.mrb[26].mxu0 %vm12481_vm7, %v12480_v36  ;;  %v12484_v59 = vld [vmem:[#allocation31_spill] sm:$0xff]  ;;  %v9195_v23 = vunpack.i.l.bf16 %v11569_v14 }
 0x68e   :  { %8251 = vmatprep.subr.msk.bf16.mxu1 %vm12407_vm15, %v8249_v12  ;;  %v6482_v8 = vsel %vm12477_vm4, %v9126_v45, %v9221_v55  ;;  %vm12478_vm10 = vmmov %vm12448_vm0  ;;  %v12485_v12 = vld [vmem:[#allocation28_spill] sm:$0xff]  ;;  %6589 = vmatprep.mubr.f32.mxu0 %v12098_v46  ;;  %v9249_v28 = vpop.permute.xlu1 %9248 }
 0x68f   :  { %v6483_v10 = vsel %vm12478_vm10, %v9221_v55, %v9225_v17  ;;  %vm12479_vm3 = vmmov %vm12448_vm0  ;;  %v8246_v11 = vpack.c.bf16 %v6482_v8, %v6479_v13  ;;  %v12486_v3 = vpack.c.bf16 %v12484_v59, %v12485_v12  ;;  %v9251_v20 = vunpack.i.h.bf16 %v9249_v28 }
 0x690   :  { %v6503_v19 = vsel %vm12479_vm3, %v9220_v2, 0.0  ;;  %vm12482_vm1 = vmmov %vm12481_vm7  ;;  %v8243_v53 = vpack.c.bf16 %v6483_v10, %v6480_v7  ;;  %v12489_v7 = vld [vmem:[#allocation33_spill] sm:$0xff]  ;;  %v9250_v44 = vunpack.i.l.bf16 %v9249_v28  ;;  %vm12498_vm3 = vnez %v12497_v49 }
 0x691   :  { %7846 = vmatmul.mubr.msk.f32.vlgmr.msra.gmra.mrb[26].mxu1 %vm12482_vm1, %v12480_v36  ;;  %vm12483_vm12 = vmmov %vm12448_vm0  ;;  %v8255_v21 = vpack.c.bf16 %v6504_v61, %v6503_v19  ;;  %8242 = vmatpush1.bf16.msk.msra.mxu0 %vm10669_vm13, %v12486_v3  ;;  %v8276_v13 = vpack.c.bf16 %v11652_v42, %v12489_v7  ;;  %vm12491_vm0 = vcmask 916480   ;;  %v9210_v55 = vunpack.i.l.bf16 %v11616_v54  ;;  %v12511_v7 = vld [vmem:[#allocation11_spill] sm:$0xff] }
 0x692   :  { %v6484_v9 = vsel %vm12483_vm12, %v9225_v17, %v9226_v27  ;;  %8254 = vmatpush1.bf16.msk.msra.mxu1 %vm10678_vm8, %v8252_v32  ;;  %v9171_v27 = vunpack.i.h.bf16 %v11525_v41  ;;  %8245 = vmatprep.subr.msk.bf16.mxu0 %vm12409_vm11, %v8243_v53  ;;  %vm12490_vm9 = vmmov %vm12470_vm5  ;;  %v11710_v32 = vsel %vm12491_vm0, %v9180_v40, %v9181_v0  ;;  %v9239_v41 = vpop.permute.xlu0 %9238  ;;  %v9215_v2 = vunpack.i.l.bf16 %v11626_v29  ;;  %v11760_v10 = vpop.permute.xlu1 %9253 }
 0x693   :  { %v8258_v56 = vpack.c.bf16 %v6484_v9, %v6481_v26  ;;  %8257 = vmatprep.subr.msk.bf16.mxu1 %vm12407_vm15, %v8255_v21  ;;  %v6710_v51 = vsel %vm12490_vm9, %v9170_v57, %v9160_v34  ;;  %vm12492_vm14 = vmmov %vm12491_vm0  ;;  %6660 = vmatprep.mubr.f32.mxu1 %v12098_v46  ;;  %v9241_v17 = vunpack.i.h.bf16 %v9239_v41  ;;  %v9240_v34 = vunpack.i.l.bf16 %v9239_v41 }
 0x694   :  { %v11714_v42 = vsel %vm12492_vm14, %v9201_v48, 0.0  ;;  %vm12493_vm4 = vmmov %vm12491_vm0  ;;  %v9211_v57 = vunpack.i.h.bf16 %v11616_v54  ;;  %v6735_v61 = vsel %vm12470_vm5, %v9251_v20, 0.0  ;;  %vm12505_vm14 = vcmask 261120  }
 0x695   :  { %v6940_v16 = vsel %vm12493_vm4, %v9196_v50, %v9200_v38  ;;  %vm12494_vm11 = vmmov %vm12491_vm0  ;;  %8248 = vmatpush1.bf16.msk.msra.mxu0 %vm10669_vm13, %v8246_v11  ;;  %v9216_v9 = vunpack.i.h.bf16 %v11626_v29  ;;  %v9231_v21 = vunpack.i.h.bf16 %v11674_v52  ;;  %v9230_v59 = vunpack.i.l.bf16 %v11674_v52 }
 0x696   :  { %v11719_v18 = vsel %vm12494_vm11, %v9200_v38, %v9201_v48  ;;  %vm12495_vm15 = vmmov %vm12491_vm0  ;;  %8260 = vmatpush1.bf16.msk.msra.mxu1 %vm10678_vm8, %v8258_v56  ;;  %8263 = vmatprep.subr.msk.bf16.mxu0 %vm12498_vm3, %v8261_v24  ;;  %v12500_v48 = vld [vmem:[#allocation10_spill] sm:$0xff]  ;;  %v11746_v24 = vpop.permute.xlu0 %9243  ;;  %v9236_v12 = vunpack.i.h.bf16 %v11686_v63  ;;  %v9235_v52 = vunpack.i.l.bf16 %v11686_v63  ;;  %v9255_v60 = vunpack.i.l.bf16 %v11760_v10 }
 0x697   :  { %v11724_v15 = vsel %vm12495_vm15, %v9205_v35, %v9180_v40  ;;  %vm12496_vm10 = vmmov %vm12491_vm0  ;;  %vm12501_vm1 = vnez %v12500_v48 }
 0x698   :  { %v11727_v14 = vsel %vm12496_vm10, %v9206_v31, %v9196_v50  ;;  %vm12499_vm7 = vmmov %vm12470_vm5  ;;  %8275 = vmatprep.subr.msk.bf16.mxu1 %vm12501_vm1, %v8273_v39  ;;  %7855 = vmatmul.mubr.msk.f32.vlgmr.msra.gmra.mrb[26].mxu0 %vm12505_vm14, %v11465_v62  ;;  %v6964_v1 = vsel %vm12496_vm10, %v9195_v23, 0.0  ;;  %v9259_v39 = vpop.permute.xlu1 %9258  ;;  %v9246_v31 = vunpack.i.h.bf16 %v11746_v24 }
 0x699   :  { %v6713_v40 = vsel %vm12499_vm7, %v9171_v27, %v9241_v17  ;;  %vm12502_vm12 = vmmov %vm12470_vm5  ;;  %8266 = vmatpush1.bf16.msk.msra.mxu0 %vm10510_vm2, %v8264_v33  ;;  %6821 = vmatprep.mubr.f32.mxu0 %v12098_v46  ;;  %v8295_v4 = vpack.c.bf16 %v11714_v42, %v6964_v1  ;;  %v8288_v43 = vpack.c.bf16 %v11727_v14, %v11724_v15  ;;  %v9261_v29 = vunpack.i.h.bf16 %v9259_v39  ;;  %v12514_v27 = vld [vmem:[#allocation14_spill] sm:$0xff] }
 0x69a   :  { %v6734_v38 = vsel %vm12502_vm12, %v9240_v34, 0.0  ;;  %vm12503_vm9 = vmmov %vm12470_vm5  ;;  %v8270_v33 = vpack.c.bf16 %v6713_v40, %v6710_v51  ;;  %v9264_v11 = vpop.permute.xlu0 %9263  ;;  %v9260_v56 = vunpack.i.l.bf16 %v9259_v39 }
 0x69b   :  { %v6714_v5 = vsel %vm12503_vm9, %v9241_v17, %v9250_v44  ;;  %vm12504_vm0 = vmmov %vm12470_vm5  ;;  %v8279_v8 = vpack.c.bf16 %v6735_v61, %v6734_v38  ;;  %v9266_v3 = vunpack.i.h.bf16 %v9264_v11  ;;  %v9265_v35 = vunpack.i.l.bf16 %v9264_v11 }
 0x69c   :  { %v6715_v30 = vsel %vm12504_vm0, %v9250_v44, %v9251_v20  ;;  %vm12506_vm4 = vmmov %vm12504_vm0  ;;  %v8267_v26 = vpack.c.bf16 %v6714_v5, %v6711_v47  ;;  %v9256_v47 = vunpack.i.h.bf16 %v11760_v10 }
 0x69d   :  { %v6712_v54 = vsel %vm12506_vm4, %v9161_v37, %v9240_v34  ;;  %vm12507_vm11 = vmmov %vm12505_vm14  ;;  %v8285_v37 = vpack.c.bf16 %v6940_v16, %v11710_v32 }
 0x69e   :  { %7864 = vmatmul.mubr.msk.f32.vlgmr.msra.gmra.mrb[26].mxu1 %vm12507_vm11, %v11465_v62  ;;  %vm12508_vm15 = vmmov %vm12496_vm10  ;;  %v8282_v36 = vpack.c.bf16 %v6715_v30, %v6712_v54  ;;  %v9245_v62 = vunpack.i.l.bf16 %v11746_v24  ;;  %8269 = vmatprep.subr.msk.bf16.mxu0 %vm12498_vm3, %v8267_v26  ;;  %vm12512_vm3 = vnez %v12511_v7  ;;  %v12530_v54 = vld [vmem:[#allocation9_spill] sm:$0xff] }
 0x69f   :  { %v6938_v19 = vsel %vm12508_vm15, %v9181_v0, %v9195_v23  ;;  %8278 = vmatpush1.bf16.msk.msra.mxu1 %vm10521_vm6, %v8276_v13  ;;  %vm12509_vm7 = vmmov %vm12496_vm10  ;;  %6892 = vmatprep.mubr.f32.mxu1 %v12098_v46  ;;  %v6986_v23 = vpop.permute.xlu0 %6985 }
 0x6a0   :  { %v8298_v25 = vpack.c.bf16 %v11719_v18, %v6938_v19  ;;  %8281 = vmatprep.subr.msk.bf16.mxu1 %vm12501_vm1, %v8279_v8  ;;  %v6943_v0 = vsel %vm12509_vm7, %v9210_v55, %v9211_v57  ;;  %vm12510_vm12 = vmmov %vm12509_vm7  ;;  %8272 = vmatpush1.bf16.msk.msra.mxu0 %vm10510_vm2, %v8270_v33  ;;  %vm12513_vm1 = vcmask 908288   ;;  %vm12515_vm2 = vnez %v12514_v27  ;;  %v9269_v18 = vpop.permute.xlu1 %9268  ;;  %v12533_v19 = vld [vmem:[#allocation15_spill] sm:$0xff] }
 0x6a1   :  { %v6942_v53 = vsel %vm12510_vm12, %v9215_v2, %v9210_v55  ;;  %8287 = vmatprep.subr.msk.bf16.mxu0 %vm12512_vm3, %v8285_v37  ;;  %v7172_v13 = vsel %vm12513_vm1, %v9236_v12, %v9245_v62  ;;  %vm12516_vm5 = vmmov %vm12509_vm7  ;;  %v9271_v20 = vunpack.i.h.bf16 %v9269_v18  ;;  %v9270_v44 = vunpack.i.l.bf16 %v9269_v18 }
 0x6a2   :  { %v6967_v50 = vsel %vm12516_vm5, %v9266_v3, 0.0  ;;  %vm12517_vm9 = vmmov %vm12516_vm5 }
 0x6a3   :  { %8284 = vmatpush1.bf16.msk.msra.mxu1 %vm10521_vm6, %v8282_v36  ;;  %v6944_v22 = vsel %vm12517_vm9, %v9211_v57, %v9260_v56  ;;  %vm12518_vm6 = vmmov %vm12516_vm5  ;;  %v9274_v2 = vpop.permute.xlu0 %9273 }
 0x6a4   :  { %8297 = vmatprep.subr.msk.bf16.mxu1 %vm12515_vm2, %v8295_v4  ;;  %v6945_v51 = vsel %vm12518_vm6, %v9216_v9, %v9261_v29  ;;  %vm12519_vm0 = vmmov %vm12516_vm5  ;;  %v9275_v48 = vunpack.i.l.bf16 %v9274_v2  ;;  %v9279_v38 = vpop.permute.xlu1 %9278  ;;  %v9276_v5 = vunpack.i.h.bf16 %v9274_v2 }
 0x6a5   :  { %v6946_v32 = vsel %vm12519_vm0, %v9261_v29, %v9265_v35  ;;  %vm12520_vm14 = vmmov %vm12507_vm11  ;;  %v8293_v16 = vpack.c.bf16 %v6945_v51, %v6942_v53  ;;  %v9281_v30 = vunpack.i.h.bf16 %v9279_v38  ;;  %v9280_v24 = vunpack.i.l.bf16 %v9279_v38 }
 0x6a6   :  { %7873 = vmatmul.mubr.msk.f32.vlgmr.msra.gmra.mrb[26].mxu0 %vm12520_vm14, %v11597_v6  ;;  %vm12521_vm4 = vmmov %vm12519_vm0  ;;  %v8290_v41 = vpack.c.bf16 %v6946_v32, %v6943_v0 }
 0x6a7   :  { %v6947_v63 = vsel %vm12521_vm4, %v9265_v35, %v9266_v3  ;;  %vm12522_vm11 = vmmov %vm12519_vm0  ;;  %8289 = vmatpush1.bf16.msra.mxu0 %v8288_v43  ;;  %7053 = vmatprep.mubr.f32.mxu0 %v12098_v46  ;;  %v9329_v3 = vmov 839922192   ;;  %v12547_v35 = vlaneseq }
 0x6a8   :  { %v6966_v42 = vsel %vm12522_vm11, %v9260_v56, 0.0  ;;  %vm12523_vm15 = vmmov %vm12520_vm14  ;;  %v8303_v28 = vpack.c.bf16 %v6947_v63, %v6944_v22  ;;  %8292 = vmatprep.subr.msk.bf16.mxu0 %vm12512_vm3, %v8290_v41  ;;  %vm12531_vm3 = vnez %v12530_v54  ;;  %vm12534_vm14 = vnez %v12533_v19 }
 0x6a9   :  { %7882 = vmatmul.mubr.msk.f32.vlgmr.msra.gmra.mrb[26].mxu1 %vm12523_vm15, %v11597_v6  ;;  %vm12524_vm10 = vmmov %vm12513_vm1  ;;  %v8300_v34 = vpack.c.bf16 %v6967_v50, %v6966_v42  ;;  %v7173_v6 = vsel %vm12513_vm1, %v9245_v62, %v9246_v31  ;;  %v7370_v39 = vunpack.c.l.s4 %v9329_v3  ;;  %v7373_v29 = vshrl.u32 %v12547_v35, 7 }
 0x6aa   :  { %v7197_v17 = vsel %vm12524_vm10, %v9246_v31, 0.0  ;;  %8299 = vmatpush1.bf16.msra.mxu1 %v8298_v25  ;;  %vm12525_vm7 = vmmov %vm12513_vm1  ;;  %7124 = vmatprep.mubr.f32.mxu1 %v12098_v46  ;;  %v9284_v25 = vpop.permute.xlu0 %9283  ;;  %vm12539_vm10 = vcmask 261120  }
 0x6ab   :  { %v7169_v15 = vsel %vm12525_vm7, %v9230_v59, %v9231_v21  ;;  %vm12526_vm12 = vmmov %vm12513_vm1  ;;  %8302 = vmatprep.subr.msk.bf16.mxu1 %vm12515_vm2, %v8300_v34  ;;  %8294 = vmatpush1.bf16.msra.mxu0 %v8293_v16  ;;  %v9286_v0 = vunpack.i.h.bf16 %v9284_v25  ;;  %v9285_v53 = vunpack.i.l.bf16 %v9284_v25  ;;  %v7371_v31 = vunpack.c.0.s8 %v7370_v39 }
 0x6ac   :  { %v7196_v14 = vsel %vm12526_vm12, %v9235_v52, 0.0  ;;  %v8305_v49 = vpack.c.bf16 %v7172_v13, %v7169_v15  ;;  %vm12527_vm5 = vmmov %vm12513_vm1 }
 0x6ad   :  { %v7168_v57 = vsel %vm12527_vm5, %v9255_v60, %v9230_v59  ;;  %vm12528_vm9 = vmmov %vm12513_vm1  ;;  %v8317_v40 = vpack.c.bf16 %v7197_v17, %v7196_v14  ;;  %v7374_v56 = vsub.s32 %v7371_v31, %v7373_v29 }
 0x6ae   :  { %v7171_v55 = vsel %vm12528_vm9, %v9256_v47, %v9236_v12  ;;  %vm12529_vm6 = vmmov %vm12513_vm1  ;;  %8304 = vmatpush1.bf16.msra.mxu1 %v8303_v28  ;;  %8307 = vmatprep.subr.msk.bf16.mxu0 %vm12531_vm3, %v8305_v49  ;;  %v12544_v12 = vld [vmem:[#allocation27_spill] sm:$0xff] }
 0x6af   :  { %v7170_v61 = vsel %vm12529_vm6, %v9231_v21, %v9235_v52  ;;  %v8308_v8 = vpack.c.bf16 %v7171_v55, %v7168_v57  ;;  %vm12532_vm0 = vmmov %vm12513_vm1  ;;  %8319 = vmatprep.subr.msk.bf16.mxu1 %vm12534_vm14, %v8317_v40  ;;  %7887 = vmatmul.mubr.msk.f32.vlgmr.msra.gmra.mrb[26].mxu0 %vm12539_vm10, %v6986_v23 }
 0x6b0   :  { %v8320_v26 = vpack.c.bf16 %v7173_v6, %v7170_v61  ;;  %v7175_v10 = vsel %vm12532_vm0, %v9270_v44, %v9271_v20  ;;  %vm12535_vm2 = vmmov %vm12532_vm0  ;;  %7283 = vmatprep.mubr.f32.mxu0 %v12098_v46 }
 0x6b1   :  { %v7198_v1 = vsel %vm12535_vm2, %v9275_v48, 0.0  ;;  %vm12536_vm4 = vmmov %vm12532_vm0  ;;  %8310 = vmatpush1.bf16.msk.msra.mxu0 %vm10669_vm13, %v8308_v8 }
 0x6b2   :  { %v7199_v37 = vsel %vm12536_vm4, %v9281_v30, 0.0  ;;  %vm12537_vm11 = vmmov %vm12532_vm0  ;;  %vm7449_vm4 = vcmask 0  }
 0x6b3   :  { %v7178_v36 = vsel %vm12537_vm11, %v9276_v5, %v9280_v24  ;;  %vm12538_vm15 = vmmov %vm12532_vm0  ;;  %v8323_v43 = vpack.c.bf16 %v7199_v37, %v7198_v1 }
 0x6b4   :  { %v7179_v4 = vsel %vm12538_vm15, %v9280_v24, %v9281_v30  ;;  %vm12540_vm7 = vmmov %vm12532_vm0  ;;  %v8311_v62 = vpack.c.bf16 %v7178_v36, %v7175_v10  ;;  %v7411_v24 = vld [vmem:[%s11881_s4 + $0x8] sm:$0x33] }
 0x6b5   :  { %v7176_v33 = vsel %vm12540_vm7, %v9271_v20, %v9275_v48  ;;  %vm12541_vm12 = vmmov %vm12539_vm10 }
 0x6b6   :  { %7892 = vmatmul.mubr.msk.f32.vlgmr.msra.gmra.mrb[26].mxu1 %vm12541_vm12, %v6986_v23  ;;  %v8326_v9 = vpack.c.bf16 %v7179_v4, %v7176_v33  ;;  %vm12542_vm1 = vmmov %vm12532_vm0  ;;  %8313 = vmatprep.subr.msk.bf16.mxu0 %vm12531_vm3, %v8311_v62  ;;  %v7391_v23 = vpop.permute.xlu0 %7390 }
 0x6b7   :  { %8322 = vmatpush1.bf16.msk.msra.mxu1 %vm10678_vm8, %v8320_v26  ;;  %v7177_v11 = vsel %vm12542_vm1, %v9286_v0, %v9276_v5  ;;  %vm12543_vm5 = vmmov %vm12532_vm0  ;;  %7354 = vmatprep.mubr.f32.mxu1 %v12098_v46  ;;  %v7367_v46 = vpop.permute.xlu1 %7366  ;;  %v7399_v41 = vrot.slane %v7391_v23, %v7374_v56  ;;  %v7410_v5 = vld [vmem:[%s11881_s4] sm:$0x33] }
 0x6b8   :  { %8325 = vmatprep.subr.msk.bf16.mxu1 %vm12534_vm14, %v8323_v43  ;;  %v7174_v21 = vsel %vm12543_vm5, %v9285_v53, %v9270_v44  ;;  %vm12545_vm9 = vmmov %vm12539_vm10  ;;  %v7375_v7 = vrot.slane %v7367_v46, %v7374_v56 }
 0x6b9   :  { %v8314_v59 = vpack.c.bf16 %v7177_v11, %v7174_v21  ;;  %vm12546_vm6 = vmmov %vm12545_vm9 }
 0x6ba   :  { %v7377_v52 = vcombine.high %v7375_v7, %v7375_v7 }
 0x6bb   :  { %8328 = vmatpush1.bf16.msk.msra.mxu1 %vm10678_vm8, %v8326_v9  ;;  %8316 = vmatpush1.bf16.msk.msra.mxu0 %vm10669_vm13, %v8314_v59  ;;  %vm12548_vm13 = vcmask 1041408  }
 0x6bc   :  { %vm12549_vm8 = vmmov %vm12548_vm13 }
 0x6bd   :  { %vm12550_vm3 = vmmov %vm12549_vm8 }
 0x6be   :  { %7910 = vmatmul.mubr.msk.f32.vlgmr.msra.gmra.mrb[26].mxu1 %vm12545_vm9, %v12544_v12  ;;  %7901 = vmatmul.mubr.msk.f32.vlgmr.msra.gmra.mrb[26].mxu0 %vm12546_vm6, %v12544_v12  ;;  %vm12551_vm0 = vmmov %vm12550_vm3 }
 0x6bf   :  { %vm12552_vm14 = vmmov %vm12551_vm0 }
 0x6c0   :  { %vm12553_vm2 = vmmov %vm12551_vm0 }
 0x791   :  { %v7356_v45 = vpop.f32.mrb[26].mxu1  ;;  %v7285_v13 = vpop.f32.mrb[26].mxu0 }
 0x792   :  { %v7381_v47 = vadd.f32 %v7375_v7, %v7356_v45  ;;  %v7358_v58 = vpop.f32.mrb[27].mxu1  ;;  %v7379_v60 = vadd.f32 %v7375_v7, %v7285_v13  ;;  %v7287_v27 = vpop.f32.mrb[27].mxu0 }
 0x793   :  { %v7382_v50 = vadd.f32 %v7377_v52, %v7358_v58  ;;  %v7380_v22 = vadd.f32 %v7377_v52, %v7287_v27 }
 0x794   :  { %9291 = vtanh.f32 %v7381_v47 }
 0x795   :  { %9293 = vtanh.f32 %v7379_v60  ;;  %v7417_v51 = vcombine.low %v7381_v47, %v7382_v50  ;;  %v7416_v32 = vcombine.low %v7379_v60, %v7380_v22 }
 0x796   :  { %9295 = vtanh.f32 %v7380_v22 }
 0x797   :  { %9297 = vtanh.f32 %v7382_v50  ;;  %v7911_v38 = vrot.slane %v7416_v32, 10  ;;  %v7912_v61 = vrot.slane %v7417_v51, 10 }
 0x799   :  { %v7424_v30 = vadd.f32 %v7911_v38, %v7410_v5  ;;  %v7425_v26 = vadd.f32 %v7912_v61, %v7411_v24 }
 0x79e   :  { %v9292_v63 = vpop.eup %9291 }
 0x79f   :  { %v9294_v42 = vpop.eup %9293 }
 0x7a0   :  { %v9296_v16 = vpop.eup %9295 }
 0x7a1   :  { %v9298_v18 = vpop.eup %9297  ;;  %v7404_v17 = vcombine.low %v9294_v42, %v9296_v16 }
 0x7a2   :  { %v7405_v34 = vcombine.low %v9292_v63, %v9298_v18 }
 0x7a3   :  { %v7408_v28 = vmul.f32 %v7404_v17, %v7399_v41 }
 0x7a4   :  { %v7409_v15 = vmul.f32 %v7405_v34, %v7399_v41 }
 0x7a5   :  { %v7426_v14 = vmul.f32 1.442695, %v7408_v28  ;;  %v7435_v20 = vcombine.high %v7408_v28, %v7408_v28  ;;  %v7437_v49 = vsel %vm12548_vm13, %v7408_v28, 0.0 }
 0x7a6   :  { %v7428_v44 = vmul.f32 1.442695, %v7409_v15  ;;  %v7452_v6 = vcombine.high %v7409_v15, %v7409_v15  ;;  %v7454_v2 = vsel %vm12550_vm3, %v7409_v15, 0.0 }
 0x7a7   :  { %9299 = vpow2.f32 %v7426_v14  ;;  %v7438_v57 = vsel %vm12549_vm8, %v7435_v20, 0.0 }
 0x7a8   :  { %9301 = vpow2.f32 %v7428_v44  ;;  %v7439_v55 = vadd.f32 %v7438_v57, %v7437_v49  ;;  %v7455_v40 = vsel %vm12551_vm0, %v7452_v6, 0.0 }
 0x7a9   :  { %v7456_v48 = vadd.f32 %v7455_v40, %v7454_v2 }
 0x7aa   :  { %7440 = vadd.xlane.f32.xlu1 %v7439_v55 }
 0x7ab   :  { %7457 = vadd.xlane.f32.xlu0 %v7456_v48 }
 0x7b1   :  { %v9300_v54 = vpop.eup %9299 }
 0x7b2   :  { %v9302_v8 = vpop.eup %9301  ;;  %v7430_v10 = vmul.f32 %v9300_v54, %v7424_v30 }
 0x7b3   :  { %v7431_v19 = vmul.f32 %v9302_v8, %v7425_v26 }
 0x7b4   :  { %7432 = vst [vmem:[%s11881_s4] sm:$0x33] %v7430_v10 }
 0x7b5   :  { %7433 = vst [vmem:[%s11881_s4 + $0x8] sm:$0x33] %v7431_v19 }
 0x837   :  { %v7441_v1 = vpop.xlane.xlu1 %7440 }
 0x838   :  { %v7442_v37 = vsel %vm12552_vm14, %v7441_v1, 0.0  ;;  %v7458_v36 = vpop.xlane.xlu0 %7457 }
 0x839   :  { %v7443_v4 = vrot.slane %v7442_v37, 4  ;;  %v7459_v25 = vsel %vm12553_vm2, %v7458_v36, 0.0 }
 0x83a   :  { %v7460_v33 = vrot.slane %v7459_v25, 4 }
 0x83b   :  { %v7444_v62 = vadd.f32 %v7443_v4, %v7442_v37 }
 0x83c   :  { %v7461_v43 = vadd.f32 %v7460_v33, %v7459_v25 }
 0x83d   :  { %v7445_v0 = vrot.slane %v7444_v62, 2 }
 0x83e   :  { %v7462_v9 = vrot.slane %v7461_v43, 2 }
 0x83f   :  { %v7446_v53 = vadd.f32 %v7445_v0, %v7444_v62 }
 0x840   :  { %v7463_v11 = vadd.f32 %v7462_v9, %v7461_v43 }
 0x841   :  { %v7447_v21 = vrot.slane %v7446_v53, 1 }
 0x842   :  { %v7464_v59 = vrot.slane %v7463_v11, 1 }
 0x843   :  { %v7448_v12 = vadd.f32 %v7447_v21, %v7446_v53 }
 0x844   :  { %v7465_v3 = vadd.f32 %v7464_v59, %v7463_v11 }
 0x845   :  { %7450 = vst.msk [vmem:[%s11884_s5] sm:$0x1] %vm7449_vm4, %v7448_v12 }
 0x846   :  { %7466 = vst.msk [vmem:[%s11884_s5 + $0x1] sm:$0x1] %vm7449_vm4, %v7465_v3 }

</bundles_post_ra>
